<compile_context>
chip_gen: v7x
topology: tpu7x:2x2x1
jax: 0.10.0
libtpu: 0.0.40
codegen_flags: <defaults>
</compile_context>

<pallas_src>
import jax
import jax.numpy as jnp
from jax.experimental import pallas as pl
from jax.experimental.pallas import tpu as pltpu

FEATURE_NUM = 32          # `feature_num` is undefined in the reference; keep a small size
H1, H2, H3 = 256, 256, 128
LN_EPS = 1e-5             # nn.LayerNorm default
NEG_SLOPE = 0.01          # F.leaky_relu default
MATMUL_DTYPE = jnp.bfloat16   # MXU operand dtype; accumulation stays f32


def critic_kernel(
    x_ref,                    # (TILE_B, F) f32 — natural layout, batch on sublanes
    w1_ref, b1_ref,           # (H1, F) bf16, (H1, 1) f32
    w2_ref, b2_ref,           # (H2, H1) bf16 (g1 folded in), (H2, 1) f32 (be1 folded in)
    w3_ref, b3_ref,           # (H3, H2) bf16 (g2 folded in), (H3, 1) f32 (be2 folded in)
    c_ref, s2_ref,            # (H3, 1) f32 = g3*w4,  (1, 1) f32 = dot(be3, w4) + b4
    out_ref,                  # (1, TILE_B) f32 — lane-dense
):
    def leaky_relu(v):
        # max(v, a*v) == leaky_relu(v) for 0 < a < 1; 2 VALU ops instead of 3.
        return jnp.maximum(v, NEG_SLOPE * v)

    def layer_norm(v):
        # Pure normalization (PyTorch biased variance, eps inside rsqrt); the affine params
        # of LN1/LN2 are folded into the next layer's weights on the host.
        mean = jnp.mean(v, axis=0, keepdims=True)               # (1, TILE_B)
        d = v - mean
        var = jnp.mean(d * d, axis=0, keepdims=True)            # (1, TILE_B)
        return d * jax.lax.rsqrt(var + LN_EPS)

    x = x_ref[...].astype(MATMUL_DTYPE)                         # (TILE_B, F) bf16

    # fc1: contract the shared feature axis of (H1, F) and (TILE_B, F) so the result is
    # already transposed, (H1, TILE_B) with batch on lanes.  Then leaky_relu -> LN1.
    h = jax.lax.dot_general(
        w1_ref[...], x, (((1,), (1,)), ((), ())),
        preferred_element_type=jnp.float32) + b1_ref[...]
    h = layer_norm(leaky_relu(h))

    # fc2 -> leaky_relu -> LN2   (dropout = identity in eval mode)
    h = jnp.dot(w2_ref[...], h.astype(MATMUL_DTYPE),
                preferred_element_type=jnp.float32) + b2_ref[...]
    h = layer_norm(leaky_relu(h))

    # fc3 -> leaky_relu -> fused(LN3 + v_out):
    #   out = rsqrt(var+eps) * sum_f((h_f - mean) * g3_f * w4_f) + (dot(be3, w4) + b4)
    h = jnp.dot(w3_ref[...], h.astype(MATMUL_DTYPE),
                preferred_element_type=jnp.float32) + b3_ref[...]
    h = leaky_relu(h)                                           # (H3, TILE_B)
    mean = jnp.mean(h, axis=0, keepdims=True)                   # (1, TILE_B)
    d = h - mean
    var = jnp.mean(d * d, axis=0, keepdims=True)                # (1, TILE_B)
    dc = jnp.sum(d * c_ref[...], axis=0, keepdims=True)         # (1, TILE_B)
    out_ref[...] = (jax.lax.rsqrt(var + LN_EPS) * dc + s2_ref[...]).astype(out_ref.dtype)


def choose_tile_b(B):
    """Batch tile (lane width of the transposed activations). Always a multiple of 256
    (v6e/v7x MXU) and 128 (v5e).  <=1024: 256 (bounds padding waste; >=2 grid steps for
    v7x's 2 TensorCores once B > 256).  >=8192: 1024 (v6e per-step amortization, still only
    a few MiB of VMEM, safe for v7x's 64 MiB).  Otherwise 512."""
    if B <= 1024:
        return 256
    if B >= 8192:
        return 1024
    return 512


def critic_forward(state, kparams):
    """state: (B, FEATURE_NUM) f32 -> (B, 1) f32."""
    B, F = state.shape
    assert F == FEATURE_NUM

    tile_b = choose_tile_b(B)
    n_tiles = pl.cdiv(B, tile_b)
    b_pad = n_tiles * tile_b
    x = state if b_pad == B else jnp.pad(state, ((0, b_pad - B), (0, 0)))

    def resident(shape):                       # same block every step -> stays in VMEM
        return pl.BlockSpec(shape, lambda i: (0, 0))

    in_specs = [
        pl.BlockSpec((tile_b, F), lambda i: (i, 0)),   # x tile (double-buffered)
        resident((H1, F)), resident((H1, 1)),
        resident((H2, H1)), resident((H2, 1)),
        resident((H3, H2)), resident((H3, 1)),
        resident((H3, 1)), resident((1, 1)),
    ]
    out_specs = pl.BlockSpec((1, tile_b), lambda i: (0, i))

    weight_bytes = 2 * (H1 * F + H2 * H1 + H3 * H2) + 4 * (H1 + H2 + 2 * H3 + 1)
    cost = pl.CostEstimate(
        flops=2 * b_pad * (F * H1 + H1 * H2 + H2 * H3 + H3),
        transcendentals=3 * b_pad,             # one rsqrt per LayerNorm per batch element
        bytes_accessed=b_pad * F * 4 + weight_bytes + b_pad * 4,
    )

    out = pl.pallas_call(
        critic_kernel,
        out_shape=jax.ShapeDtypeStruct((1, b_pad), jnp.float32),
        grid=(n_tiles,),
        in_specs=in_specs,
        out_specs=out_specs,
        compiler_params=pltpu.CompilerParams(
            dimension_semantics=("parallel",),  # shard batch tiles across v7x's 2 TCs
            vmem_limit_bytes=32 * 1024 * 1024,
        ),
        cost_estimate=cost,
    )(x,
      kparams["w1"], kparams["b1"],
      kparams["w2"], kparams["b2"],
      kparams["w3"], kparams["b3"],
      kparams["c"], kparams["s2"])

    return out[0, :B].reshape(B, 1)


# ----------------------------- parameters & reference -----------------------------

def init_reference_params(key):
    """PyTorch-layout f32 params. nn.Linear default: U(-1/sqrt(fan_in), 1/sqrt(fan_in)).
    LayerNorm params are randomized (PyTorch default is weight=1 / bias=0) so the host-side
    affine folding is actually exercised by the test."""
    def linear(k, fan_in, fan_out):
        kw, kb = jax.random.split(k)
        bound = 1.0 / float(fan_in) ** 0.5
        w = jax.random.uniform(kw, (fan_out, fan_in), jnp.float32, -bound, bound)  # (out, in)
        b = jax.random.uniform(kb, (fan_out,), jnp.float32, -bound, bound)
        return w, b

    k1, k2, k3, k4, k5 = jax.random.split(key, 5)
    w1, b1 = linear(k1, FEATURE_NUM, H1)
    w2, b2 = linear(k2, H1, H2)
    w3, b3 = linear(k3, H2, H3)
    w4, b4 = linear(k4, H3, 1)
    kg = jax.random.split(k5, 6)
    u = lambda k, n, lo, hi: jax.random.uniform(k, (n,), jnp.float32, lo, hi)
    return {
        "w1": w1, "b1": b1, "g1": u(kg[0], H1, 0.5, 1.5), "be1": u(kg[1], H1, -0.5, 0.5),
        "w2": w2, "b2": b2, "g2": u(kg[2], H2, 0.5, 1.5), "be2": u(kg[3], H2, -0.5, 0.5),
        "w3": w3, "b3": b3, "g3": u(kg[4], H3, 0.5, 1.5), "be3": u(kg[5], H3, -0.5, 0.5),
        "w4": w4, "b4": b4,
    }


def prepare_kernel_params(ref):
    """Kernel layout: (out, in) weights, LN1/LN2 affines folded into fc2/fc3, LN3 affine +
    v_out folded into (c, s2).  Folding is done in f32; matmul weights are cast to bf16 once.
    Biases / folded columns are (H, 1) f32 so they broadcast over the lane (batch) axis."""
    w2f = ref["w2"] * ref["g1"][None, :]
    b2f = ref["b2"] + ref["w2"] @ ref["be1"]
    w3f = ref["w3"] * ref["g2"][None, :]
    b3f = ref["b3"] + ref["w3"] @ ref["be2"]
    w4v = ref["w4"][0]                                      # (H3,)
    c = ref["g3"] * w4v
    s2 = jnp.sum(ref["be3"] * w4v) + ref["b4"][0]

    col = lambda v: v.reshape(-1, 1).astype(jnp.float32)
    return {
        "w1": ref["w1"].astype(MATMUL_DTYPE), "b1": col(ref["b1"]),
        "w2": w2f.astype(MATMUL_DTYPE),       "b2": col(b2f),
        "w3": w3f.astype(MATMUL_DTYPE),       "b3": col(b3f),
        "c": col(c),                          "s2": s2.reshape(1, 1).astype(jnp.float32),
    }


def critic_reference(state, p, matmul_dtype=jnp.float32):
    """Row-layout reference matching the PyTorch module (dropout = identity / eval).
    With matmul_dtype=bf16 it mimics the kernel's MXU operand precision."""
    def leaky(v):
        return jnp.where(v >= 0, v, NEG_SLOPE * v)

    def ln(v, g, b):
        m = jnp.mean(v, axis=-1, keepdims=True)
        var = jnp.mean((v - m) ** 2, axis=-1, keepdims=True)
        return (v - m) * jax.lax.rsqrt(var + LN_EPS) * g + b

    def lin(x, w, b):
        return jnp.dot(x.astype(matmul_dtype), w.T.astype(matmul_dtype),
                       preferred_element_type=jnp.float32) + b

    h = ln(leaky(lin(state, p["w1"], p["b1"])), p["g1"], p["be1"])
    h = ln(leaky(lin(h, p["w2"], p["b2"])), p["g2"], p["be2"])
    h = ln(leaky(lin(h, p["w3"], p["b3"])), p["g3"], p["be3"])
    return jnp.dot(h, p["w4"].T) + p["b4"]


if __name__ == "__main__":
    key = jax.random.PRNGKey(0)
    kx, kp = jax.random.split(key)
    B = 8
    state = jax.random.normal(kx, (B, FEATURE_NUM), jnp.float32)

    ref_params = init_reference_params(kp)
    kparams = prepare_kernel_params(ref_params)

    out = jax.block_until_ready(critic_forward(state, kparams))
    assert out.shape == (B, 1), out.shape

    # Check vs. a reference that mimics the kernel's bf16 MXU operands (folding differs only
    # by bf16 rounding placement).
    ref_bf16 = critic_reference(state, ref_params, matmul_dtype=jnp.bfloat16)
    assert jnp.allclose(out, ref_bf16, atol=1e-2, rtol=1e-2), (out, ref_bf16)

    # Loose check vs. pure-f32 PyTorch semantics (only bf16 operand rounding differs).
    ref_f32 = critic_reference(state, ref_params, matmul_dtype=jnp.float32)
    assert jnp.allclose(out, ref_f32, atol=3e-2, rtol=3e-2), (out, ref_f32)

    print("KERNEL_OK")
</pallas_src>

<mosaic_0001>
module attributes {stable_mosaic.version = 11 : i64} {
  func.func @critic_kernel(%arg0: i32, %arg1: memref<256x32xf32, #tpu.memory_space<vmem>>, %arg2: memref<256x32xbf16, #tpu.memory_space<vmem>>, %arg3: memref<256x1xf32, #tpu.memory_space<vmem>>, %arg4: memref<256x256xbf16, #tpu.memory_space<vmem>>, %arg5: memref<256x1xf32, #tpu.memory_space<vmem>>, %arg6: memref<128x256xbf16, #tpu.memory_space<vmem>>, %arg7: memref<128x1xf32, #tpu.memory_space<vmem>>, %arg8: memref<128x1xf32, #tpu.memory_space<vmem>>, %arg9: memref<1x1xf32, #tpu.memory_space<vmem>>, %arg10: memref<1x256xf32, #tpu.memory_space<vmem>>) attributes {dimension_semantics = [#tpu.dimension_semantics<parallel>], iteration_bounds = array<i64: 1>, scalar_prefetch = 0 : i64, scratch_operands = 0 : i64, tpu.core_type = #tpu.core_type<tc>, window_params = [{transform_indices = @transform_0, window_bounds = array<i64: 256, 32>}, {pipeline_mode = #tpu.pipeline_mode<synchronous>, transform_indices = @transform_1, window_bounds = array<i64: 256, 32>}, {pipeline_mode = #tpu.pipeline_mode<synchronous>, transform_indices = @transform_2, window_bounds = array<i64: 256, 1>}, {pipeline_mode = #tpu.pipeline_mode<synchronous>, transform_indices = @transform_3, window_bounds = array<i64: 256, 256>}, {pipeline_mode = #tpu.pipeline_mode<synchronous>, transform_indices = @transform_4, window_bounds = array<i64: 256, 1>}, {pipeline_mode = #tpu.pipeline_mode<synchronous>, transform_indices = @transform_5, window_bounds = array<i64: 128, 256>}, {pipeline_mode = #tpu.pipeline_mode<synchronous>, transform_indices = @transform_6, window_bounds = array<i64: 128, 1>}, {pipeline_mode = #tpu.pipeline_mode<synchronous>, transform_indices = @transform_7, window_bounds = array<i64: 128, 1>}, {pipeline_mode = #tpu.pipeline_mode<synchronous>, transform_indices = @transform_8, window_bounds = array<i64: 1, 1>}, {transform_indices = @transform_9, window_bounds = array<i64: 1, 256>}]} {
    %c0 = arith.constant 0 : index
    %c0_0 = arith.constant 0 : index
    %0 = vector.load %arg1[%c0, %c0_0] : memref<256x32xf32, #tpu.memory_space<vmem>>, vector<256x32xf32>
    %1 = arith.truncf %0 : vector<256x32xf32> to vector<256x32xbf16>
    %c0_1 = arith.constant 0 : index
    %c0_2 = arith.constant 0 : index
    %2 = vector.load %arg2[%c0_1, %c0_2] : memref<256x32xbf16, #tpu.memory_space<vmem>>, vector<256x32xbf16>
    %cst = arith.constant dense<0.000000e+00> : vector<256x256xf32>
    %3 = tpu.matmul %2, %1, %cst {dimension_numbers = #tpu.dot_dimension_numbers<[1], [1], [0], [0], [0, 0, 1, 0], [], []>} : vector<256x32xbf16>, vector<256x32xbf16>, vector<256x256xf32> -> vector<256x256xf32>
    %c0_3 = arith.constant 0 : index
    %c0_4 = arith.constant 0 : index
    %4 = vector.load %arg3[%c0_3, %c0_4] : memref<256x1xf32, #tpu.memory_space<vmem>>, vector<256x1xf32>
    %5 = vector.broadcast %4 : vector<256x1xf32> to vector<256x256xf32>
    %6 = arith.addf %3, %5 : vector<256x256xf32>
    %cst_5 = arith.constant 0.00999999977 : f32
    %7 = vector.broadcast %cst_5 : f32 to vector<256x256xf32>
    %8 = arith.mulf %7, %6 : vector<256x256xf32>
    %9 = arith.maximumf %6, %8 : vector<256x256xf32>
    %cst_6 = arith.constant dense<0.000000e+00> : vector<256xf32>
    %10 = vector.multi_reduction <add>, %9, %cst_6 [0] : vector<256x256xf32> to vector<256xf32>
    %11 = vector.shape_cast %10 : vector<256xf32> to vector<1x256xf32>
    %cst_7 = arith.constant 2.560000e+02 : f32
    %12 = vector.broadcast %cst_7 : f32 to vector<1x256xf32>
    %13 = arith.divf %11, %12 : vector<1x256xf32>
    %14 = vector.broadcast %13 : vector<1x256xf32> to vector<256x256xf32>
    %15 = arith.subf %9, %14 : vector<256x256xf32>
    %16 = arith.mulf %15, %15 : vector<256x256xf32>
    %cst_8 = arith.constant dense<0.000000e+00> : vector<256xf32>
    %17 = vector.multi_reduction <add>, %16, %cst_8 [0] : vector<256x256xf32> to vector<256xf32>
    %18 = vector.shape_cast %17 : vector<256xf32> to vector<1x256xf32>
    %cst_9 = arith.constant 2.560000e+02 : f32
    %19 = vector.broadcast %cst_9 : f32 to vector<1x256xf32>
    %20 = arith.divf %18, %19 : vector<1x256xf32>
    %cst_10 = arith.constant 9.99999974E-6 : f32
    %21 = vector.broadcast %cst_10 : f32 to vector<1x256xf32>
    %22 = arith.addf %20, %21 : vector<1x256xf32>
    %23 = math.rsqrt %22 : vector<1x256xf32>
    %24 = vector.broadcast %23 : vector<1x256xf32> to vector<256x256xf32>
    %25 = arith.mulf %15, %24 : vector<256x256xf32>
    %c0_11 = arith.constant 0 : index
    %c0_12 = arith.constant 0 : index
    %26 = vector.load %arg4[%c0_11, %c0_12] : memref<256x256xbf16, #tpu.memory_space<vmem>>, vector<256x256xbf16>
    %27 = arith.truncf %25 : vector<256x256xf32> to vector<256x256xbf16>
    %cst_13 = arith.constant dense<0.000000e+00> : vector<256x256xf32>
    %28 = tpu.matmul %26, %27, %cst_13 {dimension_numbers = #tpu.dot_dimension_numbers<[1], [0], [0], [1], [0, 0, 1, 1], [], []>} : vector<256x256xbf16>, vector<256x256xbf16>, vector<256x256xf32> -> vector<256x256xf32>
    %c0_14 = arith.constant 0 : index
    %c0_15 = arith.constant 0 : index
    %29 = vector.load %arg5[%c0_14, %c0_15] : memref<256x1xf32, #tpu.memory_space<vmem>>, vector<256x1xf32>
    %30 = vector.broadcast %29 : vector<256x1xf32> to vector<256x256xf32>
    %31 = arith.addf %28, %30 : vector<256x256xf32>
    %cst_16 = arith.constant 0.00999999977 : f32
    %32 = vector.broadcast %cst_16 : f32 to vector<256x256xf32>
    %33 = arith.mulf %32, %31 : vector<256x256xf32>
    %34 = arith.maximumf %31, %33 : vector<256x256xf32>
    %cst_17 = arith.constant dense<0.000000e+00> : vector<256xf32>
    %35 = vector.multi_reduction <add>, %34, %cst_17 [0] : vector<256x256xf32> to vector<256xf32>
    %36 = vector.shape_cast %35 : vector<256xf32> to vector<1x256xf32>
    %cst_18 = arith.constant 2.560000e+02 : f32
    %37 = vector.broadcast %cst_18 : f32 to vector<1x256xf32>
    %38 = arith.divf %36, %37 : vector<1x256xf32>
    %39 = vector.broadcast %38 : vector<1x256xf32> to vector<256x256xf32>
    %40 = arith.subf %34, %39 : vector<256x256xf32>
    %41 = arith.mulf %40, %40 : vector<256x256xf32>
    %cst_19 = arith.constant dense<0.000000e+00> : vector<256xf32>
    %42 = vector.multi_reduction <add>, %41, %cst_19 [0] : vector<256x256xf32> to vector<256xf32>
    %43 = vector.shape_cast %42 : vector<256xf32> to vector<1x256xf32>
    %cst_20 = arith.constant 2.560000e+02 : f32
    %44 = vector.broadcast %cst_20 : f32 to vector<1x256xf32>
    %45 = arith.divf %43, %44 : vector<1x256xf32>
    %cst_21 = arith.constant 9.99999974E-6 : f32
    %46 = vector.broadcast %cst_21 : f32 to vector<1x256xf32>
    %47 = arith.addf %45, %46 : vector<1x256xf32>
    %48 = math.rsqrt %47 : vector<1x256xf32>
    %49 = vector.broadcast %48 : vector<1x256xf32> to vector<256x256xf32>
    %50 = arith.mulf %40, %49 : vector<256x256xf32>
    %c0_22 = arith.constant 0 : index
    %c0_23 = arith.constant 0 : index
    %51 = vector.load %arg6[%c0_22, %c0_23] : memref<128x256xbf16, #tpu.memory_space<vmem>>, vector<128x256xbf16>
    %52 = arith.truncf %50 : vector<256x256xf32> to vector<256x256xbf16>
    %cst_24 = arith.constant dense<0.000000e+00> : vector<128x256xf32>
    %53 = tpu.matmul %51, %52, %cst_24 {dimension_numbers = #tpu.dot_dimension_numbers<[1], [0], [0], [1], [0, 0, 1, 1], [], []>} : vector<128x256xbf16>, vector<256x256xbf16>, vector<128x256xf32> -> vector<128x256xf32>
    %c0_25 = arith.constant 0 : index
    %c0_26 = arith.constant 0 : index
    %54 = vector.load %arg7[%c0_25, %c0_26] : memref<128x1xf32, #tpu.memory_space<vmem>>, vector<128x1xf32>
    %55 = vector.broadcast %54 : vector<128x1xf32> to vector<128x256xf32>
    %56 = arith.addf %53, %55 : vector<128x256xf32>
    %cst_27 = arith.constant 0.00999999977 : f32
    %57 = vector.broadcast %cst_27 : f32 to vector<128x256xf32>
    %58 = arith.mulf %57, %56 : vector<128x256xf32>
    %59 = arith.maximumf %56, %58 : vector<128x256xf32>
    %cst_28 = arith.constant dense<0.000000e+00> : vector<256xf32>
    %60 = vector.multi_reduction <add>, %59, %cst_28 [0] : vector<128x256xf32> to vector<256xf32>
    %61 = vector.shape_cast %60 : vector<256xf32> to vector<1x256xf32>
    %cst_29 = arith.constant 1.280000e+02 : f32
    %62 = vector.broadcast %cst_29 : f32 to vector<1x256xf32>
    %63 = arith.divf %61, %62 : vector<1x256xf32>
    %64 = vector.broadcast %63 : vector<1x256xf32> to vector<128x256xf32>
    %65 = arith.subf %59, %64 : vector<128x256xf32>
    %66 = arith.mulf %65, %65 : vector<128x256xf32>
    %cst_30 = arith.constant dense<0.000000e+00> : vector<256xf32>
    %67 = vector.multi_reduction <add>, %66, %cst_30 [0] : vector<128x256xf32> to vector<256xf32>
    %68 = vector.shape_cast %67 : vector<256xf32> to vector<1x256xf32>
    %cst_31 = arith.constant 1.280000e+02 : f32
    %69 = vector.broadcast %cst_31 : f32 to vector<1x256xf32>
    %70 = arith.divf %68, %69 : vector<1x256xf32>
    %c0_32 = arith.constant 0 : index
    %c0_33 = arith.constant 0 : index
    %71 = vector.load %arg8[%c0_32, %c0_33] : memref<128x1xf32, #tpu.memory_space<vmem>>, vector<128x1xf32>
    %72 = vector.broadcast %71 : vector<128x1xf32> to vector<128x256xf32>
    %73 = arith.mulf %65, %72 : vector<128x256xf32>
    %cst_34 = arith.constant dense<0.000000e+00> : vector<256xf32>
    %74 = vector.multi_reduction <add>, %73, %cst_34 [0] : vector<128x256xf32> to vector<256xf32>
    %75 = vector.shape_cast %74 : vector<256xf32> to vector<1x256xf32>
    %cst_35 = arith.constant 9.99999974E-6 : f32
    %76 = vector.broadcast %cst_35 : f32 to vector<1x256xf32>
    %77 = arith.addf %70, %76 : vector<1x256xf32>
    %78 = math.rsqrt %77 : vector<1x256xf32>
    %79 = arith.mulf %78, %75 : vector<1x256xf32>
    %c0_36 = arith.constant 0 : index
    %c0_37 = arith.constant 0 : index
    %80 = vector.load %arg9[%c0_36, %c0_37] : memref<1x1xf32, #tpu.memory_space<vmem>>, vector<1x1xf32>
    %81 = vector.broadcast %80 : vector<1x1xf32> to vector<1x256xf32>
    %82 = arith.addf %79, %81 : vector<1x256xf32>
    %c0_38 = arith.constant 0 : index
    %c0_39 = arith.constant 0 : index
    %83 = vector.load %arg10[%c0_38, %c0_39] : memref<1x256xf32, #tpu.memory_space<vmem>>, vector<1x256xf32>
    tpu.vector_store %arg10[%c0_38, %c0_39], %82 {strides = array<i32>} : memref<1x256xf32, #tpu.memory_space<vmem>>, vector<1x256xf32>,
    return
  }
  func.func @transform_0(%arg0: i32) -> (i32, i32) {
    %c0_i32 = arith.constant 0 : i32
    %c0_i32_0 = arith.constant 0 : i32
    return %arg0, %c0_i32 : i32, i32
  }
  func.func @transform_1(%arg0: i32) -> (i32, i32) {
    %c0_i32 = arith.constant 0 : i32
    %c0_i32_0 = arith.constant 0 : i32
    %c0_i32_1 = arith.constant 0 : i32
    return %c0_i32, %c0_i32_0 : i32, i32
  }
  func.func @transform_2(%arg0: i32) -> (i32, i32) {
    %c0_i32 = arith.constant 0 : i32
    %c0_i32_0 = arith.constant 0 : i32
    %c0_i32_1 = arith.constant 0 : i32
    return %c0_i32, %c0_i32_0 : i32, i32
  }
  func.func @transform_3(%arg0: i32) -> (i32, i32) {
    %c0_i32 = arith.constant 0 : i32
    %c0_i32_0 = arith.constant 0 : i32
    %c0_i32_1 = arith.constant 0 : i32
    return %c0_i32, %c0_i32_0 : i32, i32
  }
  func.func @transform_4(%arg0: i32) -> (i32, i32) {
    %c0_i32 = arith.constant 0 : i32
    %c0_i32_0 = arith.constant 0 : i32
    %c0_i32_1 = arith.constant 0 : i32
    return %c0_i32, %c0_i32_0 : i32, i32
  }
  func.func @transform_5(%arg0: i32) -> (i32, i32) {
    %c0_i32 = arith.constant 0 : i32
    %c0_i32_0 = arith.constant 0 : i32
    %c0_i32_1 = arith.constant 0 : i32
    return %c0_i32, %c0_i32_0 : i32, i32
  }
  func.func @transform_6(%arg0: i32) -> (i32, i32) {
    %c0_i32 = arith.constant 0 : i32
    %c0_i32_0 = arith.constant 0 : i32
    %c0_i32_1 = arith.constant 0 : i32
    return %c0_i32, %c0_i32_0 : i32, i32
  }
  func.func @transform_7(%arg0: i32) -> (i32, i32) {
    %c0_i32 = arith.constant 0 : i32
    %c0_i32_0 = arith.constant 0 : i32
    %c0_i32_1 = arith.constant 0 : i32
    return %c0_i32, %c0_i32_0 : i32, i32
  }
  func.func @transform_8(%arg0: i32) -> (i32, i32) {
    %c0_i32 = arith.constant 0 : i32
    %c0_i32_0 = arith.constant 0 : i32
    %c0_i32_1 = arith.constant 0 : i32
    return %c0_i32, %c0_i32_0 : i32, i32
  }
  func.func @transform_9(%arg0: i32) -> (i32, i32) {
    %c0_i32 = arith.constant 0 : i32
    %c0_i32_0 = arith.constant 0 : i32
    return %c0_i32, %arg0 : i32, i32
  }
}

</mosaic_0001>

<bundles_post_ra>
// kernel: tpu_custom_call.1
= control target key start
LH: loop header
LB: loop body
LE: loop exit
PB: predicated region body
PF: predicated region fallthrough
CT: control target
= control target key end

     0   :  { %s5715_s0 = inlined_call_operand.vmem [shape: f32[256,32], index: 0, kind: input, shape index: {}]   ;;  %s5716_s1 = inlined_call_operand.vmem [shape: bf16[256,32], index: 1, kind: input, shape index: {}]   ;;  %s5717_s2 = inlined_call_operand.vmem [shape: f32[256,1], index: 2, kind: input, shape index: {}]   ;;  %s5718_s3 = inlined_call_operand.vmem [shape: bf16[256,256], index: 3, kind: input, shape index: {}]   ;;  %s5719_s4 = inlined_call_operand.vmem [shape: f32[256,1], index: 4, kind: input, shape index: {}]   ;;  %s5720_s5 = inlined_call_operand.vmem [shape: bf16[128,256], index: 5, kind: input, shape index: {}]   ;;  %s5721_s6 = inlined_call_operand.vmem [shape: f32[128,1], index: 6, kind: input, shape index: {}]   ;;  %s5722_s7 = inlined_call_operand.vmem [shape: f32[128,1], index: 7, kind: input, shape index: {}]   ;;  %s5723_s8 = inlined_call_operand.<no memory space> [shape: f32[1,1], index: 8, kind: input, shape index: {}]   ;;  %s5724_s9 = inlined_call_operand.hbm [shape: f32[1,256], index: 9, kind: output, shape index: {}]  }
   0x1   :  { %v14_v0 = vstv %s5723_s8 }
   0x2   :  { %15 = vst [vmem:[#allocation2] sm:$0x1] %v14_v0 }
   0x3   :  { %v52_v1 = vld [vmem:[%s5715_s0 + $0x80] sm:$0xff]  ;;  %v53_v2 = vld [vmem:[%s5715_s0 + $0x88] sm:$0xff]  ;;  %vm388_vm0 = vcmask 261120   ;;  %v54_v6 = vld [vmem:[%s5715_s0 + $0x90] sm:$0xff]  ;;  %v3316_v8 = vmov 0  }
   0x4   :  { %v36_v3 = vld [vmem:[%s5715_s0] sm:$0xff]  ;;  %v76_v4 = vpack.c.bf16 %v53_v2, %v52_v1  ;;  %v37_v5 = vld [vmem:[%s5715_s0 + $0x8] sm:$0xff]  ;;  %v55_v7 = vld [vmem:[%s5715_s0 + $0x98] sm:$0xff]  ;;  %3190 = vset.pattern.permute.xlu0 %v3316_v8  ;;  %3191 = vset.pattern.permute.xlu1 %v3316_v8 }
   0x5   :  { %v68_v9 = vpack.c.bf16 %v37_v5, %v36_v3  ;;  %v77_v10 = vpack.c.bf16 %v55_v7, %v54_v6  ;;  %v116_v11 = vld [vmem:[%s5717_s2] sm:$0xff]  ;;  %v38_v12 = vld [vmem:[%s5715_s0 + $0x10] sm:$0xff]  ;;  %v39_v13 = vld [vmem:[%s5715_s0 + $0x18] sm:$0xff] }
   0x6   :  { %3179 = vmatprep.subr.msk.bf16.mxu0 %vm388_vm0, %v76_v4  ;;  %150 = vperm.xlu0 %3190, %v116_v11   ;;  %v117_v15 = vld [vmem:[%s5717_s2 + $0x8] sm:$0xff]  ;;  %v118_v16 = vld [vmem:[%s5717_s2 + $0x10] sm:$0xff]  ;;  %v69_v17 = vpack.c.bf16 %v39_v13, %v38_v12  ;;  %v119_v18 = vld [vmem:[%s5717_s2 + $0x18] sm:$0xff] }
   0x7   :  { %v438_v14 = vsel %vm388_vm0, %v68_v9, 0  ;;  %160 = vperm.xlu1 %3191, %v118_v16   ;;  %v56_v19 = vld [vmem:[%s5715_s0 + $0xa0] sm:$0xff]  ;;  %v57_v20 = vld [vmem:[%s5715_s0 + $0xa8] sm:$0xff]  ;;  %v122_v27 = vld [vmem:[%s5717_s2 + $0x30] sm:$0xff] }
   0x8   :  { %3100 = vmatpush3.bf16.xpose.msra.mxu0 %v438_v14  ;;  %v120_v21 = vld [vmem:[%s5717_s2 + $0x20] sm:$0xff]  ;;  %v441_v22 = vsel %vm388_vm0, %v69_v17, 0  ;;  %v78_v23 = vpack.c.bf16 %v57_v20, %v56_v19  ;;  %v121_v24 = vld [vmem:[%s5717_s2 + $0x28] sm:$0xff]  ;;  %v123_v29 = vld [vmem:[%s5717_s2 + $0x38] sm:$0xff] }
   0x9   :  { %3180 = vmatprep.subr.msk.bf16.mxu0 %vm388_vm0, %v77_v10  ;;  %v40_v25 = vld [vmem:[%s5715_s0 + $0x20] sm:$0xff]  ;;  %v41_v26 = vld [vmem:[%s5715_s0 + $0x28] sm:$0xff]  ;;  %v58_v30 = vld [vmem:[%s5715_s0 + $0xb0] sm:$0xff] }
   0xa   :  { %155 = vperm.xlu0 %3190, %v117_v15   ;;  %v70_v28 = vpack.c.bf16 %v41_v26, %v40_v25  ;;  %v59_v31 = vld [vmem:[%s5715_s0 + $0xb8] sm:$0xff]  ;;  %v124_v32 = vld [vmem:[%s5717_s2 + $0x40] sm:$0xff]  ;;  %v42_v35 = vld [vmem:[%s5715_s0 + $0x30] sm:$0xff] }
   0xb   :  { %165 = vperm.xlu1 %3191, %v119_v18   ;;  %v79_v34 = vpack.c.bf16 %v59_v31, %v58_v30  ;;  %v125_v36 = vld [vmem:[%s5717_s2 + $0x48] sm:$0xff]  ;;  %v43_v37 = vld [vmem:[%s5715_s0 + $0x38] sm:$0xff]  ;;  %v3459_v38 = vld [vmem:[%s5716_s1] sm:$0xff]  }
   0xc   :  { %v444_v33 = vsel %vm388_vm0, %v70_v28, 0  ;;  %v126_v39 = vld [vmem:[%s5717_s2 + $0x50] sm:$0xff]  ;;  %v71_v40 = vpack.c.bf16 %v43_v37, %v42_v35  ;;  %v60_v41 = vld [vmem:[%s5715_s0 + $0xc0] sm:$0xff]  ;;  %v127_v42 = vld [vmem:[%s5717_s2 + $0x58] sm:$0xff]  ;;  %3115 = vmatprep.mubr.msk.bf16.mxu0 %vm388_vm0, %v3459_v38 }
   0xd   :  { %v61_v43 = vld [vmem:[%s5715_s0 + $0xc8] sm:$0xff]  ;;  %v128_v44 = vld [vmem:[%s5717_s2 + $0x60] sm:$0xff]  ;;  %v130_v50 = vld [vmem:[%s5717_s2 + $0x70] sm:$0xff] }
   0xe   :  { %170 = vperm.xlu0 %3190, %v120_v21   ;;  %v447_v45 = vsel %vm388_vm0, %v71_v40, 0  ;;  %v80_v46 = vpack.c.bf16 %v61_v43, %v60_v41  ;;  %v129_v47 = vld [vmem:[%s5717_s2 + $0x68] sm:$0xff]  ;;  %v44_v48 = vld [vmem:[%s5715_s0 + $0x40] sm:$0xff]  ;;  %v131_v52 = vld [vmem:[%s5717_s2 + $0x78] sm:$0xff] }
   0xf   :  { %175 = vperm.xlu1 %3191, %v121_v24   ;;  %v45_v49 = vld [vmem:[%s5715_s0 + $0x48] sm:$0xff]  ;;  %v62_v53 = vld [vmem:[%s5715_s0 + $0xd0] sm:$0xff]  ;;  %v63_v54 = vld [vmem:[%s5715_s0 + $0xd8] sm:$0xff] }
  0x10   :  { %3102 = vmatpush3.bf16.xpose.msra.mxu0 %v441_v22  ;;  %v72_v51 = vpack.c.bf16 %v45_v49, %v44_v48  ;;  %v132_v55 = vld [vmem:[%s5717_s2 + $0x80] sm:$0xff]  ;;  %v81_v57 = vpack.c.bf16 %v63_v54, %v62_v53  ;;  %v46_v58 = vld [vmem:[%s5715_s0 + $0x50] sm:$0xff]  ;;  %v133_v59 = vld [vmem:[%s5717_s2 + $0x88] sm:$0xff] }
  0x11   :  { %3181 = vmatprep.subr.msk.bf16.mxu0 %vm388_vm0, %v78_v23  ;;  %v47_v60 = vld [vmem:[%s5715_s0 + $0x58] sm:$0xff]  ;;  %v134_v61 = vld [vmem:[%s5717_s2 + $0x90] sm:$0xff]  ;;  %v64_v0 = vld [vmem:[%s5715_s0 + $0xe0] sm:$0xff] }
  0x12   :  { %180 = vperm.xlu0 %3190, %v122_v27   ;;  %v450_v56 = vsel %vm388_vm0, %v72_v51, 0  ;;  %v73_v62 = vpack.c.bf16 %v47_v60, %v46_v58  ;;  %v135_v63 = vld [vmem:[%s5717_s2 + $0x98] sm:$0xff]  ;;  %v65_v1 = vld [vmem:[%s5715_s0 + $0xe8] sm:$0xff]  ;;  %v136_v2 = vld [vmem:[%s5717_s2 + $0xa0] sm:$0xff] }
  0x13   :  { %185 = vperm.xlu1 %3191, %v123_v29   ;;  %v82_v4 = vpack.c.bf16 %v65_v1, %v64_v0  ;;  %v137_v5 = vld [vmem:[%s5717_s2 + $0xa8] sm:$0xff]  ;;  %v48_v6 = vld [vmem:[%s5715_s0 + $0x60] sm:$0xff]  ;;  %v138_v8 = vld [vmem:[%s5717_s2 + $0xb0] sm:$0xff] }
  0x14   :  { %v453_v3 = vsel %vm388_vm0, %v73_v62, 0  ;;  %v49_v7 = vld [vmem:[%s5715_s0 + $0x68] sm:$0xff]  ;;  %v139_v10 = vld [vmem:[%s5717_s2 + $0xb8] sm:$0xff]  ;;  %v66_v11 = vld [vmem:[%s5715_s0 + $0xf0] sm:$0xff] }
  0x15   :  { %v74_v9 = vpack.c.bf16 %v49_v7, %v48_v6  ;;  %v67_v12 = vld [vmem:[%s5715_s0 + $0xf8] sm:$0xff]  ;;  %v140_v13 = vld [vmem:[%s5717_s2 + $0xc0] sm:$0xff]  ;;  %v50_v16 = vld [vmem:[%s5715_s0 + $0x70] sm:$0xff] }
  0x16   :  { %190 = vperm.xlu0 %3190, %v124_v32   ;;  %v83_v15 = vpack.c.bf16 %v67_v12, %v66_v11  ;;  %v141_v17 = vld [vmem:[%s5717_s2 + $0xc8] sm:$0xff]  ;;  %v51_v18 = vld [vmem:[%s5715_s0 + $0x78] sm:$0xff]  ;;  %v142_v19 = vld [vmem:[%s5717_s2 + $0xd0] sm:$0xff] }
  0x17   :  { %195 = vperm.xlu1 %3191, %v125_v36   ;;  %v456_v14 = vsel %vm388_vm0, %v74_v9, 0  ;;  %v75_v20 = vpack.c.bf16 %v51_v18, %v50_v16  ;;  %v144_v21 = vld [vmem:[%s5717_s2 + $0xe0] sm:$0xff]  ;;  %v143_v22 = vld [vmem:[%s5717_s2 + $0xd8] sm:$0xff]  ;;  %v145_v23 = vld [vmem:[%s5717_s2 + $0xe8] sm:$0xff] }
  0x18   :  { %3104 = vmatpush3.bf16.xpose.msra.mxu0 %v444_v33  ;;  %v146_v25 = vld [vmem:[%s5717_s2 + $0xf0] sm:$0xff]  ;;  %v147_v26 = vld [vmem:[%s5717_s2 + $0xf8] sm:$0xff]  ;;  %v3193_v27 = vld [vmem:[%s5716_s1 + $0x8] sm:$0xff]  }
  0x19   :  { %3182 = vmatprep.subr.msk.bf16.mxu0 %vm388_vm0, %v79_v34  ;;  %v459_v24 = vsel %vm388_vm0, %v75_v20, 0  ;;  %v1219_v28 = vld [vmem:[%s5719_s4] sm:$0xff]  ;;  %v1221_v29 = vld [vmem:[%s5719_s4 + $0x10] sm:$0xff]  ;;  %v1220_v30 = vld [vmem:[%s5719_s4 + $0x8] sm:$0xff] }
  0x1a   :  { %200 = vperm.xlu0 %3190, %v126_v39   ;;  %v1223_v31 = vld [vmem:[%s5719_s4 + $0x20] sm:$0xff]  ;;  %v1222_v32 = vld [vmem:[%s5719_s4 + $0x18] sm:$0xff]  ;;  %v3194_v33 = vld [vmem:[%s5716_s1 + $0x10] sm:$0xff]  }
  0x1b   :  { %205 = vperm.xlu1 %3191, %v127_v42   ;;  %v1224_v34 = vld [vmem:[%s5719_s4 + $0x28] sm:$0xff] }
  0x1e   :  { %210 = vperm.xlu0 %3190, %v128_v44  }
  0x1f   :  { %215 = vperm.xlu1 %3191, %v129_v47  }
  0x20   :  { %3106 = vmatpush3.bf16.xpose.msra.mxu0 %v447_v45 }
  0x21   :  { %3183 = vmatprep.subr.msk.bf16.mxu0 %vm388_vm0, %v80_v46 }
  0x22   :  { %220 = vperm.xlu0 %3190, %v130_v50  }
  0x23   :  { %225 = vperm.xlu1 %3191, %v131_v52  }
  0x26   :  { %230 = vperm.xlu0 %3190, %v132_v55  }
  0x27   :  { %235 = vperm.xlu1 %3191, %v133_v59  }
  0x28   :  { %3108 = vmatpush3.bf16.xpose.msra.mxu0 %v450_v56 }
  0x29   :  { %3184 = vmatprep.subr.msk.bf16.mxu0 %vm388_vm0, %v81_v57 }
  0x2a   :  { %240 = vperm.xlu0 %3190, %v134_v61  }
  0x2b   :  { %245 = vperm.xlu1 %3191, %v135_v63  }
  0x2e   :  { %250 = vperm.xlu0 %3190, %v136_v2  }
  0x2f   :  { %255 = vperm.xlu1 %3191, %v137_v5  }
  0x30   :  { %3110 = vmatpush3.bf16.xpose.msra.mxu0 %v453_v3 }
  0x31   :  { %3185 = vmatprep.subr.msk.bf16.mxu0 %vm388_vm0, %v82_v4 }
  0x32   :  { %260 = vperm.xlu0 %3190, %v138_v8  }
  0x33   :  { %265 = vperm.xlu1 %3191, %v139_v10  }
  0x36   :  { %270 = vperm.xlu0 %3190, %v140_v13  }
  0x37   :  { %275 = vperm.xlu1 %3191, %v141_v17  }
  0x38   :  { %3112 = vmatpush3.bf16.xpose.msra.mxu0 %v456_v14 }
  0x39   :  { %3186 = vmatprep.subr.msk.bf16.mxu0 %vm388_vm0, %v83_v15 }
  0x3a   :  { %280 = vperm.xlu0 %3190, %v142_v19  }
  0x3b   :  { %285 = vperm.xlu1 %3191, %v143_v22  }
  0x3e   :  { %290 = vperm.xlu0 %3190, %v144_v21  }
  0x3f   :  { %295 = vperm.xlu1 %3191, %v145_v23  }
  0x40   :  { %3114 = vmatpush3.bf16.xpose.msra.mxu0 %v459_v24 }
  0x42   :  { %300 = vperm.xlu0 %3190, %v146_v25  }
  0x43   :  { %305 = vperm.xlu1 %3191, %v147_v26  }
  0x46   :  { %1253 = vperm.xlu0 %3190, %v1219_v28  }
  0x47   :  { %3116 = vmatmul.mubr.msk.bf16.vlgmr.msra.gmra.mrb[0].mxu0 %vm388_vm0, %v3459_v38  ;;  %1258 = vperm.xlu1 %3191, %v1220_v30  }
  0x48   :  { %3117 = vmatprep.mubr.msk.bf16.mxu0 %vm388_vm0, %v3193_v27 }
  0x4a   :  { %1263 = vperm.xlu0 %3190, %v1221_v29  }
  0x4b   :  { %1268 = vperm.xlu1 %3191, %v1222_v32  }
  0x4e   :  { %1273 = vperm.xlu0 %3190, %v1223_v31  }
  0x4f   :  { %16 = vsyncpa [#allocation4], 0  ;;  %3118 = vmatmul.mubr.msk.bf16.gmra.mrb[4].mxu0 %vm388_vm0, %v3193_v27  ;;  %v1225_v35 = vld [vmem:[%s5719_s4 + $0x30] sm:$0xff]  ;;  %1278 = vperm.xlu1 %3191, %v1224_v34   ;;  %v1226_v36 = vld [vmem:[%s5719_s4 + $0x38] sm:$0xff] }
  0x50   :  { %3119 = vmatprep.mubr.msk.bf16.mxu0 %vm388_vm0, %v3194_v33  ;;  %v1227_v37 = vld [vmem:[%s5719_s4 + $0x40] sm:$0xff]  ;;  %v3195_v38 = vld [vmem:[%s5716_s1 + $0x18] sm:$0xff]   ;;  %v1228_v39 = vld [vmem:[%s5719_s4 + $0x48] sm:$0xff] }
  0x51   :  { %v1229_v40 = vld [vmem:[%s5719_s4 + $0x50] sm:$0xff]  ;;  %v1230_v41 = vld [vmem:[%s5719_s4 + $0x58] sm:$0xff]  ;;  %v1231_v42 = vld [vmem:[%s5719_s4 + $0x60] sm:$0xff] }
  0x52   :  { %1283 = vperm.xlu0 %3190, %v1225_v35   ;;  %v3196_v43 = vld [vmem:[%s5716_s1 + $0x20] sm:$0xff]   ;;  %v1232_v44 = vld [vmem:[%s5719_s4 + $0x68] sm:$0xff]  ;;  %v1233_v45 = vld [vmem:[%s5719_s4 + $0x70] sm:$0xff] }
  0x53   :  { %1288 = vperm.xlu1 %3191, %v1226_v36   ;;  %v1234_v46 = vld [vmem:[%s5719_s4 + $0x78] sm:$0xff]  ;;  %v1235_v47 = vld [vmem:[%s5719_s4 + $0x80] sm:$0xff]  ;;  %v3197_v48 = vld [vmem:[%s5716_s1 + $0x28] sm:$0xff]  }
  0x54   :  { %v1236_v49 = vld [vmem:[%s5719_s4 + $0x88] sm:$0xff]  ;;  %v1237_v50 = vld [vmem:[%s5719_s4 + $0x90] sm:$0xff]  ;;  %v1238_v51 = vld [vmem:[%s5719_s4 + $0x98] sm:$0xff] }
  0x55   :  { %v1239_v52 = vld [vmem:[%s5719_s4 + $0xa0] sm:$0xff]  ;;  %v3198_v53 = vld [vmem:[%s5716_s1 + $0x30] sm:$0xff]   ;;  %v1240_v54 = vld [vmem:[%s5719_s4 + $0xa8] sm:$0xff] }
  0x56   :  { %1293 = vperm.xlu0 %3190, %v1227_v37   ;;  %v1241_v55 = vld [vmem:[%s5719_s4 + $0xb0] sm:$0xff]  ;;  %v1242_v56 = vld [vmem:[%s5719_s4 + $0xb8] sm:$0xff]  ;;  %v1243_v57 = vld [vmem:[%s5719_s4 + $0xc0] sm:$0xff] }
  0x57   :  { %3120 = vmatmul.mubr.msk.bf16.gmra.mrb[8].mxu0 %vm388_vm0, %v3194_v33  ;;  %1298 = vperm.xlu1 %3191, %v1228_v39   ;;  %v3199_v58 = vld [vmem:[%s5716_s1 + $0x38] sm:$0xff]   ;;  %v1244_v59 = vld [vmem:[%s5719_s4 + $0xc8] sm:$0xff]  ;;  %v1245_v60 = vld [vmem:[%s5719_s4 + $0xd0] sm:$0xff] }
  0x58   :  { %3121 = vmatprep.mubr.msk.bf16.mxu0 %vm388_vm0, %v3195_v38  ;;  %v1246_v61 = vld [vmem:[%s5719_s4 + $0xd8] sm:$0xff]  ;;  %v1247_v62 = vld [vmem:[%s5719_s4 + $0xe0] sm:$0xff]  ;;  %v1248_v0 = vld [vmem:[%s5719_s4 + $0xe8] sm:$0xff] }
  0x59   :  { %v3200_v63 = vld [vmem:[%s5716_s1 + $0x40] sm:$0xff]   ;;  %v1249_v1 = vld [vmem:[%s5719_s4 + $0xf0] sm:$0xff]  ;;  %v1250_v2 = vld [vmem:[%s5719_s4 + $0xf8] sm:$0xff] }
  0x5a   :  { %1303 = vperm.xlu0 %3190, %v1229_v40   ;;  %v2288_v3 = vld [vmem:[%s5721_s6] sm:$0xff]  ;;  %v3201_v4 = vld [vmem:[%s5716_s1 + $0x48] sm:$0xff]   ;;  %v2290_v6 = vld [vmem:[%s5721_s6 + $0x10] sm:$0xff] }
  0x5b   :  { %1308 = vperm.xlu1 %3191, %v1230_v41   ;;  %v2289_v5 = vld [vmem:[%s5721_s6 + $0x8] sm:$0xff]  ;;  %v2291_v7 = vld [vmem:[%s5721_s6 + $0x18] sm:$0xff]  ;;  %v2292_v8 = vld [vmem:[%s5721_s6 + $0x20] sm:$0xff] }
  0x5c   :  { %v3202_v9 = vld [vmem:[%s5716_s1 + $0x50] sm:$0xff]   ;;  %v2293_v10 = vld [vmem:[%s5721_s6 + $0x28] sm:$0xff]  ;;  %v2295_v12 = vld [vmem:[%s5721_s6 + $0x38] sm:$0xff] }
  0x5d   :  { %v2294_v11 = vld [vmem:[%s5721_s6 + $0x30] sm:$0xff]  ;;  %v2296_v13 = vld [vmem:[%s5721_s6 + $0x40] sm:$0xff]  ;;  %v3203_v14 = vld [vmem:[%s5716_s1 + $0x58] sm:$0xff]  }
  0x5e   :  { %1313 = vperm.xlu0 %3190, %v1231_v42   ;;  %v2297_v15 = vld [vmem:[%s5721_s6 + $0x48] sm:$0xff]  ;;  %v2298_v16 = vld [vmem:[%s5721_s6 + $0x50] sm:$0xff]  ;;  %v2299_v17 = vld [vmem:[%s5721_s6 + $0x58] sm:$0xff] }
  0x5f   :  { %3122 = vmatmul.mubr.msk.bf16.gmra.mrb[12].mxu0 %vm388_vm0, %v3195_v38  ;;  %1318 = vperm.xlu1 %3191, %v1232_v44   ;;  %v2300_v18 = vld [vmem:[%s5721_s6 + $0x60] sm:$0xff]  ;;  %v2301_v20 = vld [vmem:[%s5721_s6 + $0x68] sm:$0xff]  ;;  %v2302_v21 = vld [vmem:[%s5721_s6 + $0x70] sm:$0xff] }
  0x60   :  { %3123 = vmatprep.mubr.msk.bf16.mxu0 %vm388_vm0, %v3196_v43  ;;  %v3204_v19 = vld [vmem:[%s5716_s1 + $0x60] sm:$0xff]   ;;  %v2303_v22 = vld [vmem:[%s5721_s6 + $0x78] sm:$0xff]  ;;  %v3205_v24 = vld [vmem:[%s5716_s1 + $0x68] sm:$0xff]  }
  0x61   :  { %v2794_v23 = vld [vmem:[%s5722_s7] sm:$0xff]  ;;  %v2795_v25 = vld [vmem:[%s5722_s7 + $0x8] sm:$0xff]  ;;  %v2796_v26 = vld [vmem:[%s5722_s7 + $0x10] sm:$0xff] }
  0x62   :  { %1323 = vperm.xlu0 %3190, %v1233_v45   ;;  %v2797_v27 = vld [vmem:[%s5722_s7 + $0x18] sm:$0xff]  ;;  %v2798_v28 = vld [vmem:[%s5722_s7 + $0x20] sm:$0xff]  ;;  %v3206_v29 = vld [vmem:[%s5716_s1 + $0x70] sm:$0xff]  }
  0x63   :  { %1328 = vperm.xlu1 %3191, %v1234_v46   ;;  %v2799_v30 = vld [vmem:[%s5722_s7 + $0x28] sm:$0xff]  ;;  %v2800_v31 = vld [vmem:[%s5722_s7 + $0x30] sm:$0xff]  ;;  %v2801_v32 = vld [vmem:[%s5722_s7 + $0x38] sm:$0xff] }
  0x64   :  { %v2802_v33 = vld [vmem:[%s5722_s7 + $0x40] sm:$0xff]  ;;  %v3207_v34 = vld [vmem:[%s5716_s1 + $0x78] sm:$0xff]   ;;  %v2803_v35 = vld [vmem:[%s5722_s7 + $0x48] sm:$0xff] }
  0x65   :  { %v2804_v36 = vld [vmem:[%s5722_s7 + $0x50] sm:$0xff]  ;;  %v2805_v37 = vld [vmem:[%s5722_s7 + $0x58] sm:$0xff]  ;;  %v2806_v38 = vld [vmem:[%s5722_s7 + $0x60] sm:$0xff] }
  0x66   :  { %1333 = vperm.xlu0 %3190, %v1235_v47   ;;  %v2807_v39 = vld [vmem:[%s5722_s7 + $0x68] sm:$0xff]  ;;  %v2808_v40 = vld [vmem:[%s5722_s7 + $0x70] sm:$0xff]  ;;  %v2809_v41 = vld [vmem:[%s5722_s7 + $0x78] sm:$0xff] }
  0x67   :  { %3124 = vmatmul.mubr.msk.bf16.gmra.mrb[16].mxu0 %vm388_vm0, %v3196_v43  ;;  %1338 = vperm.xlu1 %3191, %v1236_v49   ;;  %v2970_v42 = vld [vmem:[#allocation2] sm:$0x1] }
  0x68   :  { %3125 = vmatprep.mubr.msk.bf16.mxu0 %vm388_vm0, %v3197_v48 }
  0x6a   :  { %1343 = vperm.xlu0 %3190, %v1237_v50  }
  0x6b   :  { %1348 = vperm.xlu1 %3191, %v1238_v51  }
  0x6e   :  { %1353 = vperm.xlu0 %3190, %v1239_v52  }
  0x6f   :  { %3126 = vmatmul.mubr.msk.bf16.gmra.mrb[20].mxu0 %vm388_vm0, %v3197_v48  ;;  %1358 = vperm.xlu1 %3191, %v1240_v54  }
  0x70   :  { %3127 = vmatprep.mubr.msk.bf16.mxu0 %vm388_vm0, %v3198_v53 }
  0x72   :  { %1363 = vperm.xlu0 %3190, %v1241_v55  }
  0x73   :  { %1368 = vperm.xlu1 %3191, %v1242_v56  }
  0x76   :  { %1373 = vperm.xlu0 %3190, %v1243_v57  }
  0x77   :  { %3128 = vmatmul.mubr.msk.bf16.gmra.mrb[24].mxu0 %vm388_vm0, %v3198_v53  ;;  %1378 = vperm.xlu1 %3191, %v1244_v59  }
  0x78   :  { %3129 = vmatprep.mubr.msk.bf16.mxu0 %vm388_vm0, %v3199_v58 }
  0x7a   :  { %1383 = vperm.xlu0 %3190, %v1245_v60  }
  0x7b   :  { %1388 = vperm.xlu1 %3191, %v1246_v61  }
  0x7e   :  { %1393 = vperm.xlu0 %3190, %v1247_v62  }
  0x7f   :  { %3130 = vmatmul.mubr.msk.bf16.gmra.mrb[28].mxu0 %vm388_vm0, %v3199_v58  ;;  %1398 = vperm.xlu1 %3191, %v1248_v0  }
  0x80   :  { %3131 = vmatprep.mubr.msk.bf16.mxu0 %vm388_vm0, %v3200_v63 }
  0x82   :  { %1403 = vperm.xlu0 %3190, %v1249_v1  }
  0x83   :  { %1408 = vperm.xlu1 %3191, %v1250_v2  }
  0x85   :  { %v151_v51 = vpop.permute.xlu0 %150 }
  0x86   :  { %2306 = vperm.xlu0 %3190, %v2288_v3   ;;  %v161_v53 = vpop.permute.xlu1 %160 }
  0x87   :  { %3132 = vmatmul.mubr.msk.bf16.gmra.mrb[32].mxu0 %vm388_vm0, %v3200_v63  ;;  %2311 = vperm.xlu1 %3191, %v2289_v5  }
  0x88   :  { %3133 = vmatprep.mubr.msk.bf16.mxu0 %vm388_vm0, %v3201_v4 }
  0x89   :  { %v156_v55 = vpop.permute.xlu0 %155 }
  0x8a   :  { %2316 = vperm.xlu0 %3190, %v2290_v6   ;;  %v166_v62 = vpop.permute.xlu1 %165 }
  0x8b   :  { %2321 = vperm.xlu1 %3191, %v2291_v7  }
  0x8d   :  { %v171_v5 = vpop.permute.xlu0 %170 }
  0x8e   :  { %2326 = vperm.xlu0 %3190, %v2292_v8  }
  0x8f   :  { %3134 = vmatmul.mubr.msk.bf16.gmra.mrb[36].mxu0 %vm388_vm0, %v3201_v4  ;;  %2331 = vperm.xlu1 %3191, %v2293_v10  }
  0x90   :  { %3135 = vmatprep.mubr.msk.bf16.mxu0 %vm388_vm0, %v3202_v9 }
  0x92   :  { %2336 = vperm.xlu0 %3190, %v2294_v11  }
  0x93   :  { %2341 = vperm.xlu1 %3191, %v2295_v12  }
  0x96   :  { %2346 = vperm.xlu0 %3190, %v2296_v13  }
  0x97   :  { %3136 = vmatmul.mubr.msk.bf16.gmra.mrb[40].mxu0 %vm388_vm0, %v3202_v9  ;;  %2351 = vperm.xlu1 %3191, %v2297_v15  }
  0x98   :  { %3137 = vmatprep.mubr.msk.bf16.mxu0 %vm388_vm0, %v3203_v14 }
  0x9a   :  { %2356 = vperm.xlu0 %3190, %v2298_v16   ;;  %v176_v16 = vpop.permute.xlu1 %175 }
  0x9b   :  { %2361 = vperm.xlu1 %3191, %v2299_v17  }
  0x9e   :  { %2366 = vperm.xlu0 %3190, %v2300_v18  }
  0x9f   :  { %3138 = vmatmul.mubr.msk.bf16.gmra.mrb[44].mxu0 %vm388_vm0, %v3203_v14  ;;  %2371 = vperm.xlu1 %3191, %v2301_v20  }
  0xa0   :  { %3139 = vmatprep.mubr.msk.bf16.mxu0 %vm388_vm0, %v3204_v19 }
  0xa2   :  { %2376 = vperm.xlu0 %3190, %v2302_v21  }
  0xa3   :  { %2381 = vperm.xlu1 %3191, %v2303_v22  }
  0xa6   :  { %2812 = vperm.xlu0 %3190, %v2794_v23   ;;  %v181_v23 = vpop.permute.xlu0 %180 }
  0xa7   :  { %3140 = vmatmul.mubr.msk.bf16.gmra.mrb[48].mxu0 %vm388_vm0, %v3204_v19  ;;  %2817 = vperm.xlu1 %3191, %v2795_v25  }
  0xa8   :  { %3141 = vmatprep.mubr.msk.bf16.mxu0 %vm388_vm0, %v3205_v24 }
  0xaa   :  { %2822 = vperm.xlu0 %3190, %v2796_v26  }
  0xab   :  { %2827 = vperm.xlu1 %3191, %v2797_v27  }
  0xae   :  { %2832 = vperm.xlu0 %3190, %v2798_v28  }
  0xaf   :  { %3142 = vmatmul.mubr.msk.bf16.gmra.mrb[52].mxu0 %vm388_vm0, %v3205_v24  ;;  %2837 = vperm.xlu1 %3191, %v2799_v30  }
  0xb0   :  { %3143 = vmatprep.mubr.msk.bf16.mxu0 %vm388_vm0, %v3206_v29 }
  0xb2   :  { %2842 = vperm.xlu0 %3190, %v2800_v31  }
  0xb3   :  { %2847 = vperm.xlu1 %3191, %v2801_v32  }
  0xb6   :  { %2852 = vperm.xlu0 %3190, %v2802_v33  }
  0xb7   :  { %3144 = vmatmul.mubr.msk.bf16.gmra.mrb[56].mxu0 %vm388_vm0, %v3206_v29  ;;  %2857 = vperm.xlu1 %3191, %v2803_v35  }
  0xb8   :  { %3145 = vmatprep.mubr.msk.bf16.mxu0 %vm388_vm0, %v3207_v34 }
  0xba   :  { %2862 = vperm.xlu0 %3190, %v2804_v36  }
  0xbb   :  { %2867 = vperm.xlu1 %3191, %v2805_v37  }
  0xbe   :  { %2872 = vperm.xlu0 %3190, %v2806_v38   ;;  %v186_v38 = vpop.permute.xlu1 %185 }
  0xbf   :  { %3146 = vmatmul.mubr.msk.bf16.gmra.mrb[60].mxu0 %vm388_vm0, %v3207_v34  ;;  %2877 = vperm.xlu1 %3191, %v2807_v39  }
  0xc2   :  { %2882 = vperm.xlu0 %3190, %v2808_v40  }
  0xc3   :  { %2887 = vperm.xlu1 %3191, %v2809_v41  }
  0xc6   :  { %2973 = vperm.xlu0 %3190, %v2970_v42  }
 0x11a   :  { %v519_v43 = vpop.f32.mrb[0].mxu0 }
 0x11b   :  { %v521_v44 = vpop.f32.mrb[1].mxu0  ;;  %v520_v59 = vadd.f32 %v519_v43, %v151_v51 }
 0x11c   :  { %v523_v45 = vpop.f32.mrb[2].mxu0  ;;  %v522_v6 = vadd.f32 %v521_v44, %v151_v51 }
 0x11d   :  { %v525_v46 = vpop.f32.mrb[3].mxu0  ;;  %v524_v57 = vadd.f32 %v523_v45, %v156_v55  ;;  %v678_v1 = vmul.f32 0.01, %v520_v59  ;;  %v191_v45 = vpop.permute.xlu0 %190 }
 0x11e   :  { %v526_v63 = vadd.f32 %v525_v46, %v156_v55  ;;  %v679_v17 = vmul.f32 0.01, %v522_v6 }
 0x11f   :  { %v680_v61 = vmul.f32 0.01, %v524_v57  ;;  %v3858_v13 = vmax.f32 %v520_v59, %v678_v1 }
 0x120   :  { %v681_v12 = vmul.f32 0.01, %v526_v63  ;;  %v3869_v31 = vmax.f32 %v522_v6, %v679_v17 }
 0x121   :  { %v3856_v9 = vmax.f32 %v524_v57, %v680_v61 }
 0x122   :  { %v529_v47 = vpop.f32.mrb[4].mxu0  ;;  %v3864_v24 = vmax.f32 %v526_v63, %v681_v12 }
 0x123   :  { %v531_v48 = vpop.f32.mrb[5].mxu0  ;;  %v530_v60 = vadd.f32 %v529_v47, %v161_v53  ;;  %v806_v20 = vadd.f32 %v3856_v9, %v3858_v13 }
 0x124   :  { %v533_v49 = vpop.f32.mrb[6].mxu0  ;;  %v532_v7 = vadd.f32 %v531_v48, %v161_v53  ;;  %v843_v39 = vadd.f32 %v3864_v24, %v3869_v31 }
 0x125   :  { %v535_v50 = vpop.f32.mrb[7].mxu0  ;;  %v682_v2 = vmul.f32 0.01, %v530_v60  ;;  %v534_v3 = vadd.f32 %v533_v49, %v166_v62 }
 0x126   :  { %v683_v18 = vmul.f32 0.01, %v532_v7  ;;  %v536_v19 = vadd.f32 %v535_v50, %v166_v62 }
 0x127   :  { %v3860_v14 = vmax.f32 %v530_v60, %v682_v2  ;;  %v684_v15 = vmul.f32 0.01, %v534_v3 }
 0x128   :  { %v3871_v32 = vmax.f32 %v532_v7, %v683_v18  ;;  %v685_v33 = vmul.f32 0.01, %v536_v19 }
 0x129   :  { %v807_v27 = vadd.f32 %v806_v20, %v3860_v14  ;;  %v3867_v28 = vmax.f32 %v534_v3, %v684_v15  ;;  %v201_v3 = vpop.permute.xlu0 %200 }
 0x12a   :  { %v539_v52 = vpop.f32.mrb[8].mxu0  ;;  %v844_v46 = vadd.f32 %v843_v39, %v3871_v32  ;;  %v3879_v47 = vmax.f32 %v536_v19, %v685_v33 }
 0x12b   :  { %v541_v54 = vpop.f32.mrb[9].mxu0  ;;  %v540_v10 = vadd.f32 %v539_v52, %v171_v5  ;;  %v808_v42 = vadd.f32 %v807_v27, %v3867_v28 }
 0x12c   :  { %v543_v56 = vpop.f32.mrb[10].mxu0  ;;  %v542_v25 = vadd.f32 %v541_v54, %v171_v5  ;;  %v845_v59 = vadd.f32 %v844_v46, %v3879_v47 }
 0x12d   :  { %v545_v58 = vpop.f32.mrb[11].mxu0  ;;  %v686_v21 = vmul.f32 0.01, %v540_v10  ;;  %v544_v22 = vadd.f32 %v543_v56, %v176_v16  ;;  %v211_v27 = vpop.permute.xlu0 %210 }
 0x12e   :  { %v687_v40 = vmul.f32 0.01, %v542_v25  ;;  %v546_v41 = vadd.f32 %v545_v58, %v176_v16  ;;  %v196_v58 = vpop.permute.xlu1 %195 }
 0x12f   :  { %v3873_v35 = vmax.f32 %v540_v10, %v686_v21  ;;  %v688_v36 = vmul.f32 0.01, %v544_v22 }
 0x130   :  { %v3884_v52 = vmax.f32 %v542_v25, %v687_v40  ;;  %v689_v53 = vmul.f32 0.01, %v546_v41 }
 0x131   :  { %v809_v49 = vadd.f32 %v808_v42, %v3873_v35  ;;  %v3882_v50 = vmax.f32 %v544_v22, %v688_v36 }
 0x132   :  { %v549_v0 = vpop.f32.mrb[12].mxu0  ;;  %v3891_v5 = vmax.f32 %v546_v41, %v689_v53  ;;  %v206_v17 = vpop.permute.xlu1 %205 }
 0x133   :  { %v551_v4 = vpop.f32.mrb[13].mxu0  ;;  %v550_v29 = vadd.f32 %v549_v0, %v181_v23  ;;  %v810_v63 = vadd.f32 %v809_v49, %v3882_v50 }
 0x134   :  { %v553_v8 = vpop.f32.mrb[14].mxu0  ;;  %v552_v48 = vadd.f32 %v551_v4, %v181_v23  ;;  %v846_v4 = vadd.f32 %v845_v59, %v3884_v52  ;;  %5818 = vst [vmem:[#allocation6_spill] sm:$0xff] %v3891_v5 }
 0x135   :  { %v555_v11 = vpop.f32.mrb[15].mxu0  ;;  %v690_v43 = vmul.f32 0.01, %v550_v29  ;;  %v554_v44 = vadd.f32 %v553_v8, %v186_v38 }
 0x136   :  { %v691_v60 = vmul.f32 0.01, %v552_v48  ;;  %v556_v61 = vadd.f32 %v555_v11, %v186_v38  ;;  %v847_v18 = vadd.f32 %v846_v4, %v3891_v5 }
 0x137   :  { %v3886_v55 = vmax.f32 %v550_v29, %v690_v43  ;;  %v692_v56 = vmul.f32 0.01, %v554_v44 }
 0x138   :  { %v3896_v12 = vmax.f32 %v552_v48, %v691_v60  ;;  %v693_v11 = vmul.f32 0.01, %v556_v61 }
 0x139   :  { %v811_v7 = vadd.f32 %v810_v63, %v3886_v55  ;;  %v3894_v8 = vmax.f32 %v554_v44, %v692_v56  ;;  %v216_v44 = vpop.permute.xlu1 %215 }
 0x13a   :  { %v559_v26 = vpop.f32.mrb[16].mxu0  ;;  %5819 = vst [vmem:[#allocation7_spill] sm:$0xff] %v3896_v12  ;;  %v848_v29 = vadd.f32 %v847_v18, %v3896_v12 }
 0x13b   :  { %v561_v30 = vpop.f32.mrb[17].mxu0  ;;  %v560_v51 = vadd.f32 %v559_v26, %v191_v45  ;;  %v812_v22 = vadd.f32 %v811_v7, %v3894_v8 }
 0x13c   :  { %v563_v34 = vpop.f32.mrb[18].mxu0  ;;  %v562_v6 = vadd.f32 %v561_v30, %v191_v45  ;;  %v3903_v30 = vmax.f32 %v556_v61, %v693_v11 }
 0x13d   :  { %v565_v37 = vpop.f32.mrb[19].mxu0  ;;  %v694_v0 = vmul.f32 0.01, %v560_v51  ;;  %v564_v1 = vadd.f32 %v563_v34, %v196_v58  ;;  %v226_v7 = vpop.permute.xlu1 %225 }
 0x13e   :  { %v695_v19 = vmul.f32 0.01, %v562_v6  ;;  %v566_v20 = vadd.f32 %v565_v37, %v196_v58  ;;  %5820 = vst [vmem:[#allocation8_spill] sm:$0xff] %v3903_v30  ;;  %v849_v45 = vadd.f32 %v848_v29, %v3903_v30 }
 0x13f   :  { %v3898_v15 = vmax.f32 %v560_v51, %v694_v0  ;;  %v696_v16 = vmul.f32 0.01, %v564_v1 }
 0x140   :  { %v3908_v37 = vmax.f32 %v562_v6, %v695_v19  ;;  %v697_v41 = vmul.f32 0.01, %v566_v20 }
 0x141   :  { %v813_v36 = vadd.f32 %v812_v22, %v3898_v15  ;;  %v3906_v38 = vmax.f32 %v564_v1, %v696_v16 }
 0x142   :  { %v569_v54 = vpop.f32.mrb[20].mxu0  ;;  %5821 = vst [vmem:[#allocation9_spill] sm:$0xff] %v3908_v37  ;;  %v850_v56 = vadd.f32 %v849_v45, %v3908_v37 }
 0x143   :  { %v571_v57 = vpop.f32.mrb[21].mxu0  ;;  %v570_v10 = vadd.f32 %v569_v54, %v201_v3  ;;  %v814_v49 = vadd.f32 %v813_v36, %v3906_v38  ;;  %v221_v54 = vpop.permute.xlu0 %220 }
 0x144   :  { %v573_v62 = vpop.f32.mrb[22].mxu0  ;;  %v572_v33 = vadd.f32 %v571_v57, %v201_v3  ;;  %v3915_v57 = vmax.f32 %v566_v20, %v697_v41  ;;  %v236_v41 = vpop.permute.xlu1 %235 }
 0x145   :  { %v575_v2 = vpop.f32.mrb[23].mxu0  ;;  %v698_v23 = vmul.f32 0.01, %v570_v10  ;;  %v574_v25 = vadd.f32 %v573_v62, %v206_v17 }
 0x146   :  { %v699_v46 = vmul.f32 0.01, %v572_v33  ;;  %v576_v48 = vadd.f32 %v575_v2, %v206_v17  ;;  %5822 = vst [vmem:[#allocation10_spill] sm:$0xff] %v3915_v57 }
 0x147   :  { %v3910_v42 = vmax.f32 %v570_v10, %v698_v23  ;;  %v700_v43 = vmul.f32 0.01, %v574_v25  ;;  %v851_v10 = vadd.f32 %v850_v56, %v3915_v57 }
 0x148   :  { %v3920_v0 = vmax.f32 %v572_v33, %v699_v46  ;;  %v701_v1 = vmul.f32 0.01, %v576_v48 }
 0x149   :  { %v815_v60 = vadd.f32 %v814_v49, %v3910_v42  ;;  %v3918_v61 = vmax.f32 %v574_v25, %v700_v43 }
 0x14a   :  { %v579_v21 = vpop.f32.mrb[24].mxu0  ;;  %5823 = vst [vmem:[#allocation11_spill] sm:$0xff] %v3920_v0  ;;  %v852_v20 = vadd.f32 %v851_v10, %v3920_v0 }
 0x14b   :  { %v581_v26 = vpop.f32.mrb[25].mxu0  ;;  %v580_v39 = vadd.f32 %v579_v21, %v211_v27  ;;  %v816_v17 = vadd.f32 %v815_v60, %v3918_v61  ;;  %v3927_v21 = vmax.f32 %v576_v48, %v701_v1 }
 0x14c   :  { %v583_v34 = vpop.f32.mrb[26].mxu0  ;;  %v582_v58 = vadd.f32 %v581_v26, %v211_v27  ;;  %v231_v26 = vpop.permute.xlu0 %230 }
 0x14d   :  { %v585_v40 = vpop.f32.mrb[27].mxu0  ;;  %v702_v51 = vmul.f32 0.01, %v580_v39  ;;  %v584_v53 = vadd.f32 %v583_v34, %v216_v44  ;;  %5824 = vst [vmem:[#allocation12_spill] sm:$0xff] %v3927_v21  ;;  %v853_v43 = vadd.f32 %v852_v20, %v3927_v21  ;;  %v246_v20 = vpop.permute.xlu1 %245 }
 0x14e   :  { %v703_v11 = vmul.f32 0.01, %v582_v58  ;;  %v586_v16 = vadd.f32 %v585_v40, %v216_v44 }
 0x14f   :  { %v3922_v3 = vmax.f32 %v580_v39, %v702_v51  ;;  %v704_v4 = vmul.f32 0.01, %v584_v53 }
 0x150   :  { %v3932_v27 = vmax.f32 %v582_v58, %v703_v11  ;;  %v705_v29 = vmul.f32 0.01, %v586_v16 }
 0x151   :  { %v817_v23 = vadd.f32 %v816_v17, %v3922_v3  ;;  %v3930_v25 = vmax.f32 %v584_v53, %v704_v4  ;;  %v241_v4 = vpop.permute.xlu0 %240 }
 0x152   :  { %v589_v59 = vpop.f32.mrb[28].mxu0  ;;  %5825 = vst [vmem:[#allocation13_spill] sm:$0xff] %v3932_v27  ;;  %v3939_v56 = vmax.f32 %v586_v16, %v705_v29 }
 0x153   :  { %v590_v62 = vadd.f32 %v589_v59, %v221_v54  ;;  %v591_v63 = vpop.f32.mrb[29].mxu0  ;;  %v818_v48 = vadd.f32 %v817_v23, %v3930_v25 }
 0x154   :  { %v593_v2 = vpop.f32.mrb[30].mxu0  ;;  %v592_v22 = vadd.f32 %v591_v63, %v221_v54  ;;  %v854_v54 = vadd.f32 %v853_v43, %v3932_v27  ;;  %5827 = vst [vmem:[#allocation15_spill] sm:$0xff] %v3939_v56 }
 0x155   :  { %v595_v6 = vpop.f32.mrb[31].mxu0  ;;  %v706_v18 = vmul.f32 0.01, %v590_v62  ;;  %v594_v19 = vadd.f32 %v593_v2, %v226_v7 }
 0x156   :  { %v707_v44 = vmul.f32 0.01, %v592_v22  ;;  %v596_v45 = vadd.f32 %v595_v6, %v226_v7  ;;  %v855_v6 = vadd.f32 %v854_v54, %v3939_v56  ;;  %v251_v54 = vpop.permute.xlu0 %250 }
 0x157   :  { %v3934_v34 = vmax.f32 %v590_v62, %v706_v18  ;;  %v708_v36 = vmul.f32 0.01, %v594_v19 }
 0x158   :  { %v3944_v62 = vmax.f32 %v592_v22, %v707_v44  ;;  %v709_v63 = vmul.f32 0.01, %v596_v45 }
 0x159   :  { %5826 = vst [vmem:[#allocation14_spill] sm:$0xff] %v3934_v34  ;;  %v819_v59 = vadd.f32 %v818_v48, %v3934_v34  ;;  %v3942_v60 = vmax.f32 %v594_v19, %v708_v36 }
 0x15a   :  { %v599_v33 = vpop.f32.mrb[32].mxu0  ;;  %5829 = vst [vmem:[#allocation17_spill] sm:$0xff] %v3944_v62  ;;  %v856_v19 = vadd.f32 %v855_v6, %v3944_v62  ;;  %v3951_v23 = vmax.f32 %v596_v45, %v709_v63 }
 0x15b   :  { %v600_v39 = vadd.f32 %v599_v33, %v231_v26  ;;  %v601_v40 = vpop.f32.mrb[33].mxu0  ;;  %5828 = vst [vmem:[#allocation16_spill] sm:$0xff] %v3942_v60  ;;  %v820_v16 = vadd.f32 %v819_v59, %v3942_v60 }
 0x15c   :  { %v603_v46 = vpop.f32.mrb[34].mxu0  ;;  %v602_v58 = vadd.f32 %v601_v40, %v231_v26  ;;  %5831 = vst [vmem:[#allocation19_spill] sm:$0xff] %v3951_v23  ;;  %v857_v48 = vadd.f32 %v856_v19, %v3951_v23 }
 0x15d   :  { %v710_v49 = vmul.f32 0.01, %v600_v39  ;;  %v604_v51 = vadd.f32 %v603_v46, %v236_v41  ;;  %v605_v53 = vpop.f32.mrb[35].mxu0 }
 0x15e   :  { %v711_v7 = vmul.f32 0.01, %v602_v58  ;;  %v606_v10 = vadd.f32 %v605_v53, %v236_v41 }
 0x15f   :  { %v3946_v1 = vmax.f32 %v600_v39, %v710_v49  ;;  %v712_v2 = vmul.f32 0.01, %v604_v51 }
 0x160   :  { %v3956_v41 = vmax.f32 %v602_v58, %v711_v7  ;;  %v713_v43 = vmul.f32 0.01, %v606_v10  ;;  %v256_v7 = vpop.permute.xlu1 %255 }
 0x161   :  { %5830 = vst [vmem:[#allocation18_spill] sm:$0xff] %v3946_v1  ;;  %v821_v29 = vadd.f32 %v820_v16, %v3946_v1  ;;  %v3954_v33 = vmax.f32 %v604_v51, %v712_v2 }
 0x162   :  { %v609_v11 = vpop.f32.mrb[36].mxu0  ;;  %5833 = vst [vmem:[#allocation21_spill] sm:$0xff] %v3956_v41  ;;  %v858_v59 = vadd.f32 %v857_v48, %v3956_v41  ;;  %v3963_v51 = vmax.f32 %v606_v10, %v713_v43 }
 0x163   :  { %v610_v17 = vadd.f32 %v609_v11, %v241_v4  ;;  %v611_v18 = vpop.f32.mrb[37].mxu0  ;;  %5832 = vst [vmem:[#allocation20_spill] sm:$0xff] %v3954_v33  ;;  %v822_v53 = vadd.f32 %v821_v29, %v3954_v33 }
 0x164   :  { %v612_v22 = vadd.f32 %v611_v18, %v241_v4  ;;  %v613_v26 = vpop.f32.mrb[38].mxu0  ;;  %5835 = vst [vmem:[#allocation23_spill] sm:$0xff] %v3963_v51  ;;  %v859_v29 = vadd.f32 %v858_v59, %v3963_v51 }
 0x165   :  { %v714_v36 = vmul.f32 0.01, %v610_v17  ;;  %v614_v39 = vadd.f32 %v613_v26, %v246_v20  ;;  %v615_v40 = vpop.f32.mrb[39].mxu0 }
 0x166   :  { %v715_v49 = vmul.f32 0.01, %v612_v22  ;;  %v616_v45 = vadd.f32 %v615_v40, %v246_v20 }
 0x167   :  { %v3958_v44 = vmax.f32 %v610_v17, %v714_v36  ;;  %v716_v46 = vmul.f32 0.01, %v614_v39 }
 0x168   :  { %v3968_v11 = vmax.f32 %v612_v22, %v715_v49  ;;  %v717_v16 = vmul.f32 0.01, %v616_v45 }
 0x169   :  { %5834 = vst [vmem:[#allocation22_spill] sm:$0xff] %v3958_v44  ;;  %v823_v2 = vadd.f32 %v822_v53, %v3958_v44  ;;  %v3966_v58 = vmax.f32 %v614_v39, %v716_v46  ;;  %v261_v53 = vpop.permute.xlu0 %260 }
 0x16a   :  { %v619_v63 = vpop.f32.mrb[40].mxu0  ;;  %5837 = vst [vmem:[#allocation25_spill] sm:$0xff] %v3968_v11  ;;  %v860_v46 = vadd.f32 %v859_v29, %v3968_v11  ;;  %v3975_v48 = vmax.f32 %v616_v45, %v717_v16 }
 0x16b   :  { %5836 = vst [vmem:[#allocation24_spill] sm:$0xff] %v3966_v58  ;;  %v620_v4 = vadd.f32 %v619_v63, %v251_v54  ;;  %v621_v6 = vpop.f32.mrb[41].mxu0  ;;  %v824_v40 = vadd.f32 %v823_v2, %v3966_v58 }
 0x16c   :  { %v622_v17 = vadd.f32 %v621_v6, %v251_v54  ;;  %v623_v18 = vpop.f32.mrb[42].mxu0  ;;  %5838 = vst [vmem:[#allocation26_spill] sm:$0xff] %v3975_v48 }
 0x16d   :  { %v718_v20 = vmul.f32 0.01, %v620_v4  ;;  %v624_v19 = vadd.f32 %v623_v18, %v256_v7  ;;  %v625_v26 = vpop.f32.mrb[43].mxu0  ;;  %v861_v18 = vadd.f32 %v860_v46, %v3975_v48 }
 0x16e   :  { %v719_v10 = vmul.f32 0.01, %v622_v17  ;;  %v626_v36 = vadd.f32 %v625_v26, %v256_v7 }
 0x16f   :  { %v3972_v43 = vmax.f32 %v620_v4, %v718_v20  ;;  %v720_v39 = vmul.f32 0.01, %v624_v19  ;;  %v266_v4 = vpop.permute.xlu1 %265 }
 0x170   :  { %v3980_v54 = vmax.f32 %v622_v17, %v719_v10  ;;  %v721_v63 = vmul.f32 0.01, %v626_v36 }
 0x171   :  { %v825_v22 = vadd.f32 %v824_v40, %v3972_v43  ;;  %v3978_v49 = vmax.f32 %v624_v19, %v720_v39 }
 0x172   :  { %5839 = vst [vmem:[#allocation27_spill] sm:$0xff] %v3980_v54  ;;  %v629_v59 = vpop.f32.mrb[44].mxu0  ;;  %v862_v19 = vadd.f32 %v861_v18, %v3980_v54  ;;  %v3985_v40 = vmax.f32 %v626_v36, %v721_v63 }
 0x173   :  { %v826_v6 = vadd.f32 %v825_v22, %v3978_v49  ;;  %v630_v7 = vadd.f32 %v629_v59, %v261_v53  ;;  %v631_v2 = vpop.f32.mrb[45].mxu0  ;;  %v276_v54 = vpop.permute.xlu1 %275 }
 0x174   :  { %v632_v20 = vadd.f32 %v631_v2, %v261_v53  ;;  %v633_v26 = vpop.f32.mrb[46].mxu0  ;;  %5840 = vst [vmem:[#allocation28_spill] sm:$0xff] %v3985_v40  ;;  %v271_v53 = vpop.permute.xlu0 %270  ;;  %v863_v2 = vadd.f32 %v862_v19, %v3985_v40 }
 0x175   :  { %v722_v45 = vmul.f32 0.01, %v630_v7  ;;  %v634_v16 = vadd.f32 %v633_v26, %v266_v4  ;;  %v635_v29 = vpop.f32.mrb[47].mxu0 }
 0x176   :  { %v723_v17 = vmul.f32 0.01, %v632_v20  ;;  %v636_v10 = vadd.f32 %v635_v29, %v266_v4 }
 0x177   :  { %v3987_v39 = vmax.f32 %v630_v7, %v722_v45  ;;  %v724_v11 = vmul.f32 0.01, %v634_v16 }
 0x178   :  { %v3989_v22 = vmax.f32 %v632_v20, %v723_v17  ;;  %v725_v59 = vmul.f32 0.01, %v636_v10 }
 0x179   :  { %v827_v51 = vadd.f32 %v826_v6, %v3987_v39  ;;  %v3992_v46 = vmax.f32 %v634_v16, %v724_v11 }
 0x17a   :  { %5841 = vst [vmem:[#allocation29_spill] sm:$0xff] %v3989_v22  ;;  %v639_v26 = vpop.f32.mrb[48].mxu0  ;;  %v864_v7 = vadd.f32 %v863_v2, %v3989_v22  ;;  %v3997_v4 = vmax.f32 %v636_v10, %v725_v59  ;;  %v281_v10 = vpop.permute.xlu0 %280 }
 0x17b   :  { %v828_v18 = vadd.f32 %v827_v51, %v3992_v46  ;;  %v640_v36 = vadd.f32 %v639_v26, %v271_v53  ;;  %v641_v63 = vpop.f32.mrb[49].mxu0 }
 0x17c   :  { %5842 = vst [vmem:[#allocation30_spill] sm:$0xff] %v3997_v4  ;;  %v642_v20 = vadd.f32 %v641_v63, %v271_v53  ;;  %v643_v45 = vpop.f32.mrb[50].mxu0  ;;  %v865_v40 = vadd.f32 %v864_v7, %v3997_v4 }
 0x17d   :  { %v726_v29 = vmul.f32 0.01, %v640_v36  ;;  %v644_v17 = vadd.f32 %v643_v45, %v276_v54  ;;  %v645_v6 = vpop.f32.mrb[51].mxu0 }
 0x17e   :  { %v727_v11 = vmul.f32 0.01, %v642_v20  ;;  %v646_v16 = vadd.f32 %v645_v6, %v276_v54  ;;  %v291_v23 = vpop.permute.xlu0 %290 }
 0x17f   :  { %v3999_v48 = vmax.f32 %v640_v36, %v726_v29  ;;  %v728_v19 = vmul.f32 0.01, %v644_v17  ;;  %v286_v29 = vpop.permute.xlu1 %285 }
 0x180   :  { %v4002_v51 = vmax.f32 %v642_v20, %v727_v11  ;;  %v729_v26 = vmul.f32 0.01, %v646_v16 }
 0x181   :  { %v829_v41 = vadd.f32 %v828_v18, %v3999_v48  ;;  %v4005_v2 = vmax.f32 %v644_v17, %v728_v19 }
 0x182   :  { %v866_v59 = vadd.f32 %v865_v40, %v4002_v51  ;;  %v4008_v53 = vmax.f32 %v646_v16, %v729_v26  ;;  %v649_v63 = vpop.f32.mrb[52].mxu0 }
 0x183   :  { %v830_v54 = vadd.f32 %v829_v41, %v4005_v2  ;;  %v650_v36 = vadd.f32 %v649_v63, %v281_v10  ;;  %v651_v45 = vpop.f32.mrb[53].mxu0 }
 0x184   :  { %v867_v7 = vadd.f32 %v866_v59, %v4008_v53  ;;  %v652_v20 = vadd.f32 %v651_v45, %v281_v10  ;;  %v653_v6 = vpop.f32.mrb[54].mxu0 }
 0x185   :  { %v730_v11 = vmul.f32 0.01, %v650_v36  ;;  %v654_v4 = vadd.f32 %v653_v6, %v286_v29  ;;  %v655_v18 = vpop.f32.mrb[55].mxu0 }
 0x186   :  { %v731_v17 = vmul.f32 0.01, %v652_v20  ;;  %v656_v19 = vadd.f32 %v655_v18, %v286_v29 }
 0x187   :  { %v4012_v22 = vmax.f32 %v650_v36, %v730_v11  ;;  %v732_v40 = vmul.f32 0.01, %v654_v4  ;;  %v296_v36 = vpop.permute.xlu1 %295 }
 0x188   :  { %v4014_v16 = vmax.f32 %v652_v20, %v731_v17  ;;  %v733_v26 = vmul.f32 0.01, %v656_v19 }
 0x189   :  { %v831_v41 = vadd.f32 %v830_v54, %v4012_v22  ;;  %v4017_v63 = vmax.f32 %v654_v4, %v732_v40 }
 0x18a   :  { %v868_v59 = vadd.f32 %v867_v7, %v4014_v16  ;;  %v4020_v10 = vmax.f32 %v656_v19, %v733_v26  ;;  %v659_v45 = vpop.f32.mrb[56].mxu0 }
 0x18b   :  { %v832_v6 = vadd.f32 %v831_v41, %v4017_v63  ;;  %v660_v62 = vadd.f32 %v659_v45, %v291_v23  ;;  %v661_v29 = vpop.f32.mrb[57].mxu0  ;;  %v301_v41 = vpop.permute.xlu0 %300 }
 0x18c   :  { %v869_v11 = vadd.f32 %v868_v59, %v4020_v10  ;;  %v662_v20 = vadd.f32 %v661_v29, %v291_v23  ;;  %v663_v18 = vpop.f32.mrb[58].mxu0 }
 0x18d   :  { %v734_v17 = vmul.f32 0.01, %v660_v62  ;;  %v664_v56 = vadd.f32 %v663_v18, %v296_v36  ;;  %v665_v54 = vpop.f32.mrb[59].mxu0  ;;  %v306_v18 = vpop.permute.xlu1 %305 }
 0x18e   :  { %v735_v4 = vmul.f32 0.01, %v662_v20  ;;  %v666_v40 = vadd.f32 %v665_v54, %v296_v36 }
 0x18f   :  { %v798_v27 = vmax.f32 %v660_v62, %v734_v17  ;;  %v736_v21 = vmul.f32 0.01, %v664_v56 }
 0x190   :  { %v4024_v7 = vmax.f32 %v662_v20, %v735_v4  ;;  %v737_v19 = vmul.f32 0.01, %v666_v40 }
 0x191   :  { %v833_v26 = vadd.f32 %v832_v6, %v798_v27  ;;  %v800_v0 = vmax.f32 %v664_v56, %v736_v21 }
 0x192   :  { %v870_v45 = vadd.f32 %v869_v11, %v4024_v7  ;;  %v4027_v58 = vmax.f32 %v666_v40, %v737_v19  ;;  %v669_v59 = vpop.f32.mrb[60].mxu0 }
 0x193   :  { %v834_v23 = vadd.f32 %v833_v26, %v800_v0  ;;  %v670_v29 = vadd.f32 %v669_v59, %v301_v41  ;;  %v671_v57 = vpop.f32.mrb[61].mxu0 }
 0x194   :  { %v871_v44 = vadd.f32 %v870_v45, %v4027_v58  ;;  %v672_v36 = vadd.f32 %v671_v57, %v301_v41  ;;  %v673_v62 = vpop.f32.mrb[62].mxu0 }
 0x195   :  { %v738_v17 = vmul.f32 0.01, %v670_v29  ;;  %v674_v20 = vadd.f32 %v673_v62, %v306_v18  ;;  %v675_v54 = vpop.f32.mrb[63].mxu0 }
 0x196   :  { %v739_v4 = vmul.f32 0.01, %v672_v36  ;;  %v676_v6 = vadd.f32 %v675_v54, %v306_v18 }
 0x197   :  { %v802_v21 = vmax.f32 %v670_v29, %v738_v17  ;;  %v740_v56 = vmul.f32 0.01, %v674_v20 }
 0x198   :  { %v803_v37 = vmax.f32 %v672_v36, %v739_v4  ;;  %v741_v11 = vmul.f32 0.01, %v676_v6 }
 0x199   :  { %v835_v40 = vadd.f32 %v834_v23, %v802_v21  ;;  %v804_v19 = vmax.f32 %v674_v20, %v740_v56 }
 0x19a   :  { %v872_v33 = vadd.f32 %v871_v44, %v803_v37  ;;  %v805_v26 = vmax.f32 %v676_v6, %v741_v11 }
 0x19b   :  { %v836_v59 = vadd.f32 %v835_v40, %v804_v19 }
 0x19c   :  { %v873_v30 = vadd.f32 %v872_v33, %v805_v26 }
 0x19d   :  { %v837_v1 = vrot.slane %v836_v59, 4 }
 0x19e   :  { %v874_v45 = vrot.slane %v873_v30, 4 }
 0x19f   :  { %v838_v12 = vadd.f32 %v837_v1, %v836_v59 }
 0x1a0   :  { %v875_v60 = vadd.f32 %v874_v45, %v873_v30 }
 0x1a1   :  { %v839_v57 = vrot.slane %v838_v12, 2 }
 0x1a2   :  { %v876_v5 = vrot.slane %v875_v60, 2 }
 0x1a3   :  { %v840_v41 = vadd.f32 %v839_v57, %v838_v12 }
 0x1a4   :  { %v877_v18 = vadd.f32 %v876_v5, %v875_v60 }
 0x1a5   :  { %v841_v62 = vrot.slane %v840_v41, 1 }
 0x1a6   :  { %v878_v36 = vrot.slane %v877_v18, 1 }
 0x1a7   :  { %v842_v34 = vadd.f32 %v841_v62, %v840_v41 }
 0x1a9   :  { %v4030_v29 = vmul.f32 0.00390625, %v842_v34 }
 0x1ab   :  { %v4034_v23 = vsub.f32 %v3972_v43, %v4030_v29  ;;  %v4038_v33 = vsub.f32 %v3978_v49, %v4030_v29  ;;  %v4042_v1 = vsub.f32 %v3987_v39, %v4030_v29  ;;  %v4046_v12 = vsub.f32 %v3992_v46, %v4030_v29 }
 0x1ac   :  { %v4050_v5 = vsub.f32 %v3999_v48, %v4030_v29  ;;  %v4054_v30 = vsub.f32 %v4005_v2, %v4030_v29  ;;  %v4058_v34 = vsub.f32 %v4012_v22, %v4030_v29  ;;  %v4062_v60 = vsub.f32 %v4017_v63, %v4030_v29 }
 0x1ad   :  { %5843 = vst [vmem:[#allocation31_spill] sm:$0xff] %v4034_v23  ;;  %5844 = vst [vmem:[#allocation32_spill] sm:$0xff] %v4038_v33  ;;  %v4065_v44 = vsub.f32 %v798_v27, %v4030_v29  ;;  %v4068_v43 = vsub.f32 %v800_v0, %v4030_v29  ;;  %v4071_v48 = vsub.f32 %v802_v21, %v4030_v29 }
 0x1ae   :  { %5845 = vst [vmem:[#allocation33_spill] sm:$0xff] %v4042_v1  ;;  %5846 = vst [vmem:[#allocation34_spill] sm:$0xff] %v4046_v12  ;;  %v4074_v49 = vsub.f32 %v804_v19, %v4030_v29  ;;  %v4078_v39 = vsub.f32 %v3858_v13, %v4030_v29  ;;  %v4082_v22 = vsub.f32 %v3856_v9, %v4030_v29 }
 0x1af   :  { %5847 = vst [vmem:[#allocation35_spill] sm:$0xff] %v4050_v5  ;;  %5848 = vst [vmem:[#allocation36_spill] sm:$0xff] %v4054_v30  ;;  %v879_v46 = vadd.f32 %v878_v36, %v877_v18  ;;  %v4086_v27 = vsub.f32 %v3860_v14, %v4030_v29  ;;  %v4096_v13 = vsub.f32 %v3867_v28, %v4030_v29 }
 0x1b0   :  { %5849 = vst [vmem:[#allocation37_spill] sm:$0xff] %v4058_v34  ;;  %5850 = vst [vmem:[#allocation38_spill] sm:$0xff] %v4062_v60  ;;  %v947_v0 = vmul.f32 %v4078_v39, %v4078_v39  ;;  %v949_v2 = vmul.f32 %v4082_v22, %v4082_v22  ;;  %v4100_v9 = vsub.f32 %v3873_v35, %v4030_v29 }
 0x1b1   :  { %5851 = vst [vmem:[#allocation39_spill] sm:$0xff] %v4065_v44  ;;  %5852 = vst [vmem:[#allocation40_spill] sm:$0xff] %v4068_v43  ;;  %v4092_v63 = vmul.f32 0.00390625, %v879_v46  ;;  %v951_v14 = vmul.f32 %v4086_v27, %v4086_v27  ;;  %v4109_v54 = vsub.f32 %v3882_v50, %v4030_v29  ;;  %v4113_v4 = vsub.f32 %v3886_v55, %v4030_v29 }
 0x1b2   :  { %5853 = vst [vmem:[#allocation41_spill] sm:$0xff] %v4071_v48  ;;  %5854 = vst [vmem:[#allocation42_spill] sm:$0xff] %v4074_v49  ;;  %v1011_v17 = vadd.f32 %v949_v2, %v947_v0  ;;  %v953_v28 = vmul.f32 %v4096_v13, %v4096_v13  ;;  %v955_v6 = vmul.f32 %v4100_v9, %v4100_v9 }
 0x1b3   :  { %v4105_v20 = vsub.f32 %v805_v26, %v4092_v63  ;;  %v4121_v56 = vsub.f32 %v3894_v8, %v4030_v29  ;;  %v4125_v50 = vsub.f32 %v3898_v15, %v4030_v29  ;;  %v957_v55 = vmul.f32 %v4109_v54, %v4109_v54 }
 0x1b4   :  { %v1012_v35 = vadd.f32 %v1011_v17, %v951_v14  ;;  %v959_v11 = vmul.f32 %v4113_v4, %v4113_v4  ;;  %v4133_v19 = vsub.f32 %v4002_v51, %v4092_v63  ;;  %v4137_v26 = vsub.f32 %v4008_v53, %v4092_v63 }
 0x1b5   :  { %v4141_v8 = vsub.f32 %v4014_v16, %v4092_v63  ;;  %v4145_v15 = vsub.f32 %v4020_v10, %v4092_v63  ;;  %v4149_v45 = vsub.f32 %v4024_v7, %v4092_v63  ;;  %v4153_v51 = vsub.f32 %v4027_v58, %v4092_v63 }
 0x1b6   :  { %v1013_v21 = vadd.f32 %v1012_v35, %v953_v28  ;;  %v4156_v53 = vsub.f32 %v803_v37, %v4092_v63  ;;  %v4160_v16 = vsub.f32 %v3906_v38, %v4030_v29  ;;  %v961_v10 = vmul.f32 %v4121_v56, %v4121_v56 }
 0x1b7   :  { %5855 = vst [vmem:[#allocation43_spill] sm:$0xff] %v4145_v15  ;;  %5856 = vst [vmem:[#allocation44_spill] sm:$0xff] %v4149_v45  ;;  %v4166_v41 = vsub.f32 %v3869_v31, %v4092_v63  ;;  %v4170_v7 = vsub.f32 %v3864_v24, %v4092_v63  ;;  %v4174_v37 = vsub.f32 %v3910_v42, %v4030_v29 }
 0x1b8   :  { %v1014_v40 = vadd.f32 %v1013_v21, %v955_v6  ;;  %5857 = vst [vmem:[#allocation45_spill] sm:$0xff] %v4153_v51  ;;  %v963_v38 = vmul.f32 %v4125_v50, %v4125_v50  ;;  %v4180_v62 = vsub.f32 %v3918_v61, %v4030_v29  ;;  %v965_v31 = vmul.f32 %v4160_v16, %v4160_v16  ;;  %v5858_v6 = vld [vmem:[#allocation14_spill] sm:$0xff] }
 0x1b9   :  { %v4186_v24 = vsub.f32 %v3871_v32, %v4092_v63  ;;  %v948_v42 = vmul.f32 %v4166_v41, %v4166_v41  ;;  %v950_v36 = vmul.f32 %v4170_v7, %v4170_v7  ;;  %v4194_v46 = vsub.f32 %v3922_v3, %v4030_v29 }
 0x1ba   :  { %v1015_v59 = vadd.f32 %v1014_v40, %v957_v55  ;;  %v967_v61 = vmul.f32 %v4174_v37, %v4174_v37  ;;  %v4200_v2 = vsub.f32 %v3879_v47, %v4092_v63  ;;  %v4204_v32 = vsub.f32 %v3930_v25, %v4030_v29  ;;  %v5860_v55 = vld [vmem:[#allocation6_spill] sm:$0xff] }
 0x1bb   :  { %v969_v14 = vmul.f32 %v4180_v62, %v4180_v62  ;;  %v4210_v3 = vsub.f32 %v3884_v52, %v4092_v63  ;;  %v952_v28 = vmul.f32 %v4186_v24, %v4186_v24  ;;  %v1048_v35 = vadd.f32 %v950_v36, %v948_v42  ;;  %v5864_v36 = vld [vmem:[#allocation18_spill] sm:$0xff] }
 0x1bc   :  { %v1016_v57 = vadd.f32 %v1015_v59, %v959_v11  ;;  %v4216_v47 = vsub.f32 %v5858_v6, %v4030_v29  ;;  %v971_v25 = vmul.f32 %v4194_v46, %v4194_v46  ;;  %v4222_v11 = vsub.f32 %v5860_v55, %v4092_v63  ;;  %v5861_v59 = vld [vmem:[#allocation16_spill] sm:$0xff] }
 0x1bd   :  { %v954_v52 = vmul.f32 %v4200_v2, %v4200_v2  ;;  %v1049_v40 = vadd.f32 %v1048_v35, %v952_v28 }
 0x1be   :  { %v1017_v58 = vadd.f32 %v1016_v57, %v961_v10  ;;  %5859 = vst [vmem:[#allocation14_spill] sm:$0xff] %v4216_v47  ;;  %v4228_v10 = vsub.f32 %v5861_v59, %v4030_v29  ;;  %v973_v57 = vmul.f32 %v4204_v32, %v4204_v32  ;;  %v958_v35 = vmul.f32 %v4222_v11, %v4222_v11 }
 0x1bf   :  { %v1050_v42 = vadd.f32 %v1049_v40, %v954_v52  ;;  %v5869_v40 = vld [vmem:[#allocation9_spill] sm:$0xff] }
 0x1c0   :  { %v1018_v18 = vadd.f32 %v1017_v58, %v963_v38  ;;  %5862 = vst [vmem:[#allocation6_spill] sm:$0xff] %v4228_v10  ;;  %v5863_v58 = vld [vmem:[#allocation7_spill] sm:$0xff]  ;;  %v977_v55 = vmul.f32 %v4228_v10, %v4228_v10  ;;  %v4258_v59 = vsub.f32 %v5869_v40, %v4092_v63  ;;  %v5873_v40 = vld [vmem:[#allocation24_spill] sm:$0xff] }
 0x1c1   :  { %v4276_v10 = vsub.f32 %v5873_v40, %v4030_v29 }
 0x1c2   :  { %v1019_v0 = vadd.f32 %v1018_v18, %v965_v31  ;;  %v4234_v31 = vsub.f32 %v5863_v58, %v4092_v63  ;;  %v956_v18 = vmul.f32 %v4210_v3, %v4210_v3  ;;  %v5870_v58 = vld [vmem:[#allocation22_spill] sm:$0xff] }
 0x1c4   :  { %v1020_v17 = vadd.f32 %v1019_v0, %v967_v61  ;;  %v4240_v61 = vsub.f32 %v5864_v36, %v4030_v29  ;;  %v975_v0 = vmul.f32 %v4216_v47, %v4216_v47  ;;  %v1051_v6 = vadd.f32 %v1050_v42, %v956_v18 }
 0x1c5   :  { %v4264_v36 = vsub.f32 %v5870_v58, %v4030_v29  ;;  %v5875_v58 = vld [vmem:[#allocation11_spill] sm:$0xff] }
 0x1c6   :  { %v1021_v21 = vadd.f32 %v1020_v17, %v969_v14  ;;  %5865 = vst [vmem:[#allocation16_spill] sm:$0xff] %v4240_v61  ;;  %v5866_v17 = vld [vmem:[#allocation8_spill] sm:$0xff]  ;;  %v979_v18 = vmul.f32 %v4240_v61, %v4240_v61  ;;  %v4282_v61 = vsub.f32 %v5875_v58, %v4092_v63 }
 0x1c7   :  { %v4246_v28 = vsub.f32 %v5866_v17, %v4092_v63  ;;  %5871 = vst [vmem:[#allocation18_spill] sm:$0xff] %v4264_v36  ;;  %v5872_v17 = vld [vmem:[#allocation10_spill] sm:$0xff]  ;;  %5874 = vst [vmem:[#allocation8_spill] sm:$0xff] %v4276_v10 }
 0x1c8   :  { %v1022_v38 = vadd.f32 %v1021_v21, %v971_v25  ;;  %v5867_v25 = vld [vmem:[#allocation20_spill] sm:$0xff] }
 0x1c9   :  { %v4252_v21 = vsub.f32 %v5867_v25, %v4030_v29  ;;  %v4270_v25 = vsub.f32 %v5872_v17, %v4092_v63  ;;  %v983_v17 = vmul.f32 %v4264_v36, %v4264_v36 }
 0x1ca   :  { %v1023_v14 = vadd.f32 %v1022_v38, %v973_v57  ;;  %v960_v57 = vmul.f32 %v4234_v31, %v4234_v31  ;;  %v1052_v38 = vadd.f32 %v1051_v6, %v958_v35 }
 0x1cb   :  { %5868 = vst [vmem:[#allocation7_spill] sm:$0xff] %v4252_v21  ;;  %v981_v35 = vmul.f32 %v4252_v21, %v4252_v21  ;;  %v966_v40 = vmul.f32 %v4270_v25, %v4270_v25  ;;  %v5877_v21 = vld [vmem:[#allocation13_spill] sm:$0xff] }
 0x1cc   :  { %v1024_v52 = vadd.f32 %v1023_v14, %v975_v0  ;;  %v962_v0 = vmul.f32 %v4246_v28, %v4246_v28  ;;  %v1053_v14 = vadd.f32 %v1052_v38, %v960_v57  ;;  %v5876_v38 = vld [vmem:[#allocation12_spill] sm:$0xff]  ;;  %v4298_v47 = vsub.f32 %v5877_v21, %v4092_v63 }
 0x1cd   :  { %v4290_v29 = vsub.f32 %v5876_v38, %v4092_v63  ;;  %v5878_v38 = vld [vmem:[#allocation15_spill] sm:$0xff]  ;;  %v989_v21 = vmul.f32 %v4038_v33, %v4038_v33 }
 0x1ce   :  { %v1025_v42 = vadd.f32 %v1024_v52, %v977_v55  ;;  %v964_v55 = vmul.f32 %v4258_v59, %v4258_v59  ;;  %v1054_v52 = vadd.f32 %v1053_v14, %v962_v0  ;;  %v968_v0 = vmul.f32 %v4282_v61, %v4282_v61 }
 0x1cf   :  { %v4306_v36 = vsub.f32 %v5878_v38, %v4092_v63  ;;  %v5880_v38 = vld [vmem:[#allocation19_spill] sm:$0xff] }
 0x1d0   :  { %v1026_v6 = vadd.f32 %v1025_v42, %v979_v18  ;;  %v1055_v18 = vadd.f32 %v1054_v52, %v964_v55  ;;  %v985_v42 = vmul.f32 %v4276_v10, %v4276_v10  ;;  %v970_v55 = vmul.f32 %v4290_v29, %v4290_v29 }
 0x1d2   :  { %v1027_v57 = vadd.f32 %v1026_v6, %v981_v35  ;;  %v1056_v14 = vadd.f32 %v1055_v18, %v966_v40  ;;  %v987_v35 = vmul.f32 %v4034_v23, %v4034_v23  ;;  %v972_v40 = vmul.f32 %v4298_v47, %v4298_v47 }
 0x1d3   :  { %v4322_v23 = vsub.f32 %v5880_v38, %v4092_v63  ;;  %v5882_v38 = vld [vmem:[#allocation23_spill] sm:$0xff] }
 0x1d4   :  { %v1028_v58 = vadd.f32 %v1027_v57, %v983_v17  ;;  %v1057_v52 = vadd.f32 %v1056_v14, %v968_v0  ;;  %v5879_v57 = vld [vmem:[#allocation17_spill] sm:$0xff]  ;;  %v974_v0 = vmul.f32 %v4306_v36, %v4306_v36 }
 0x1d5   :  { %v4314_v10 = vsub.f32 %v5879_v57, %v4092_v63  ;;  %v5881_v57 = vld [vmem:[#allocation21_spill] sm:$0xff] }
 0x1d6   :  { %v1029_v6 = vadd.f32 %v1028_v58, %v985_v42  ;;  %v1058_v18 = vadd.f32 %v1057_v52, %v970_v55  ;;  %v991_v42 = vmul.f32 %v4042_v1, %v4042_v1  ;;  %v4330_v33 = vsub.f32 %v5881_v57, %v4092_v63 }
 0x1d7   :  { %v976_v55 = vmul.f32 %v4314_v10, %v4314_v10  ;;  %v4338_v1 = vsub.f32 %v5882_v38, %v4092_v63  ;;  %v5884_v38 = vld [vmem:[#allocation26_spill] sm:$0xff] }
 0x1d8   :  { %v1030_v17 = vadd.f32 %v1029_v6, %v987_v35  ;;  %v1059_v14 = vadd.f32 %v1058_v18, %v972_v40  ;;  %v993_v35 = vmul.f32 %v4046_v12, %v4046_v12  ;;  %v978_v40 = vmul.f32 %v4322_v23, %v4322_v23  ;;  %v5885_v12 = vld [vmem:[#allocation27_spill] sm:$0xff] }
 0x1da   :  { %v1031_v58 = vadd.f32 %v1030_v17, %v989_v21  ;;  %v1060_v52 = vadd.f32 %v1059_v14, %v974_v0  ;;  %v995_v21 = vmul.f32 %v4050_v5, %v4050_v5  ;;  %v5883_v14 = vld [vmem:[#allocation25_spill] sm:$0xff]  ;;  %v4357_v5 = vsub.f32 %v5884_v38, %v4092_v63  ;;  %v5886_v38 = vld [vmem:[#allocation28_spill] sm:$0xff] }
 0x1db   :  { %v4349_v57 = vsub.f32 %v5883_v14, %v4092_v63  ;;  %v1001_v14 = vmul.f32 %v4062_v60, %v4062_v60 }
 0x1dc   :  { %v1032_v6 = vadd.f32 %v1031_v58, %v991_v42  ;;  %v1061_v18 = vadd.f32 %v1060_v52, %v976_v55  ;;  %v3210_v42 = vld [vmem:[%s5718_s3 + $0x4] ss:$8 sps:$4 sm:$0xff]   ;;  %v997_v58 = vmul.f32 %v4054_v30, %v4054_v30  ;;  %v999_v55 = vmul.f32 %v4058_v34, %v4058_v34 }
 0x1dd   :  { %1603 = vmatprep.mubr.bf16.mxu1 %v3210_v42  ;;  %v4373_v34 = vsub.f32 %v5886_v38, %v4092_v63  ;;  %v5888_v38 = vld [vmem:[#allocation30_spill] sm:$0xff] }
 0x1de   :  { %v1033_v17 = vadd.f32 %v1032_v6, %v993_v35  ;;  %v980_v35 = vmul.f32 %v4330_v33, %v4330_v33  ;;  %v1062_v6 = vadd.f32 %v1061_v18, %v978_v40  ;;  %v4365_v40 = vsub.f32 %v5885_v12, %v4092_v63 }
 0x1df   :  { %v984_v18 = vmul.f32 %v4349_v57, %v4349_v57  ;;  %v1005_v12 = vmul.f32 %v4068_v43, %v4068_v43 }
 0x1e0   :  { %v1034_v0 = vadd.f32 %v1033_v17, %v995_v21  ;;  %v982_v21 = vmul.f32 %v4338_v1, %v4338_v1  ;;  %v1063_v17 = vadd.f32 %v1062_v6, %v980_v35  ;;  %v986_v35 = vmul.f32 %v4357_v5, %v4357_v5 }
 0x1e2   :  { %v1035_v52 = vadd.f32 %v1034_v0, %v997_v58  ;;  %v1064_v42 = vadd.f32 %v1063_v17, %v982_v21  ;;  %v1003_v58 = vmul.f32 %v4065_v44, %v4065_v44  ;;  %v988_v21 = vmul.f32 %v4365_v40, %v4365_v40 }
 0x1e3   :  { %v1007_v17 = vmul.f32 %v4071_v48, %v4071_v48  ;;  %v4389_v44 = vsub.f32 %v5888_v38, %v4092_v63 }
 0x1e4   :  { %v1036_v30 = vadd.f32 %v1035_v52, %v999_v55  ;;  %v1065_v6 = vadd.f32 %v1064_v42, %v984_v18  ;;  %v5887_v52 = vld [vmem:[#allocation29_spill] sm:$0xff]  ;;  %v990_v18 = vmul.f32 %v4373_v34, %v4373_v34 }
 0x1e5   :  { %v4381_v60 = vsub.f32 %v5887_v52, %v4092_v63  ;;  %v996_v63 = vmul.f32 %v4133_v19, %v4133_v19 }
 0x1e6   :  { %v1037_v0 = vadd.f32 %v1036_v30, %v1001_v14  ;;  %v1066_v30 = vadd.f32 %v1065_v6, %v986_v35 }
 0x1e7   :  { %v992_v52 = vmul.f32 %v4381_v60, %v4381_v60 }
 0x1e8   :  { %v1038_v55 = vadd.f32 %v1037_v0, %v1003_v58  ;;  %v1067_v42 = vadd.f32 %v1066_v30, %v988_v21  ;;  %v1009_v58 = vmul.f32 %v4074_v49, %v4074_v49  ;;  %v998_v21 = vmul.f32 %v4137_v26, %v4137_v26 }
 0x1ea   :  { %v1039_v14 = vadd.f32 %v1038_v55, %v1005_v12  ;;  %v1068_v35 = vadd.f32 %v1067_v42, %v990_v18  ;;  %v994_v12 = vmul.f32 %v4389_v44, %v4389_v44  ;;  %v1002_v18 = vmul.f32 %v4145_v15, %v4145_v15 }
 0x1ec   :  { %v1040_v0 = vadd.f32 %v1039_v14, %v1007_v17  ;;  %v1069_v55 = vadd.f32 %v1068_v35, %v992_v52  ;;  %v1000_v17 = vmul.f32 %v4141_v8, %v4141_v8  ;;  %v1006_v35 = vmul.f32 %v4153_v51, %v4153_v51 }
 0x1ee   :  { %v1041_v6 = vadd.f32 %v1040_v0, %v1009_v58  ;;  %v1070_v38 = vadd.f32 %v1069_v55, %v994_v12  ;;  %v1004_v0 = vmul.f32 %v4149_v45, %v4149_v45 }
 0x1f0   :  { %v1042_v48 = vrot.slane %v1041_v6, 4  ;;  %v1071_v30 = vadd.f32 %v1070_v38, %v996_v63  ;;  %v1010_v63 = vmul.f32 %v4105_v20, %v4105_v20 }
 0x1f2   :  { %v1043_v49 = vadd.f32 %v1042_v48, %v1041_v6  ;;  %v1072_v14 = vadd.f32 %v1071_v30, %v998_v21  ;;  %v1008_v48 = vmul.f32 %v4156_v53, %v4156_v53 }
 0x1f4   :  { %v1073_v42 = vadd.f32 %v1072_v14, %v1000_v17  ;;  %v1044_v58 = vrot.slane %v1043_v49, 2 }
 0x1f6   :  { %v1074_v52 = vadd.f32 %v1073_v42, %v1002_v18  ;;  %v1045_v55 = vadd.f32 %v1044_v58, %v1043_v49 }
 0x1f8   :  { %v1075_v12 = vadd.f32 %v1074_v52, %v1004_v0  ;;  %v1046_v21 = vrot.slane %v1045_v55, 1 }
 0x1fa   :  { %v1076_v6 = vadd.f32 %v1075_v12, %v1006_v35  ;;  %v1047_v14 = vadd.f32 %v1046_v21, %v1045_v55 }
 0x1fc   :  { %v1077_v38 = vadd.f32 %v1076_v6, %v1008_v48  ;;  %v1085_v18 = vmul.f32 0.00390625, %v1047_v14 }
 0x1fe   :  { %v1078_v30 = vadd.f32 %v1077_v38, %v1010_v63  ;;  %v1087_v51 = vadd.f32 1e-05, %v1085_v18 }
 0x200   :  { %v1079_v17 = vrot.slane %v1078_v30, 4  ;;  %3280 = vrsqrt.f32 %v1087_v51 }
 0x202   :  { %v1080_v43 = vadd.f32 %v1079_v17, %v1078_v30 }
 0x204   :  { %v1081_v45 = vrot.slane %v1080_v43, 2 }
 0x206   :  { %v1082_v42 = vadd.f32 %v1081_v45, %v1080_v43 }
 0x208   :  { %v1083_v15 = vrot.slane %v1082_v42, 1 }
 0x20a   :  { %v1084_v0 = vadd.f32 %v1083_v15, %v1082_v42  ;;  %v4415_v52 = vpop.eup %3280 }
 0x20b   :  { %v1091_v12 = vmul.f32 %v4415_v52, %v4078_v39  ;;  %v1093_v55 = vmul.f32 %v4415_v52, %v4082_v22  ;;  %v1095_v39 = vmul.f32 %v4415_v52, %v4086_v27  ;;  %v1097_v22 = vmul.f32 %v4415_v52, %v4096_v13 }
 0x20c   :  { %v1086_v49 = vmul.f32 0.00390625, %v1084_v0  ;;  %v1101_v27 = vmul.f32 %v4415_v52, %v4109_v54  ;;  %v1105_v30 = vmul.f32 %v4415_v52, %v4121_v56  ;;  %v1109_v14 = vmul.f32 %v4415_v52, %v4160_v16 }
 0x20d   :  { %v1187_v6 = vpack.c.bf16 %v1093_v55, %v1091_v12  ;;  %v1113_v42 = vmul.f32 %v4415_v52, %v4180_v62  ;;  %v5890_v55 = vld [vmem:[#allocation6_spill] sm:$0xff] }
 0x20e   :  { %v1088_v58 = vadd.f32 1e-05, %v1086_v49  ;;  %v1117_v49 = vmul.f32 %v4415_v52, %v4204_v32 }
 0x210   :  { %3282 = vrsqrt.f32 %v1088_v58 }
 0x21a   :  { %v4417_v35 = vpop.eup %3282 }
 0x21b   :  { %v1092_v43 = vmul.f32 %v4417_v35, %v4166_v41  ;;  %v1094_v15 = vmul.f32 %v4417_v35, %v4170_v7  ;;  %v1096_v45 = vmul.f32 %v4417_v35, %v4186_v24  ;;  %v1098_v51 = vmul.f32 %v4417_v35, %v4200_v2 }
 0x21c   :  { %v1100_v41 = vmul.f32 %v4417_v35, %v4210_v3  ;;  %v1102_v7 = vmul.f32 %v4417_v35, %v4222_v11  ;;  %v1189_v24 = vpack.c.bf16 %v1097_v22, %v1095_v39  ;;  %v1099_v2 = vmul.f32 %v4415_v52, %v4100_v9 }
 0x21d   :  { %v1188_v48 = vpack.c.bf16 %v1094_v15, %v1092_v43  ;;  %v1190_v63 = vpack.c.bf16 %v1098_v51, %v1096_v45  ;;  %v1104_v13 = vmul.f32 %v4417_v35, %v4234_v31  ;;  %v1106_v21 = vmul.f32 %v4417_v35, %v4246_v28  ;;  %v5892_v51 = vld [vmem:[#allocation7_spill] sm:$0xff] }
 0x21e   :  { %v1192_v38 = vpack.c.bf16 %v1102_v7, %v1100_v41  ;;  %v1191_v3 = vpack.c.bf16 %v1101_v27, %v1099_v2  ;;  %v1103_v11 = vmul.f32 %v4415_v52, %v4113_v4  ;;  %v1108_v54 = vmul.f32 %v4417_v35, %v4258_v59  ;;  %v5894_v41 = vld [vmem:[#allocation8_spill] sm:$0xff] }
 0x21f   :  { %1571 = vmatprep.subr.bf16.mxu1 %v1188_v48  ;;  %v1194_v9 = vpack.c.bf16 %v1106_v21, %v1104_v13  ;;  %v1110_v17 = vmul.f32 %v4417_v35, %v4270_v25  ;;  %v1107_v28 = vmul.f32 %v4415_v52, %v4125_v50  ;;  %v1112_v56 = vmul.f32 %v4417_v35, %v4282_v61  ;;  %v5896_v13 = vld [vmem:[#allocation32_spill] sm:$0xff] }
 0x220   :  { %1572 = vmatpush1.bf16.msra.mxu1 %v1187_v6  ;;  %v1193_v31 = vpack.c.bf16 %v1105_v30, %v1103_v11  ;;  %v1114_v18 = vmul.f32 %v4417_v35, %v4290_v29  ;;  %v1111_v25 = vmul.f32 %v4415_v52, %v4174_v37  ;;  %v1116_v16 = vmul.f32 %v4417_v35, %v4298_v47 }
 0x221   :  { %1573 = vmatprep.subr.bf16.mxu1 %v1190_v63  ;;  %v1196_v4 = vpack.c.bf16 %v1110_v17, %v1108_v54  ;;  %v1195_v59 = vpack.c.bf16 %v1109_v14, %v1107_v28  ;;  %v1118_v0 = vmul.f32 %v4417_v35, %v4306_v36  ;;  %v1115_v29 = vmul.f32 %v4415_v52, %v4194_v46  ;;  %v5889_v36 = vld [vmem:[#allocation14_spill] sm:$0xff] }
 0x222   :  { %v1198_v50 = vpack.c.bf16 %v1114_v18, %v1112_v56  ;;  %v1197_v61 = vpack.c.bf16 %v1113_v42, %v1111_v25  ;;  %v1120_v62 = vmul.f32 %v4417_v35, %v4314_v10  ;;  %v1122_v58 = vmul.f32 %v4417_v35, %v4322_v23  ;;  %v5891_v23 = vld [vmem:[#allocation16_spill] sm:$0xff]  ;;  %v5898_v54 = vld [vmem:[#allocation34_spill] sm:$0xff]  ;;  %v5901_v42 = vld [vmem:[#allocation43_spill] sm:$0xff] }
 0x223   :  { %v1200_v37 = vpack.c.bf16 %v1118_v0, %v1116_v16  ;;  %v1199_v47 = vpack.c.bf16 %v1117_v49, %v1115_v29  ;;  %v1119_v12 = vmul.f32 %v4415_v52, %v5889_v36  ;;  %v1121_v43 = vmul.f32 %v4415_v52, %v5890_v55  ;;  %v5900_v56 = vld [vmem:[#allocation36_spill] sm:$0xff]  ;;  %v5903_v0 = vld [vmem:[#allocation38_spill] sm:$0xff] }
 0x224   :  { %1574 = vmatpush1.bf16.msra.mxu1 %v1189_v24  ;;  %v1202_v46 = vpack.c.bf16 %v1122_v58, %v1120_v62  ;;  %v1124_v32 = vmul.f32 %v4417_v35, %v4330_v33  ;;  %v1126_v15 = vmul.f32 %v4417_v35, %v4338_v1  ;;  %v1123_v45 = vmul.f32 %v4415_v52, %v5891_v23  ;;  %v5893_v1 = vld [vmem:[#allocation18_spill] sm:$0xff]  ;;  %v5904_v49 = vld [vmem:[#allocation44_spill] sm:$0xff]  ;;  %v5905_v62 = vld [vmem:[#allocation45_spill] sm:$0xff] }
 0x225   :  { %1575 = vmatprep.subr.bf16.mxu1 %v1192_v38  ;;  %v1201_v10 = vpack.c.bf16 %v1121_v43, %v1119_v12  ;;  %v1125_v48 = vmul.f32 %v4415_v52, %v5892_v51  ;;  %v1128_v39 = vmul.f32 %v4417_v35, %v4349_v57  ;;  %v1130_v22 = vmul.f32 %v4417_v35, %v4357_v5  ;;  %v5895_v5 = vld [vmem:[#allocation31_spill] sm:$0xff]  ;;  %v5907_v12 = vld [vmem:[#allocation40_spill] sm:$0xff] }
 0x226   :  { %v1204_v6 = vpack.c.bf16 %v1126_v15, %v1124_v32  ;;  %v1127_v63 = vmul.f32 %v4415_v52, %v5893_v1  ;;  %v1129_v7 = vmul.f32 %v4415_v52, %v5894_v41  ;;  %v1132_v2 = vmul.f32 %v4417_v35, %v4365_v40  ;;  %v3220_v1 = vld [vmem:[%s5718_s3 + $0x44] ss:$8 sps:$4 sm:$0xff]   ;;  %v3223_v41 = vld [vmem:[%s5718_s3 + $0x54] ss:$8 sps:$4 sm:$0xff]  }
 0x227   :  { %v1203_v33 = vpack.c.bf16 %v1125_v48, %v1123_v45  ;;  %v1206_v24 = vpack.c.bf16 %v1130_v22, %v1128_v39  ;;  %v1134_v27 = vmul.f32 %v4417_v35, %v4373_v34  ;;  %v1131_v38 = vmul.f32 %v4415_v52, %v5895_v5  ;;  %v5897_v34 = vld [vmem:[#allocation33_spill] sm:$0xff]  ;;  %v5909_v45 = vld [vmem:[#allocation42_spill] sm:$0xff] }
 0x228   :  { %1576 = vmatpush1.bf16.msra.mxu1 %v1191_v3  ;;  %v1205_v57 = vpack.c.bf16 %v1129_v7, %v1127_v63  ;;  %v1133_v21 = vmul.f32 %v4415_v52, %v5896_v13  ;;  %v1136_v11 = vmul.f32 %v4417_v35, %v4381_v60  ;;  %v1138_v30 = vmul.f32 %v4417_v35, %v4389_v44  ;;  %v5899_v44 = vld [vmem:[#allocation35_spill] sm:$0xff]  ;;  %v3217_v22 = vld [vmem:[%s5718_s3 + $0x34] ss:$8 sps:$4 sm:$0xff]  }
 0x229   :  { %1577 = vmatprep.subr.bf16.mxu1 %v1194_v9  ;;  %v1208_v3 = vpack.c.bf16 %v1134_v27, %v1132_v2  ;;  %v1135_v9 = vmul.f32 %v4415_v52, %v5897_v34  ;;  %v1137_v17 = vmul.f32 %v4415_v52, %v5898_v54  ;;  %v1140_v28 = vmul.f32 %v4417_v35, %v4133_v19  ;;  %v3216_v39 = vld [vmem:[%s5718_s3 + $0x20] ss:$8 sps:$4 sm:$0xff]   ;;  %v3225_v7 = vld [vmem:[%s5718_s3 + $0x50] ss:$8 sps:$4 sm:$0xff]   ;;  %v3229_v27 = vld [vmem:[%s5718_s3 + $0x74] ss:$8 sps:$4 sm:$0xff]  }
 0x22a   :  { %v1207_v40 = vpack.c.bf16 %v1133_v21, %v1131_v38  ;;  %v1142_v14 = vmul.f32 %v4417_v35, %v4137_v26  ;;  %v1141_v18 = vmul.f32 %v4415_v52, %v5900_v56  ;;  %v1144_v25 = vmul.f32 %v4417_v35, %v4141_v8  ;;  %v5902_v26 = vld [vmem:[#allocation37_spill] sm:$0xff]  ;;  %v3232_v5 = vld [vmem:[%s5718_s3 + $0x84] ss:$8 sps:$4 sm:$0xff]  }
 0x22b   :  { %v1209_v60 = vpack.c.bf16 %v1137_v17, %v1135_v9  ;;  %v1143_v16 = vmul.f32 %v4415_v52, %v5902_v26  ;;  %v1150_v58 = vmul.f32 %v4417_v35, %v5905_v62  ;;  %v1149_v55 = vmul.f32 %v4415_v52, %v5907_v12  ;;  %v3222_v63 = vld [vmem:[%s5718_s3 + $0x40] ss:$8 sps:$4 sm:$0xff]   ;;  %v3235_v13 = vld [vmem:[%s5718_s3 + $0x94] ss:$8 sps:$4 sm:$0xff]   ;;  %v3237_v21 = vld [vmem:[%s5718_s3 + $0x90] ss:$8 sps:$4 sm:$0xff]  }
 0x22c   :  { %1578 = vmatpush1.bf16.msra.mxu1 %v1193_v31  ;;  %v1210_v31 = vpack.c.bf16 %v1138_v30, %v1136_v11  ;;  %v1154_v32 = vmul.f32 %v4417_v35, %v4105_v20  ;;  %v1153_v51 = vmul.f32 %v4415_v52, %v5909_v45  ;;  %v3211_v20 = vld [vmem:[%s5718_s3 + $0x14] ss:$8 sps:$4 sm:$0xff]   ;;  %v3228_v2 = vld [vmem:[%s5718_s3 + $0x60] ss:$8 sps:$4 sm:$0xff]   ;;  %v3244_v34 = vld [vmem:[%s5718_s3 + $0xc4] ss:$8 sps:$4 sm:$0xff]  }
 0x22d   :  { %1579 = vmatprep.subr.bf16.mxu1 %v1196_v4  ;;  %v1139_v4 = vmul.f32 %v4415_v52, %v5899_v44  ;;  %v3234_v38 = vld [vmem:[%s5718_s3 + $0x80] ss:$8 sps:$4 sm:$0xff]   ;;  %v3241_v30 = vld [vmem:[%s5718_s3 + $0xb4] ss:$8 sps:$4 sm:$0xff]   ;;  %v3249_v17 = vld [vmem:[%s5718_s3 + $0xd0] ss:$8 sps:$4 sm:$0xff]  }
 0x22e   :  { %v3240_v11 = vld [vmem:[%s5718_s3 + $0xa0] ss:$8 sps:$4 sm:$0xff]   ;;  %v3247_v54 = vld [vmem:[%s5718_s3 + $0xd4] ss:$8 sps:$4 sm:$0xff]  }
 0x22f   :  { %v1211_v19 = vpack.c.bf16 %v1141_v18, %v1139_v4  ;;  %v3246_v9 = vld [vmem:[%s5718_s3 + $0xc0] ss:$8 sps:$4 sm:$0xff]  }
 0x230   :  { %1580 = vmatpush1.bf16.msra.mxu1 %v1195_v59  ;;  %v1212_v59 = vpack.c.bf16 %v1142_v14, %v1140_v28  ;;  %v3252_v28 = vld [vmem:[%s5718_s3 + $0xe0] ss:$8 sps:$4 sm:$0xff]   ;;  %v3253_v14 = vld [vmem:[%s5718_s3 + $0xf4] ss:$8 sps:$4 sm:$0xff]  }
 0x231   :  { %1581 = vmatprep.subr.bf16.mxu1 %v1198_v50  ;;  %v1146_v50 = vmul.f32 %v4417_v35, %v5901_v42 }
 0x233   :  { %v1214_v29 = vpack.c.bf16 %v1146_v50, %v1144_v25 }
 0x234   :  { %1582 = vmatpush1.bf16.msra.mxu1 %v1197_v61  ;;  %v1145_v61 = vmul.f32 %v4415_v52, %v5903_v0  ;;  %v1259_v0 = vpop.permute.xlu1 %1258 }
 0x235   :  { %1583 = vmatprep.subr.bf16.mxu1 %v1200_v37  ;;  %v1148_v37 = vmul.f32 %v4417_v35, %v5904_v49 }
 0x236   :  { %v1213_v8 = vpack.c.bf16 %v1145_v61, %v1143_v16 }
 0x237   :  { %v1216_v43 = vpack.c.bf16 %v1150_v58, %v1148_v37 }
 0x238   :  { %1584 = vmatpush1.bf16.msra.mxu1 %v1199_v47  ;;  %v5906_v47 = vld [vmem:[#allocation39_spill] sm:$0xff] }
 0x239   :  { %1585 = vmatprep.subr.bf16.mxu1 %v1202_v46  ;;  %v1147_v36 = vmul.f32 %v4415_v52, %v5906_v47  ;;  %v1152_v46 = vmul.f32 %v4417_v35, %v4156_v53  ;;  %v3208_v53 = vld [vmem:[%s5718_s3] ss:$8 sps:$4 sm:$0xff]   ;;  %v3213_v35 = vld [vmem:[%s5718_s3 + $0x10] ss:$8 sps:$4 sm:$0xff]   ;;  %v1269_v47 = vpop.permute.xlu1 %1268 }
 0x23b   :  { %v1215_v15 = vpack.c.bf16 %v1149_v55, %v1147_v36  ;;  %v1218_v48 = vpack.c.bf16 %v1154_v32, %v1152_v46 }
 0x23c   :  { %1586 = vmatpush1.bf16.msra.mxu1 %v1201_v10  ;;  %v5908_v10 = vld [vmem:[#allocation41_spill] sm:$0xff] }
 0x23d   :  { %1587 = vmatprep.subr.bf16.mxu1 %v1204_v6  ;;  %v1151_v23 = vmul.f32 %v4415_v52, %v5908_v10  ;;  %v3214_v52 = vld [vmem:[%s5718_s3 + $0x24] ss:$8 sps:$4 sm:$0xff]  }
 0x23f   :  { %v1217_v6 = vpack.c.bf16 %v1153_v51, %v1151_v23 }
 0x240   :  { %1588 = vmatpush1.bf16.msra.mxu1 %v1203_v33  ;;  %v3219_v33 = vld [vmem:[%s5718_s3 + $0x30] ss:$8 sps:$4 sm:$0xff]  }
 0x241   :  { %1589 = vmatprep.subr.bf16.mxu1 %v1206_v24  ;;  %v3226_v24 = vld [vmem:[%s5718_s3 + $0x64] ss:$8 sps:$4 sm:$0xff]  }
 0x244   :  { %1590 = vmatpush1.bf16.msra.mxu1 %v1205_v57  ;;  %v3231_v57 = vld [vmem:[%s5718_s3 + $0x70] ss:$8 sps:$4 sm:$0xff]  }
 0x245   :  { %1591 = vmatprep.subr.bf16.mxu1 %v1208_v3  ;;  %v3238_v3 = vld [vmem:[%s5718_s3 + $0xa4] ss:$8 sps:$4 sm:$0xff]  }
 0x248   :  { %1592 = vmatpush1.bf16.msra.mxu1 %v1207_v40  ;;  %v3243_v40 = vld [vmem:[%s5718_s3 + $0xb0] ss:$8 sps:$4 sm:$0xff]  }
 0x249   :  { %1593 = vmatprep.subr.bf16.mxu1 %v1210_v31  ;;  %v3250_v31 = vld [vmem:[%s5718_s3 + $0xe4] ss:$8 sps:$4 sm:$0xff]  }
 0x24c   :  { %1594 = vmatpush1.bf16.msra.mxu1 %v1209_v60  ;;  %v3255_v60 = vld [vmem:[%s5718_s3 + $0xf0] ss:$8 sps:$4 sm:$0xff]  }
 0x24d   :  { %1595 = vmatprep.subr.bf16.mxu1 %v1212_v59 }
 0x250   :  { %1596 = vmatpush1.bf16.msra.mxu1 %v1211_v19  ;;  %v1254_v19 = vpop.permute.xlu0 %1253 }
 0x251   :  { %1597 = vmatprep.subr.bf16.mxu1 %v1214_v29 }
 0x254   :  { %1598 = vmatpush1.bf16.msra.mxu1 %v1213_v8  ;;  %v1264_v37 = vpop.permute.xlu0 %1263 }
 0x255   :  { %1599 = vmatprep.subr.bf16.mxu1 %v1216_v43 }
 0x258   :  { %1600 = vmatpush1.bf16.msra.mxu1 %v1215_v15  ;;  %v1274_v15 = vpop.permute.xlu0 %1273 }
 0x259   :  { %1601 = vmatprep.subr.bf16.mxu1 %v1218_v48 }
 0x25c   :  { %1602 = vmatpush1.bf16.msra.mxu1 %v1217_v6 }
 0x25f   :  { %1604 = vmatmul.mubr.bf16.vlgmr.msra.gmra.mrb[0].mxu1 %v3208_v53 }
 0x260   :  { %1613 = vmatprep.mubr.bf16.mxu1 %v3211_v20 }
 0x267   :  { %1614 = vmatmul.mubr.bf16.gmra.mrb[4].mxu1 %v3213_v35 }
 0x268   :  { %1623 = vmatprep.mubr.bf16.mxu1 %v3214_v52 }
 0x26f   :  { %1624 = vmatmul.mubr.bf16.gmra.mrb[8].mxu1 %v3216_v39  ;;  %v1279_v39 = vpop.permute.xlu1 %1278 }
 0x270   :  { %1633 = vmatprep.mubr.bf16.mxu1 %v3217_v22 }
 0x277   :  { %1634 = vmatmul.mubr.bf16.gmra.mrb[12].mxu1 %v3219_v33 }
 0x278   :  { %1643 = vmatprep.mubr.bf16.mxu1 %v3220_v1 }
 0x27f   :  { %1644 = vmatmul.mubr.bf16.gmra.mrb[16].mxu1 %v3222_v63 }
 0x280   :  { %1653 = vmatprep.mubr.bf16.mxu1 %v3223_v41 }
 0x287   :  { %1654 = vmatmul.mubr.bf16.gmra.mrb[20].mxu1 %v3225_v7 }
 0x288   :  { %1663 = vmatprep.mubr.bf16.mxu1 %v3226_v24  ;;  %v1284_v24 = vpop.permute.xlu0 %1283 }
 0x28f   :  { %1664 = vmatmul.mubr.bf16.gmra.mrb[24].mxu1 %v3228_v2 }
 0x290   :  { %1673 = vmatprep.mubr.bf16.mxu1 %v3229_v27 }
 0x297   :  { %1674 = vmatmul.mubr.bf16.gmra.mrb[28].mxu1 %v3231_v57 }
 0x298   :  { %1683 = vmatprep.mubr.bf16.mxu1 %v3232_v5 }
 0x29f   :  { %1684 = vmatmul.mubr.bf16.gmra.mrb[32].mxu1 %v3234_v38 }
 0x2a0   :  { %1693 = vmatprep.mubr.bf16.mxu1 %v3235_v13 }
 0x2a7   :  { %1694 = vmatmul.mubr.bf16.gmra.mrb[36].mxu1 %v3237_v21 }
 0x2a8   :  { %1703 = vmatprep.mubr.bf16.mxu1 %v3238_v3 }
 0x2af   :  { %1704 = vmatmul.mubr.bf16.gmra.mrb[40].mxu1 %v3240_v11 }
 0x2b0   :  { %1713 = vmatprep.mubr.bf16.mxu1 %v3241_v30 }
 0x2b7   :  { %1714 = vmatmul.mubr.bf16.gmra.mrb[44].mxu1 %v3243_v40 }
 0x2b8   :  { %1723 = vmatprep.mubr.bf16.mxu1 %v3244_v34 }
 0x2bf   :  { %1724 = vmatmul.mubr.bf16.gmra.mrb[48].mxu1 %v3246_v9 }
 0x2c0   :  { %1733 = vmatprep.mubr.bf16.mxu1 %v3247_v54 }
 0x2c7   :  { %1734 = vmatmul.mubr.bf16.gmra.mrb[52].mxu1 %v3249_v17  ;;  %v1289_v17 = vpop.permute.xlu1 %1288 }
 0x2c8   :  { %1743 = vmatprep.mubr.bf16.mxu1 %v3250_v31 }
 0x2cf   :  { %1744 = vmatmul.mubr.bf16.gmra.mrb[56].mxu1 %v3252_v28 }
 0x2d0   :  { %1753 = vmatprep.mubr.bf16.mxu1 %v3253_v14 }
 0x2d7   :  { %1754 = vmatmul.mubr.bf16.gmra.mrb[60].mxu1 %v3255_v60 }
 0x332   :  { %v1605_v44 = vpop.f32.mrb[0].mxu1 }
 0x333   :  { %v1607_v4 = vpop.f32.mrb[1].mxu1  ;;  %v1606_v62 = vadd.f32 %v1605_v44, %v1254_v19 }
 0x334   :  { %v1609_v56 = vpop.f32.mrb[2].mxu1  ;;  %v1608_v10 = vadd.f32 %v1607_v4, %v1254_v19 }
 0x335   :  { %v1611_v18 = vpop.f32.mrb[3].mxu1  ;;  %v1610_v29 = vadd.f32 %v1609_v56, %v1259_v0  ;;  %v1764_v55 = vmul.f32 0.01, %v1606_v62  ;;  %v1294_v56 = vpop.permute.xlu0 %1293 }
 0x336   :  { %v1612_v36 = vadd.f32 %v1611_v18, %v1259_v0  ;;  %v1765_v22 = vmul.f32 0.01, %v1608_v10 }
 0x337   :  { %v1766_v8 = vmul.f32 0.01, %v1610_v29  ;;  %v4642_v20 = vmax.f32 %v1606_v62, %v1764_v55 }
 0x338   :  { %v1767_v53 = vmul.f32 0.01, %v1612_v36  ;;  %v4653_v3 = vmax.f32 %v1608_v10, %v1765_v22 }
 0x339   :  { %v4640_v51 = vmax.f32 %v1610_v29, %v1766_v8 }
 0x33a   :  { %v1615_v59 = vpop.f32.mrb[4].mxu1  ;;  %v4648_v2 = vmax.f32 %v1612_v36, %v1767_v53 }
 0x33b   :  { %v1617_v25 = vpop.f32.mrb[5].mxu1  ;;  %v1616_v58 = vadd.f32 %v1615_v59, %v1264_v37  ;;  %v1892_v63 = vadd.f32 %v4640_v51, %v4642_v20 }
 0x33c   :  { %v1619_v42 = vpop.f32.mrb[6].mxu1  ;;  %v1618_v23 = vadd.f32 %v1617_v25, %v1264_v37  ;;  %v1929_v31 = vadd.f32 %v4648_v2, %v4653_v3  ;;  %v1299_v37 = vpop.permute.xlu1 %1298 }
 0x33d   :  { %v1621_v50 = vpop.f32.mrb[7].mxu1  ;;  %v1768_v43 = vmul.f32 0.01, %v1616_v58  ;;  %v1620_v46 = vadd.f32 %v1619_v42, %v1269_v47 }
 0x33e   :  { %v1769_v33 = vmul.f32 0.01, %v1618_v23  ;;  %v1622_v1 = vadd.f32 %v1621_v50, %v1269_v47 }
 0x33f   :  { %v4644_v35 = vmax.f32 %v1616_v58, %v1768_v43  ;;  %v1770_v52 = vmul.f32 0.01, %v1620_v46 }
 0x340   :  { %v4655_v11 = vmax.f32 %v1618_v23, %v1769_v33  ;;  %v1771_v30 = vmul.f32 0.01, %v1622_v1  ;;  %v1309_v22 = vpop.permute.xlu1 %1308 }
 0x341   :  { %v1893_v5 = vadd.f32 %v1892_v63, %v4644_v35  ;;  %v4651_v38 = vmax.f32 %v1620_v46, %v1770_v52  ;;  %v1304_v46 = vpop.permute.xlu0 %1303 }
 0x342   :  { %v1625_v26 = vpop.f32.mrb[8].mxu1  ;;  %v1930_v18 = vadd.f32 %v1929_v31, %v4655_v11  ;;  %v4663_v59 = vmax.f32 %v1622_v1, %v1771_v30 }
 0x343   :  { %v1627_v16 = vpop.f32.mrb[9].mxu1  ;;  %v1626_v48 = vadd.f32 %v1625_v26, %v1274_v15  ;;  %v1894_v60 = vadd.f32 %v1893_v5, %v4651_v38 }
 0x344   :  { %v1629_v61 = vpop.f32.mrb[10].mxu1  ;;  %v1628_v27 = vadd.f32 %v1627_v16, %v1274_v15  ;;  %v1931_v62 = vadd.f32 %v1930_v18, %v4663_v59 }
 0x345   :  { %v1631_v49 = vpop.f32.mrb[11].mxu1  ;;  %v1772_v41 = vmul.f32 0.01, %v1626_v48  ;;  %v1630_v7 = vadd.f32 %v1629_v61, %v1279_v39  ;;  %v1314_v5 = vpop.permute.xlu0 %1313 }
 0x346   :  { %v1773_v28 = vmul.f32 0.01, %v1628_v27  ;;  %v1632_v14 = vadd.f32 %v1631_v49, %v1279_v39 }
 0x347   :  { %v4657_v34 = vmax.f32 %v1626_v48, %v1772_v41  ;;  %v1774_v9 = vmul.f32 0.01, %v1630_v7 }
 0x348   :  { %v4668_v26 = vmax.f32 %v1628_v27, %v1773_v28  ;;  %v1775_v16 = vmul.f32 0.01, %v1632_v14 }
 0x349   :  { %v1895_v42 = vadd.f32 %v1894_v60, %v4657_v34  ;;  %v4666_v50 = vmax.f32 %v1630_v7, %v1774_v9 }
 0x34a   :  { %v1635_v12 = vpop.f32.mrb[12].mxu1  ;;  %v4675_v15 = vmax.f32 %v1632_v14, %v1775_v16 }
 0x34b   :  { %v1637_v32 = vpop.f32.mrb[13].mxu1  ;;  %v1636_v13 = vadd.f32 %v1635_v12, %v1284_v24  ;;  %v1896_v36 = vadd.f32 %v1895_v42, %v4666_v50 }
 0x34c   :  { %v1639_v45 = vpop.f32.mrb[14].mxu1  ;;  %v1638_v25 = vadd.f32 %v1637_v32, %v1284_v24  ;;  %v1932_v32 = vadd.f32 %v1931_v62, %v4668_v26  ;;  %5910 = vst [vmem:[#allocation20_spill] sm:$0xff] %v4675_v15 }
 0x34d   :  { %v1641_v6 = vpop.f32.mrb[15].mxu1  ;;  %v1776_v44 = vmul.f32 0.01, %v1636_v13  ;;  %v1640_v4 = vadd.f32 %v1639_v45, %v1289_v17 }
 0x34e   :  { %v1777_v58 = vmul.f32 0.01, %v1638_v25  ;;  %v1642_v8 = vadd.f32 %v1641_v6, %v1289_v17  ;;  %v1933_v33 = vadd.f32 %v1932_v32, %v4675_v15 }
 0x34f   :  { %v4670_v61 = vmax.f32 %v1636_v13, %v1776_v44  ;;  %v1778_v29 = vmul.f32 0.01, %v1640_v4 }
 0x350   :  { %v4680_v53 = vmax.f32 %v1638_v25, %v1777_v58  ;;  %v1779_v6 = vmul.f32 0.01, %v1642_v8 }
 0x351   :  { %v1897_v23 = vadd.f32 %v1896_v36, %v4670_v61  ;;  %v4678_v45 = vmax.f32 %v1640_v4, %v1778_v29  ;;  %v1319_v4 = vpop.permute.xlu1 %1318 }
 0x352   :  { %v1645_v57 = vpop.f32.mrb[16].mxu1  ;;  %5911 = vst [vmem:[#allocation9_spill] sm:$0xff] %v4680_v53  ;;  %v1934_v13 = vadd.f32 %v1933_v33, %v4680_v53 }
 0x353   :  { %v1647_v21 = vpop.f32.mrb[17].mxu1  ;;  %v1646_v19 = vadd.f32 %v1645_v57, %v1294_v56  ;;  %v1898_v7 = vadd.f32 %v1897_v23, %v4678_v45 }
 0x354   :  { %v1649_v40 = vpop.f32.mrb[18].mxu1  ;;  %v1648_v10 = vadd.f32 %v1647_v21, %v1294_v56  ;;  %v4687_v21 = vmax.f32 %v1642_v8, %v1779_v6 }
 0x355   :  { %v1651_v54 = vpop.f32.mrb[19].mxu1  ;;  %v1780_v12 = vmul.f32 0.01, %v1646_v19  ;;  %v1650_v55 = vadd.f32 %v1649_v40, %v1299_v37  ;;  %v1329_v23 = vpop.permute.xlu1 %1328 }
 0x356   :  { %v1781_v1 = vmul.f32 0.01, %v1648_v10  ;;  %v1652_v63 = vadd.f32 %v1651_v54, %v1299_v37  ;;  %5912 = vst [vmem:[#allocation22_spill] sm:$0xff] %v4687_v21  ;;  %v1935_v56 = vadd.f32 %v1934_v13, %v4687_v21 }
 0x357   :  { %v4682_v52 = vmax.f32 %v1646_v19, %v1780_v12  ;;  %v1782_v39 = vmul.f32 0.01, %v1650_v55 }
 0x358   :  { %v4692_v54 = vmax.f32 %v1648_v10, %v1781_v1  ;;  %v1783_v14 = vmul.f32 0.01, %v1652_v63 }
 0x359   :  { %v1899_v9 = vadd.f32 %v1898_v7, %v4682_v52  ;;  %v4690_v17 = vmax.f32 %v1650_v55, %v1782_v39 }
 0x35a   :  { %v1655_v0 = vpop.f32.mrb[20].mxu1  ;;  %5913 = vst [vmem:[#allocation10_spill] sm:$0xff] %v4692_v54  ;;  %v1936_v29 = vadd.f32 %v1935_v56, %v4692_v54 }
 0x35b   :  { %v1657_v49 = vpop.f32.mrb[21].mxu1  ;;  %v1656_v48 = vadd.f32 %v1655_v0, %v1304_v46  ;;  %v1900_v42 = vadd.f32 %v1899_v9, %v4690_v17  ;;  %v1324_v0 = vpop.permute.xlu0 %1323 }
 0x35c   :  { %v1659_v47 = vpop.f32.mrb[22].mxu1  ;;  %v1658_v30 = vadd.f32 %v1657_v49, %v1304_v46  ;;  %v4699_v49 = vmax.f32 %v1652_v63, %v1783_v14  ;;  %v1339_v14 = vpop.permute.xlu1 %1338 }
 0x35d   :  { %v1661_v43 = vpop.f32.mrb[23].mxu1  ;;  %v1784_v24 = vmul.f32 0.01, %v1656_v48  ;;  %v1660_v27 = vadd.f32 %v1659_v47, %v1309_v22 }
 0x35e   :  { %v1785_v18 = vmul.f32 0.01, %v1658_v30  ;;  %v1662_v25 = vadd.f32 %v1661_v43, %v1309_v22  ;;  %5914 = vst [vmem:[#allocation24_spill] sm:$0xff] %v4699_v49 }
 0x35f   :  { %v4694_v60 = vmax.f32 %v1656_v48, %v1784_v24  ;;  %v1786_v44 = vmul.f32 0.01, %v1660_v27  ;;  %v1937_v48 = vadd.f32 %v1936_v29, %v4699_v49 }
 0x360   :  { %v4704_v12 = vmax.f32 %v1658_v30, %v1785_v18  ;;  %v1787_v55 = vmul.f32 0.01, %v1662_v25 }
 0x361   :  { %v1901_v58 = vadd.f32 %v1900_v42, %v4694_v60  ;;  %v4702_v8 = vmax.f32 %v1660_v27, %v1786_v44 }
 0x362   :  { %v1665_v41 = vpop.f32.mrb[24].mxu1  ;;  %5915 = vst [vmem:[#allocation11_spill] sm:$0xff] %v4704_v12  ;;  %v1938_v63 = vadd.f32 %v1937_v48, %v4704_v12 }
 0x363   :  { %v1667_v57 = vpop.f32.mrb[25].mxu1  ;;  %v1666_v31 = vadd.f32 %v1665_v41, %v1314_v5  ;;  %v1902_v22 = vadd.f32 %v1901_v58, %v4702_v8  ;;  %v4711_v41 = vmax.f32 %v1662_v25, %v1787_v55 }
 0x364   :  { %v1669_v40 = vpop.f32.mrb[26].mxu1  ;;  %v1668_v37 = vadd.f32 %v1667_v57, %v1314_v5  ;;  %v1334_v57 = vpop.permute.xlu0 %1333 }
 0x365   :  { %v1671_v28 = vpop.f32.mrb[27].mxu1  ;;  %v1788_v19 = vmul.f32 0.01, %v1666_v31  ;;  %v1670_v16 = vadd.f32 %v1669_v40, %v1319_v4  ;;  %5916 = vst [vmem:[#allocation12_spill] sm:$0xff] %v4711_v41  ;;  %v1939_v44 = vadd.f32 %v1938_v63, %v4711_v41  ;;  %v1349_v63 = vpop.permute.xlu1 %1348 }
 0x366   :  { %v1789_v6 = vmul.f32 0.01, %v1668_v37  ;;  %v1672_v39 = vadd.f32 %v1671_v28, %v1319_v4 }
 0x367   :  { %v4706_v46 = vmax.f32 %v1666_v31, %v1788_v19  ;;  %v1790_v32 = vmul.f32 0.01, %v1670_v16 }
 0x368   :  { %v4716_v5 = vmax.f32 %v1668_v37, %v1789_v6  ;;  %v1791_v13 = vmul.f32 0.01, %v1672_v39 }
 0x369   :  { %v1903_v24 = vadd.f32 %v1902_v22, %v4706_v46  ;;  %v4714_v27 = vmax.f32 %v1670_v16, %v1790_v32  ;;  %v1344_v32 = vpop.permute.xlu0 %1343 }
 0x36a   :  { %v1675_v62 = vpop.f32.mrb[28].mxu1  ;;  %5917 = vst [vmem:[#allocation13_spill] sm:$0xff] %v4716_v5  ;;  %v4723_v29 = vmax.f32 %v1672_v39, %v1791_v13 }
 0x36b   :  { %v1676_v47 = vadd.f32 %v1675_v62, %v1324_v0  ;;  %v1677_v36 = vpop.f32.mrb[29].mxu1  ;;  %v1904_v25 = vadd.f32 %v1903_v24, %v4714_v27 }
 0x36c   :  { %v1679_v43 = vpop.f32.mrb[30].mxu1  ;;  %v1678_v7 = vadd.f32 %v1677_v36, %v1324_v0  ;;  %v1940_v0 = vadd.f32 %v1939_v44, %v4716_v5  ;;  %5919 = vst [vmem:[#allocation17_spill] sm:$0xff] %v4723_v29 }
 0x36d   :  { %v1681_v10 = vpop.f32.mrb[31].mxu1  ;;  %v1792_v33 = vmul.f32 0.01, %v1676_v47  ;;  %v1680_v1 = vadd.f32 %v1679_v43, %v1329_v23 }
 0x36e   :  { %v1793_v4 = vmul.f32 0.01, %v1678_v7  ;;  %v1682_v56 = vadd.f32 %v1681_v10, %v1329_v23  ;;  %v1941_v10 = vadd.f32 %v1940_v0, %v4723_v29  ;;  %v1354_v0 = vpop.permute.xlu0 %1353 }
 0x36f   :  { %v4718_v40 = vmax.f32 %v1676_v47, %v1792_v33  ;;  %v1794_v9 = vmul.f32 0.01, %v1680_v1 }
 0x370   :  { %v4728_v47 = vmax.f32 %v1678_v7, %v1793_v4  ;;  %v1795_v36 = vmul.f32 0.01, %v1682_v56 }
 0x371   :  { %5918 = vst [vmem:[#allocation15_spill] sm:$0xff] %v4718_v40  ;;  %v1905_v62 = vadd.f32 %v1904_v25, %v4718_v40  ;;  %v4726_v58 = vmax.f32 %v1680_v1, %v1794_v9 }
 0x372   :  { %v1685_v30 = vpop.f32.mrb[32].mxu1  ;;  %5921 = vst [vmem:[#allocation21_spill] sm:$0xff] %v4728_v47  ;;  %v1942_v1 = vadd.f32 %v1941_v10, %v4728_v47  ;;  %v4735_v24 = vmax.f32 %v1682_v56, %v1795_v36 }
 0x373   :  { %v1686_v31 = vadd.f32 %v1685_v30, %v1334_v57  ;;  %v1687_v28 = vpop.f32.mrb[33].mxu1  ;;  %5920 = vst [vmem:[#allocation19_spill] sm:$0xff] %v4726_v58  ;;  %v1906_v39 = vadd.f32 %v1905_v62, %v4726_v58 }
 0x374   :  { %v1689_v18 = vpop.f32.mrb[34].mxu1  ;;  %v1688_v37 = vadd.f32 %v1687_v28, %v1334_v57  ;;  %5923 = vst [vmem:[#allocation25_spill] sm:$0xff] %v4735_v24  ;;  %v1943_v25 = vadd.f32 %v1942_v1, %v4735_v24 }
 0x375   :  { %v1796_v42 = vmul.f32 0.01, %v1686_v31  ;;  %v1690_v19 = vadd.f32 %v1689_v18, %v1339_v14  ;;  %v1691_v16 = vpop.f32.mrb[35].mxu1 }
 0x376   :  { %v1797_v23 = vmul.f32 0.01, %v1688_v37  ;;  %v1692_v48 = vadd.f32 %v1691_v16, %v1339_v14 }
 0x377   :  { %v4730_v55 = vmax.f32 %v1686_v31, %v1796_v42  ;;  %v1798_v43 = vmul.f32 0.01, %v1690_v19 }
 0x378   :  { %v4740_v14 = vmax.f32 %v1688_v37, %v1797_v23  ;;  %v1799_v44 = vmul.f32 0.01, %v1692_v48  ;;  %v1359_v23 = vpop.permute.xlu1 %1358 }
 0x379   :  { %5922 = vst [vmem:[#allocation23_spill] sm:$0xff] %v4730_v55  ;;  %v1907_v13 = vadd.f32 %v1906_v39, %v4730_v55  ;;  %v4738_v30 = vmax.f32 %v1690_v19, %v1798_v43 }
 0x37a   :  { %v1695_v6 = vpop.f32.mrb[36].mxu1  ;;  %5925 = vst [vmem:[#allocation27_spill] sm:$0xff] %v4740_v14  ;;  %v1944_v62 = vadd.f32 %v1943_v25, %v4740_v14  ;;  %v4747_v19 = vmax.f32 %v1692_v48, %v1799_v44 }
 0x37b   :  { %v1696_v22 = vadd.f32 %v1695_v6, %v1344_v32  ;;  %v1697_v33 = vpop.f32.mrb[37].mxu1  ;;  %5924 = vst [vmem:[#allocation26_spill] sm:$0xff] %v4738_v30  ;;  %v1908_v16 = vadd.f32 %v1907_v13, %v4738_v30 }
 0x37c   :  { %v1698_v7 = vadd.f32 %v1697_v33, %v1344_v32  ;;  %v1699_v57 = vpop.f32.mrb[38].mxu1  ;;  %5927 = vst [vmem:[#allocation29_spill] sm:$0xff] %v4747_v19  ;;  %v1945_v13 = vadd.f32 %v1944_v62, %v4747_v19 }
 0x37d   :  { %v1800_v9 = vmul.f32 0.01, %v1696_v22  ;;  %v1700_v31 = vadd.f32 %v1699_v57, %v1349_v63  ;;  %v1701_v28 = vpop.f32.mrb[39].mxu1 }
 0x37e   :  { %v1801_v42 = vmul.f32 0.01, %v1698_v7  ;;  %v1702_v56 = vadd.f32 %v1701_v28, %v1349_v63 }
 0x37f   :  { %v4742_v4 = vmax.f32 %v1696_v22, %v1800_v9  ;;  %v1802_v18 = vmul.f32 0.01, %v1700_v31 }
 0x380   :  { %v4752_v6 = vmax.f32 %v1698_v7, %v1801_v42  ;;  %v1803_v39 = vmul.f32 0.01, %v1702_v56 }
 0x381   :  { %5926 = vst [vmem:[#allocation28_spill] sm:$0xff] %v4742_v4  ;;  %v1909_v43 = vadd.f32 %v1908_v16, %v4742_v4  ;;  %v4750_v37 = vmax.f32 %v1700_v31, %v1802_v18  ;;  %v1364_v16 = vpop.permute.xlu0 %1363 }
 0x382   :  { %v1705_v36 = vpop.f32.mrb[40].mxu1  ;;  %5929 = vst [vmem:[#allocation14_spill] sm:$0xff] %v4752_v6  ;;  %v1946_v18 = vadd.f32 %v1945_v13, %v4752_v6  ;;  %v4759_v25 = vmax.f32 %v1702_v56, %v1803_v39 }
 0x383   :  { %5928 = vst [vmem:[#allocation30_spill] sm:$0xff] %v4750_v37  ;;  %v1706_v32 = vadd.f32 %v1705_v36, %v1354_v0  ;;  %v1707_v10 = vpop.f32.mrb[41].mxu1  ;;  %v1910_v28 = vadd.f32 %v1909_v43, %v4750_v37 }
 0x384   :  { %v1708_v22 = vadd.f32 %v1707_v10, %v1354_v0  ;;  %v1709_v33 = vpop.f32.mrb[42].mxu1  ;;  %5930 = vst [vmem:[#allocation6_spill] sm:$0xff] %v4759_v25 }
 0x385   :  { %v1804_v63 = vmul.f32 0.01, %v1706_v32  ;;  %v1710_v1 = vadd.f32 %v1709_v33, %v1359_v23  ;;  %v1711_v57 = vpop.f32.mrb[43].mxu1  ;;  %v1947_v33 = vadd.f32 %v1946_v18, %v4759_v25 }
 0x386   :  { %v1805_v48 = vmul.f32 0.01, %v1708_v22  ;;  %v1712_v9 = vadd.f32 %v1711_v57, %v1359_v23 }
 0x387   :  { %v4756_v44 = vmax.f32 %v1706_v32, %v1804_v63  ;;  %v1806_v31 = vmul.f32 0.01, %v1710_v1  ;;  %v1369_v32 = vpop.permute.xlu1 %1368 }
 0x388   :  { %v4764_v0 = vmax.f32 %v1708_v22, %v1805_v48  ;;  %v1807_v36 = vmul.f32 0.01, %v1712_v9 }
 0x389   :  { %v1911_v7 = vadd.f32 %v1910_v28, %v4756_v44  ;;  %v4762_v42 = vmax.f32 %v1710_v1, %v1806_v31 }
 0x38a   :  { %5931 = vst [vmem:[#allocation16_spill] sm:$0xff] %v4764_v0  ;;  %v1715_v62 = vpop.f32.mrb[44].mxu1  ;;  %v1948_v1 = vadd.f32 %v1947_v33, %v4764_v0  ;;  %v4769_v28 = vmax.f32 %v1712_v9, %v1807_v36 }
 0x38b   :  { %v1912_v10 = vadd.f32 %v1911_v7, %v4762_v42  ;;  %v1716_v23 = vadd.f32 %v1715_v62, %v1364_v16  ;;  %v1717_v43 = vpop.f32.mrb[45].mxu1  ;;  %v1379_v0 = vpop.permute.xlu1 %1378 }
 0x38c   :  { %v1718_v63 = vadd.f32 %v1717_v43, %v1364_v16  ;;  %v1719_v57 = vpop.f32.mrb[46].mxu1  ;;  %5932 = vst [vmem:[#allocation7_spill] sm:$0xff] %v4769_v28  ;;  %v1374_v16 = vpop.permute.xlu0 %1373  ;;  %v1949_v43 = vadd.f32 %v1948_v1, %v4769_v28 }
 0x38d   :  { %v1808_v56 = vmul.f32 0.01, %v1716_v23  ;;  %v1720_v39 = vadd.f32 %v1719_v57, %v1369_v32  ;;  %v1721_v13 = vpop.f32.mrb[47].mxu1 }
 0x38e   :  { %v1809_v22 = vmul.f32 0.01, %v1718_v63  ;;  %v1722_v48 = vadd.f32 %v1721_v13, %v1369_v32 }
 0x38f   :  { %v4771_v31 = vmax.f32 %v1716_v23, %v1808_v56  ;;  %v1810_v6 = vmul.f32 0.01, %v1720_v39 }
 0x390   :  { %v4773_v7 = vmax.f32 %v1718_v63, %v1809_v22  ;;  %v1811_v62 = vmul.f32 0.01, %v1722_v48 }
 0x391   :  { %v1913_v19 = vadd.f32 %v1912_v10, %v4771_v31  ;;  %v4776_v18 = vmax.f32 %v1720_v39, %v1810_v6 }
 0x392   :  { %5933 = vst [vmem:[#allocation18_spill] sm:$0xff] %v4773_v7  ;;  %v1725_v57 = vpop.f32.mrb[48].mxu1  ;;  %v1950_v23 = vadd.f32 %v1949_v43, %v4773_v7  ;;  %v4781_v32 = vmax.f32 %v1722_v48, %v1811_v62  ;;  %v1384_v48 = vpop.permute.xlu0 %1383 }
 0x393   :  { %v1914_v33 = vadd.f32 %v1913_v19, %v4776_v18  ;;  %v1726_v9 = vadd.f32 %v1725_v57, %v1374_v16  ;;  %v1727_v36 = vpop.f32.mrb[49].mxu1 }
 0x394   :  { %5934 = vst [vmem:[#allocation8_spill] sm:$0xff] %v4781_v32  ;;  %v1728_v63 = vadd.f32 %v1727_v36, %v1374_v16  ;;  %v1729_v56 = vpop.f32.mrb[50].mxu1  ;;  %v1951_v28 = vadd.f32 %v1950_v23, %v4781_v32 }
 0x395   :  { %v1812_v13 = vmul.f32 0.01, %v1726_v9  ;;  %v1730_v22 = vadd.f32 %v1729_v56, %v1379_v0  ;;  %v1731_v10 = vpop.f32.mrb[51].mxu1 }
 0x396   :  { %v1813_v6 = vmul.f32 0.01, %v1728_v63  ;;  %v1732_v39 = vadd.f32 %v1731_v10, %v1379_v0  ;;  %v1394_v24 = vpop.permute.xlu0 %1393 }
 0x397   :  { %v4783_v25 = vmax.f32 %v1726_v9, %v1812_v13  ;;  %v1814_v1 = vmul.f32 0.01, %v1730_v22  ;;  %v1389_v13 = vpop.permute.xlu1 %1388 }
 0x398   :  { %v4786_v19 = vmax.f32 %v1728_v63, %v1813_v6  ;;  %v1815_v57 = vmul.f32 0.01, %v1732_v39 }
 0x399   :  { %v1915_v14 = vadd.f32 %v1914_v33, %v4783_v25  ;;  %v4789_v43 = vmax.f32 %v1730_v22, %v1814_v1 }
 0x39a   :  { %v1952_v62 = vadd.f32 %v1951_v28, %v4786_v19  ;;  %v4792_v16 = vmax.f32 %v1732_v39, %v1815_v57  ;;  %v1735_v36 = vpop.f32.mrb[52].mxu1 }
 0x39b   :  { %v1916_v0 = vadd.f32 %v1915_v14, %v4789_v43  ;;  %v1736_v9 = vadd.f32 %v1735_v36, %v1384_v48  ;;  %v1737_v56 = vpop.f32.mrb[53].mxu1 }
 0x39c   :  { %v1953_v23 = vadd.f32 %v1952_v62, %v4792_v16  ;;  %v1738_v63 = vadd.f32 %v1737_v56, %v1384_v48  ;;  %v1739_v10 = vpop.f32.mrb[54].mxu1 }
 0x39d   :  { %v1816_v6 = vmul.f32 0.01, %v1736_v9  ;;  %v1740_v32 = vadd.f32 %v1739_v10, %v1389_v13  ;;  %v1741_v33 = vpop.f32.mrb[55].mxu1 }
 0x39e   :  { %v1817_v22 = vmul.f32 0.01, %v1738_v63  ;;  %v1742_v1 = vadd.f32 %v1741_v33, %v1389_v13 }
 0x39f   :  { %v4796_v7 = vmax.f32 %v1736_v9, %v1816_v6  ;;  %v1818_v28 = vmul.f32 0.01, %v1740_v32  ;;  %v1399_v9 = vpop.permute.xlu1 %1398 }
 0x3a0   :  { %v4798_v39 = vmax.f32 %v1738_v63, %v1817_v22  ;;  %v1819_v57 = vmul.f32 0.01, %v1742_v1 }
 0x3a1   :  { %v1917_v14 = vadd.f32 %v1916_v0, %v4796_v7  ;;  %v4801_v36 = vmax.f32 %v1740_v32, %v1818_v28 }
 0x3a2   :  { %v1954_v62 = vadd.f32 %v1953_v23, %v4798_v39  ;;  %v4804_v48 = vmax.f32 %v1742_v1, %v1819_v57  ;;  %v1745_v56 = vpop.f32.mrb[56].mxu1 }
 0x3a3   :  { %v1918_v10 = vadd.f32 %v1917_v14, %v4801_v36  ;;  %v1746_v47 = vadd.f32 %v1745_v56, %v1394_v24  ;;  %v1747_v13 = vpop.f32.mrb[57].mxu1  ;;  %v1404_v14 = vpop.permute.xlu0 %1403 }
 0x3a4   :  { %v1955_v6 = vadd.f32 %v1954_v62, %v4804_v48  ;;  %v1748_v63 = vadd.f32 %v1747_v13, %v1394_v24  ;;  %v1749_v33 = vpop.f32.mrb[58].mxu1 }
 0x3a5   :  { %v1820_v22 = vmul.f32 0.01, %v1746_v47  ;;  %v1750_v29 = vadd.f32 %v1749_v33, %v1399_v9  ;;  %v1751_v0 = vpop.f32.mrb[59].mxu1  ;;  %v1409_v33 = vpop.permute.xlu1 %1408 }
 0x3a6   :  { %v1821_v32 = vmul.f32 0.01, %v1748_v63  ;;  %v1752_v28 = vadd.f32 %v1751_v0, %v1399_v9 }
 0x3a7   :  { %v1884_v5 = vmax.f32 %v1746_v47, %v1820_v22  ;;  %v1822_v41 = vmul.f32 0.01, %v1750_v29 }
 0x3a8   :  { %v4808_v23 = vmax.f32 %v1748_v63, %v1821_v32  ;;  %v1823_v1 = vmul.f32 0.01, %v1752_v28 }
 0x3a9   :  { %v1919_v57 = vadd.f32 %v1918_v10, %v1884_v5  ;;  %v1886_v12 = vmax.f32 %v1750_v29, %v1822_v41 }
 0x3aa   :  { %v1956_v56 = vadd.f32 %v1955_v6, %v4808_v23  ;;  %v4811_v37 = vmax.f32 %v1752_v28, %v1823_v1  ;;  %v1755_v62 = vpop.f32.mrb[60].mxu1 }
 0x3ab   :  { %v1920_v24 = vadd.f32 %v1919_v57, %v1886_v12  ;;  %v1756_v13 = vadd.f32 %v1755_v62, %v1404_v14  ;;  %v1757_v49 = vpop.f32.mrb[61].mxu1 }
 0x3ac   :  { %v1957_v4 = vadd.f32 %v1956_v56, %v4811_v37  ;;  %v1758_v9 = vadd.f32 %v1757_v49, %v1404_v14  ;;  %v1759_v47 = vpop.f32.mrb[62].mxu1 }
 0x3ad   :  { %v1824_v22 = vmul.f32 0.01, %v1756_v13  ;;  %v1760_v63 = vadd.f32 %v1759_v47, %v1409_v33  ;;  %v1761_v0 = vpop.f32.mrb[63].mxu1 }
 0x3ae   :  { %v1825_v32 = vmul.f32 0.01, %v1758_v9  ;;  %v1762_v10 = vadd.f32 %v1761_v0, %v1409_v33 }
 0x3af   :  { %v1888_v41 = vmax.f32 %v1756_v13, %v1824_v22  ;;  %v1826_v29 = vmul.f32 0.01, %v1760_v63 }
 0x3b0   :  { %v1889_v54 = vmax.f32 %v1758_v9, %v1825_v32  ;;  %v1827_v6 = vmul.f32 0.01, %v1762_v10 }
 0x3b1   :  { %v1921_v28 = vadd.f32 %v1920_v24, %v1888_v41  ;;  %v1890_v1 = vmax.f32 %v1760_v63, %v1826_v29 }
 0x3b2   :  { %v1958_v30 = vadd.f32 %v1957_v4, %v1889_v54  ;;  %v1891_v57 = vmax.f32 %v1762_v10, %v1827_v6 }
 0x3b3   :  { %v1922_v62 = vadd.f32 %v1921_v28, %v1890_v1 }
 0x3b4   :  { %v1959_v21 = vadd.f32 %v1958_v30, %v1891_v57 }
 0x3b5   :  { %v1923_v55 = vrot.slane %v1922_v62, 4 }
 0x3b6   :  { %v1960_v14 = vrot.slane %v1959_v21, 4 }
 0x3b7   :  { %v1924_v53 = vadd.f32 %v1923_v55, %v1922_v62 }
 0x3b8   :  { %v1961_v47 = vadd.f32 %v1960_v14, %v1959_v21 }
 0x3b9   :  { %v1925_v56 = vrot.slane %v1924_v53, 2 }
 0x3ba   :  { %v1962_v40 = vrot.slane %v1961_v47, 2 }
 0x3bb   :  { %v1926_v49 = vadd.f32 %v1925_v56, %v1924_v53 }
 0x3bc   :  { %v1963_v13 = vadd.f32 %v1962_v40, %v1961_v47 }
 0x3bd   :  { %v1927_v58 = vrot.slane %v1926_v49, 1 }
 0x3bf   :  { %v1928_v15 = vadd.f32 %v1927_v58, %v1926_v49 }
 0x3c1   :  { %v4814_v33 = vmul.f32 0.00390625, %v1928_v15 }
 0x3c3   :  { %v4818_v24 = vsub.f32 %v4756_v44, %v4814_v33  ;;  %v4822_v4 = vsub.f32 %v4762_v42, %v4814_v33  ;;  %v4826_v55 = vsub.f32 %v4771_v31, %v4814_v33  ;;  %v4830_v53 = vsub.f32 %v4776_v18, %v4814_v33 }
 0x3c4   :  { %v4834_v15 = vsub.f32 %v4783_v25, %v4814_v33  ;;  %v4838_v21 = vsub.f32 %v4789_v43, %v4814_v33  ;;  %v4842_v40 = vsub.f32 %v4796_v7, %v4814_v33  ;;  %v4846_v58 = vsub.f32 %v4801_v36, %v4814_v33 }
 0x3c5   :  { %5935 = vst [vmem:[#allocation31_spill] sm:$0xff] %v4818_v24  ;;  %5936 = vst [vmem:[#allocation32_spill] sm:$0xff] %v4822_v4  ;;  %v4849_v30 = vsub.f32 %v1884_v5, %v4814_v33  ;;  %v4852_v44 = vsub.f32 %v1886_v12, %v4814_v33  ;;  %v4855_v25 = vsub.f32 %v1888_v41, %v4814_v33  ;;  %v1964_v18 = vrot.slane %v1963_v13, 1 }
 0x3c6   :  { %5937 = vst [vmem:[#allocation33_spill] sm:$0xff] %v4826_v55  ;;  %5938 = vst [vmem:[#allocation34_spill] sm:$0xff] %v4830_v53  ;;  %v4858_v42 = vsub.f32 %v1890_v1, %v4814_v33  ;;  %v4862_v31 = vsub.f32 %v4642_v20, %v4814_v33  ;;  %v4866_v7 = vsub.f32 %v4640_v51, %v4814_v33 }
 0x3c7   :  { %5939 = vst [vmem:[#allocation35_spill] sm:$0xff] %v4834_v15  ;;  %5940 = vst [vmem:[#allocation36_spill] sm:$0xff] %v4838_v21  ;;  %v4870_v5 = vsub.f32 %v4644_v35, %v4814_v33  ;;  %v4878_v36 = vsub.f32 %v4651_v38, %v4814_v33  ;;  %v1965_v20 = vadd.f32 %v1964_v18, %v1963_v13 }
 0x3c8   :  { %5941 = vst [vmem:[#allocation43_spill] sm:$0xff] %v4842_v40  ;;  %5942 = vst [vmem:[#allocation37_spill] sm:$0xff] %v4846_v58  ;;  %v2032_v12 = vmul.f32 %v4862_v31, %v4862_v31  ;;  %v2034_v43 = vmul.f32 %v4866_v7, %v4866_v7  ;;  %v4882_v51 = vsub.f32 %v4657_v34, %v4814_v33 }
 0x3c9   :  { %5943 = vst [vmem:[#allocation38_spill] sm:$0xff] %v4849_v30  ;;  %5944 = vst [vmem:[#allocation44_spill] sm:$0xff] %v4852_v44  ;;  %v2036_v9 = vmul.f32 %v4870_v5, %v4870_v5  ;;  %v4888_v22 = vsub.f32 %v4666_v50, %v4814_v33  ;;  %v4892_v63 = vsub.f32 %v4670_v61, %v4814_v33  ;;  %v4896_v32 = vmul.f32 0.00390625, %v1965_v20 }
 0x3ca   :  { %5945 = vst [vmem:[#allocation45_spill] sm:$0xff] %v4855_v25  ;;  %5946 = vst [vmem:[#allocation39_spill] sm:$0xff] %v4858_v42  ;;  %v2096_v35 = vadd.f32 %v2034_v43, %v2032_v12  ;;  %v2038_v38 = vmul.f32 %v4878_v36, %v4878_v36  ;;  %v2040_v34 = vmul.f32 %v4882_v51, %v4882_v51 }
 0x3cb   :  { %v4902_v41 = vsub.f32 %v4678_v45, %v4814_v33  ;;  %v4906_v50 = vsub.f32 %v4682_v52, %v4814_v33  ;;  %v2042_v61 = vmul.f32 %v4888_v22, %v4888_v22  ;;  %v2044_v29 = vmul.f32 %v4892_v63, %v4892_v63 }
 0x3cc   :  { %v2097_v0 = vadd.f32 %v2096_v35, %v2036_v9  ;;  %v4914_v28 = vsub.f32 %v4786_v19, %v4896_v32  ;;  %v4918_v1 = vsub.f32 %v4792_v16, %v4896_v32  ;;  %v4922_v45 = vsub.f32 %v4798_v39, %v4896_v32 }
 0x3cd   :  { %v4926_v52 = vsub.f32 %v4804_v48, %v4896_v32  ;;  %v4930_v56 = vsub.f32 %v4808_v23, %v4896_v32  ;;  %v4934_v19 = vsub.f32 %v4811_v37, %v4896_v32  ;;  %v4937_v16 = vsub.f32 %v1889_v54, %v4896_v32 }
 0x3ce   :  { %v2098_v10 = vadd.f32 %v2097_v0, %v2038_v38  ;;  %v4941_v39 = vsub.f32 %v4690_v17, %v4814_v33  ;;  %v4944_v49 = vsub.f32 %v1891_v57, %v4896_v32  ;;  %v2046_v48 = vmul.f32 %v4902_v41, %v4902_v41 }
 0x3cf   :  { %5947 = vst [vmem:[#allocation40_spill] sm:$0xff] %v4926_v52  ;;  %5948 = vst [vmem:[#allocation41_spill] sm:$0xff] %v4930_v56  ;;  %v4950_v23 = vsub.f32 %v4653_v3, %v4896_v32  ;;  %v4954_v37 = vsub.f32 %v4648_v2, %v4896_v32  ;;  %v4958_v54 = vsub.f32 %v4694_v60, %v4814_v33 }
 0x3d0   :  { %v2099_v6 = vadd.f32 %v2098_v10, %v2040_v34  ;;  %5949 = vst [vmem:[#allocation42_spill] sm:$0xff] %v4934_v19  ;;  %5950 = vst [vmem:[#allocation46_spill] sm:$0xff] %v4944_v49  ;;  %v2048_v17 = vmul.f32 %v4906_v50, %v4906_v50  ;;  %v4964_v47 = vsub.f32 %v4702_v8, %v4814_v33  ;;  %v5951_v34 = vld [vmem:[#allocation15_spill] sm:$0xff] }
 0x3d1   :  { %v2050_v3 = vmul.f32 %v4941_v39, %v4941_v39  ;;  %v4970_v2 = vsub.f32 %v4655_v11, %v4896_v32  ;;  %v2033_v60 = vmul.f32 %v4950_v23, %v4950_v23  ;;  %v2035_v18 = vmul.f32 %v4954_v37, %v4954_v37 }
 0x3d2   :  { %v2100_v62 = vadd.f32 %v2099_v6, %v2042_v61  ;;  %v4978_v12 = vsub.f32 %v4706_v46, %v4814_v33  ;;  %v2052_v8 = vmul.f32 %v4958_v54, %v4958_v54  ;;  %v4984_v20 = vsub.f32 %v4663_v59, %v4896_v32  ;;  %v5953_v61 = vld [vmem:[#allocation20_spill] sm:$0xff] }
 0x3d3   :  { %v4988_v11 = vsub.f32 %v4714_v27, %v4814_v33  ;;  %v2054_v9 = vmul.f32 %v4964_v47, %v4964_v47  ;;  %v4994_v46 = vsub.f32 %v4668_v26, %v4896_v32  ;;  %v2037_v38 = vmul.f32 %v4970_v2, %v4970_v2 }
 0x3d4   :  { %v2101_v14 = vadd.f32 %v2100_v62, %v2044_v29  ;;  %v2133_v0 = vadd.f32 %v2035_v18, %v2033_v60  ;;  %v5000_v59 = vsub.f32 %v5951_v34, %v4814_v33  ;;  %v2056_v27 = vmul.f32 %v4978_v12, %v4978_v12  ;;  %v5954_v62 = vld [vmem:[#allocation19_spill] sm:$0xff] }
 0x3d5   :  { %v5006_v29 = vsub.f32 %v5953_v61, %v4896_v32  ;;  %v2039_v26 = vmul.f32 %v4984_v20, %v4984_v20  ;;  %v5957_v18 = vld [vmem:[#allocation23_spill] sm:$0xff] }
 0x3d6   :  { %v2102_v57 = vadd.f32 %v2101_v14, %v2046_v48  ;;  %5952 = vst [vmem:[#allocation15_spill] sm:$0xff] %v5000_v59  ;;  %v2134_v6 = vadd.f32 %v2133_v0, %v2037_v38  ;;  %v5012_v48 = vsub.f32 %v5954_v62, %v4814_v33  ;;  %v2058_v14 = vmul.f32 %v4988_v11, %v4988_v11 }
 0x3d7   :  { %v2043_v0 = vmul.f32 %v5006_v29, %v5006_v29 }
 0x3d8   :  { %v2103_v13 = vadd.f32 %v2102_v57, %v2048_v17  ;;  %5955 = vst [vmem:[#allocation20_spill] sm:$0xff] %v5012_v48  ;;  %v5956_v57 = vld [vmem:[#allocation9_spill] sm:$0xff]  ;;  %v2135_v60 = vadd.f32 %v2134_v6, %v2039_v26  ;;  %v2062_v61 = vmul.f32 %v5012_v48, %v5012_v48  ;;  %v5962_v6 = vld [vmem:[#allocation10_spill] sm:$0xff] }
 0x3d9   :  { %v5042_v62 = vsub.f32 %v5962_v6, %v4896_v32  ;;  %v5966_v6 = vld [vmem:[#allocation30_spill] sm:$0xff] }
 0x3da   :  { %v2104_v43 = vadd.f32 %v2103_v13, %v2050_v3  ;;  %v5018_v3 = vsub.f32 %v5956_v57, %v4896_v32  ;;  %v2041_v13 = vmul.f32 %v4994_v46, %v4994_v46  ;;  %v5963_v57 = vld [vmem:[#allocation28_spill] sm:$0xff]  ;;  %v5060_v48 = vsub.f32 %v5966_v6, %v4814_v33 }
 0x3dc   :  { %v2105_v35 = vadd.f32 %v2104_v43, %v2052_v8  ;;  %v5024_v8 = vsub.f32 %v5957_v18, %v4814_v33  ;;  %v2060_v43 = vmul.f32 %v5000_v59, %v5000_v59  ;;  %v2136_v34 = vadd.f32 %v2135_v60, %v2041_v13 }
 0x3dd   :  { %v5048_v18 = vsub.f32 %v5963_v57, %v4814_v33  ;;  %v5968_v57 = vld [vmem:[#allocation11_spill] sm:$0xff] }
 0x3de   :  { %v2106_v10 = vadd.f32 %v2105_v35, %v2054_v9  ;;  %5958 = vst [vmem:[#allocation19_spill] sm:$0xff] %v5024_v8  ;;  %v5959_v35 = vld [vmem:[#allocation22_spill] sm:$0xff]  ;;  %v2064_v13 = vmul.f32 %v5024_v8, %v5024_v8  ;;  %v5066_v8 = vsub.f32 %v5968_v57, %v4896_v32 }
 0x3df   :  { %v5030_v38 = vsub.f32 %v5959_v35, %v4896_v32  ;;  %5964 = vst [vmem:[#allocation23_spill] sm:$0xff] %v5048_v18  ;;  %v5965_v35 = vld [vmem:[#allocation24_spill] sm:$0xff]  ;;  %5967 = vst [vmem:[#allocation22_spill] sm:$0xff] %v5060_v48 }
 0x3e0   :  { %v2107_v17 = vadd.f32 %v2106_v10, %v2056_v27  ;;  %v5960_v27 = vld [vmem:[#allocation26_spill] sm:$0xff] }
 0x3e1   :  { %v5036_v10 = vsub.f32 %v5960_v27, %v4814_v33  ;;  %v5054_v27 = vsub.f32 %v5965_v35, %v4896_v32  ;;  %v2068_v35 = vmul.f32 %v5048_v18, %v5048_v18 }
 0x3e2   :  { %v2108_v9 = vadd.f32 %v2107_v17, %v2058_v14  ;;  %v2045_v14 = vmul.f32 %v5018_v3, %v5018_v3  ;;  %v2137_v17 = vadd.f32 %v2136_v34, %v2043_v0 }
 0x3e3   :  { %5961 = vst [vmem:[#allocation9_spill] sm:$0xff] %v5036_v10  ;;  %v2066_v0 = vmul.f32 %v5036_v10, %v5036_v10  ;;  %v2051_v6 = vmul.f32 %v5054_v27, %v5054_v27  ;;  %v5970_v10 = vld [vmem:[#allocation13_spill] sm:$0xff] }
 0x3e4   :  { %v2109_v26 = vadd.f32 %v2108_v9, %v2060_v43  ;;  %v2047_v43 = vmul.f32 %v5030_v38, %v5030_v38  ;;  %v2138_v9 = vadd.f32 %v2137_v17, %v2045_v14  ;;  %v5969_v17 = vld [vmem:[#allocation12_spill] sm:$0xff]  ;;  %v5082_v59 = vsub.f32 %v5970_v10, %v4896_v32 }
 0x3e5   :  { %v5074_v33 = vsub.f32 %v5969_v17, %v4896_v32  ;;  %v5971_v17 = vld [vmem:[#allocation17_spill] sm:$0xff]  ;;  %v2074_v10 = vmul.f32 %v4822_v4, %v4822_v4 }
 0x3e6   :  { %v2110_v60 = vadd.f32 %v2109_v26, %v2062_v61  ;;  %v2049_v61 = vmul.f32 %v5042_v62, %v5042_v62  ;;  %v2139_v26 = vadd.f32 %v2138_v9, %v2047_v43  ;;  %v2053_v43 = vmul.f32 %v5066_v8, %v5066_v8 }
 0x3e7   :  { %v5090_v18 = vsub.f32 %v5971_v17, %v4896_v32  ;;  %v5973_v17 = vld [vmem:[#allocation25_spill] sm:$0xff] }
 0x3e8   :  { %v2111_v34 = vadd.f32 %v2110_v60, %v2064_v13  ;;  %v2140_v13 = vadd.f32 %v2139_v26, %v2049_v61  ;;  %v2070_v60 = vmul.f32 %v5060_v48, %v5060_v48  ;;  %v2055_v61 = vmul.f32 %v5074_v33, %v5074_v33 }
 0x3ea   :  { %v2112_v14 = vadd.f32 %v2111_v34, %v2066_v0  ;;  %v2141_v9 = vadd.f32 %v2140_v13, %v2051_v6  ;;  %v2072_v0 = vmul.f32 %v4818_v24, %v4818_v24  ;;  %v2057_v6 = vmul.f32 %v5082_v59, %v5082_v59 }
 0x3eb   :  { %v5106_v24 = vsub.f32 %v5973_v17, %v4896_v32  ;;  %v5975_v17 = vld [vmem:[#allocation29_spill] sm:$0xff] }
 0x3ec   :  { %v2113_v57 = vadd.f32 %v2112_v14, %v2068_v35  ;;  %v2142_v26 = vadd.f32 %v2141_v9, %v2053_v43  ;;  %v5972_v14 = vld [vmem:[#allocation21_spill] sm:$0xff]  ;;  %v2059_v43 = vmul.f32 %v5090_v18, %v5090_v18 }
 0x3ed   :  { %v5098_v48 = vsub.f32 %v5972_v14, %v4896_v32  ;;  %v5974_v14 = vld [vmem:[#allocation27_spill] sm:$0xff] }
 0x3ee   :  { %v2114_v34 = vadd.f32 %v2113_v57, %v2070_v60  ;;  %v2143_v13 = vadd.f32 %v2142_v26, %v2055_v61  ;;  %v2076_v60 = vmul.f32 %v4826_v55, %v4826_v55  ;;  %v5114_v4 = vsub.f32 %v5974_v14, %v4896_v32  ;;  %v5976_v14 = vld [vmem:[#allocation14_spill] sm:$0xff] }
 0x3ef   :  { %v2061_v61 = vmul.f32 %v5098_v48, %v5098_v48  ;;  %v5122_v55 = vsub.f32 %v5975_v17, %v4896_v32  ;;  %v5977_v17 = vld [vmem:[#allocation6_spill] sm:$0xff] }
 0x3f0   :  { %v2115_v35 = vadd.f32 %v2114_v34, %v2072_v0  ;;  %v2144_v9 = vadd.f32 %v2143_v13, %v2057_v6  ;;  %v2078_v0 = vmul.f32 %v4830_v53, %v4830_v53  ;;  %v2063_v6 = vmul.f32 %v5106_v24, %v5106_v24 }
 0x3f1   :  { %v5130_v53 = vsub.f32 %v5976_v14, %v4896_v32  ;;  %v5978_v14 = vld [vmem:[#allocation16_spill] sm:$0xff] }
 0x3f2   :  { %v2116_v57 = vadd.f32 %v2115_v35, %v2074_v10  ;;  %v2145_v26 = vadd.f32 %v2144_v9, %v2059_v43  ;;  %v2080_v10 = vmul.f32 %v4834_v15, %v4834_v15  ;;  %v2065_v43 = vmul.f32 %v5114_v4, %v5114_v4 }
 0x3f3   :  { %v5138_v15 = vsub.f32 %v5977_v17, %v4896_v32 }
 0x3f4   :  { %v2117_v34 = vadd.f32 %v2116_v57, %v2076_v60  ;;  %v2146_v13 = vadd.f32 %v2145_v26, %v2061_v61  ;;  %v2082_v60 = vmul.f32 %v4838_v21, %v4838_v21  ;;  %v2067_v61 = vmul.f32 %v5122_v55, %v5122_v55 }
 0x3f5   :  { %v5146_v21 = vsub.f32 %v5978_v14, %v4896_v32 }
 0x3f6   :  { %v2118_v35 = vadd.f32 %v2117_v34, %v2078_v0  ;;  %v2147_v9 = vadd.f32 %v2146_v13, %v2063_v6  ;;  %v2084_v0 = vmul.f32 %v4842_v40, %v4842_v40  ;;  %v2069_v6 = vmul.f32 %v5130_v53, %v5130_v53 }
 0x3f8   :  { %v2119_v57 = vadd.f32 %v2118_v35, %v2080_v10  ;;  %v2148_v26 = vadd.f32 %v2147_v9, %v2065_v43  ;;  %v2086_v10 = vmul.f32 %v4846_v58, %v4846_v58  ;;  %v5979_v9 = vld [vmem:[#allocation7_spill] sm:$0xff] }
 0x3f9   :  { %v5157_v17 = vsub.f32 %v5979_v9, %v4896_v32 }
 0x3fa   :  { %v2120_v34 = vadd.f32 %v2119_v57, %v2082_v60  ;;  %v2149_v13 = vadd.f32 %v2148_v26, %v2067_v61  ;;  %v2088_v60 = vmul.f32 %v4849_v30, %v4849_v30  ;;  %v3258_v57 = vld [vmem:[%s5720_s5 + $0x4] ss:$8 sps:$4 sm:$0xff]   ;;  %v2090_v26 = vmul.f32 %v4852_v44, %v4852_v44 }
 0x3fb   :  { %v3261_v61 = vld [vmem:[%s5720_s5 + $0x44] ss:$8 sps:$4 sm:$0xff]   ;;  %2496 = vmatprep.mubr.bf16.mxu0 %v3258_v57  ;;  %v2075_v40 = vmul.f32 %v5157_v17, %v5157_v17 }
 0x3fc   :  { %v2121_v35 = vadd.f32 %v2120_v34, %v2084_v0  ;;  %v2071_v0 = vmul.f32 %v5138_v15, %v5138_v15  ;;  %v2150_v34 = vadd.f32 %v2149_v13, %v2069_v6  ;;  %v5980_v30 = vld [vmem:[#allocation18_spill] sm:$0xff]  ;;  %2536 = vmatprep.mubr.bf16.mxu1 %v3261_v61  ;;  %v5981_v6 = vld [vmem:[#allocation8_spill] sm:$0xff]  ;;  %v2081_v61 = vmul.f32 %v4914_v28, %v4914_v28 }
 0x3fd   :  { %v5174_v13 = vsub.f32 %v5981_v6, %v4896_v32  ;;  %v2087_v6 = vmul.f32 %v4926_v52, %v4926_v52 }
 0x3fe   :  { %v2122_v43 = vadd.f32 %v2121_v35, %v2086_v10  ;;  %v5168_v10 = vsub.f32 %v5980_v30, %v4896_v32  ;;  %v2073_v35 = vmul.f32 %v5146_v21, %v5146_v21  ;;  %v2151_v9 = vadd.f32 %v2150_v34, %v2071_v0 }
 0x3ff   :  { %v2079_v0 = vmul.f32 %v5174_v13, %v5174_v13  ;;  %v2094_v32 = vmul.f32 %v4858_v42, %v4858_v42 }
 0x400   :  { %v2123_v14 = vadd.f32 %v2122_v43, %v2088_v60  ;;  %v2152_v44 = vadd.f32 %v2151_v9, %v2073_v35  ;;  %v2092_v60 = vmul.f32 %v4855_v25, %v4855_v25  ;;  %v2077_v30 = vmul.f32 %v5168_v10, %v5168_v10 }
 0x401   :  { %v2083_v35 = vmul.f32 %v4918_v1, %v4918_v1 }
 0x402   :  { %v2124_v58 = vadd.f32 %v2123_v14, %v2090_v26  ;;  %v2153_v57 = vadd.f32 %v2152_v44, %v2075_v40  ;;  %v2085_v40 = vmul.f32 %v4922_v45, %v4922_v45 }
 0x404   :  { %v2125_v43 = vadd.f32 %v2124_v58, %v2092_v60  ;;  %v2154_v34 = vadd.f32 %v2153_v57, %v2077_v30  ;;  %v2089_v30 = vmul.f32 %v4930_v56, %v4930_v56 }
 0x406   :  { %v2155_v26 = vadd.f32 %v2154_v34, %v2079_v0  ;;  %v2126_v14 = vadd.f32 %v2125_v43, %v2094_v32  ;;  %v2091_v43 = vmul.f32 %v4934_v19, %v4934_v19  ;;  %v2093_v34 = vmul.f32 %v4937_v16, %v4937_v16 }
 0x408   :  { %v2156_v9 = vadd.f32 %v2155_v26, %v2081_v61  ;;  %v2127_v44 = vrot.slane %v2126_v14, 4  ;;  %v2095_v26 = vmul.f32 %v4944_v49, %v4944_v49 }
 0x40a   :  { %v2157_v58 = vadd.f32 %v2156_v9, %v2083_v35  ;;  %v2128_v25 = vadd.f32 %v2127_v44, %v2126_v14 }
 0x40c   :  { %v2158_v60 = vadd.f32 %v2157_v58, %v2085_v40  ;;  %v2129_v61 = vrot.slane %v2128_v25, 2 }
 0x40e   :  { %v2159_v57 = vadd.f32 %v2158_v60, %v2087_v6  ;;  %v2130_v40 = vadd.f32 %v2129_v61, %v2128_v25 }
 0x410   :  { %v2160_v0 = vadd.f32 %v2159_v57, %v2089_v30  ;;  %v2131_v56 = vrot.slane %v2130_v40, 1 }
 0x412   :  { %v2161_v32 = vadd.f32 %v2160_v0, %v2091_v43  ;;  %v2132_v14 = vadd.f32 %v2131_v56, %v2130_v40 }
 0x414   :  { %v2162_v35 = vadd.f32 %v2161_v32, %v2093_v34  ;;  %v2170_v60 = vmul.f32 0.00390625, %v2132_v14 }
 0x416   :  { %v2163_v9 = vadd.f32 %v2162_v35, %v2095_v26  ;;  %v2172_v30 = vadd.f32 1e-05, %v2170_v60 }
 0x418   :  { %v2164_v58 = vrot.slane %v2163_v9, 4  ;;  %3284 = vrsqrt.f32 %v2172_v30 }
 0x41a   :  { %v2165_v42 = vadd.f32 %v2164_v58, %v2163_v9 }
 0x41c   :  { %v2166_v6 = vrot.slane %v2165_v42, 2 }
 0x41e   :  { %v2167_v44 = vadd.f32 %v2166_v6, %v2165_v42 }
 0x420   :  { %v2168_v19 = vrot.slane %v2167_v44, 1 }
 0x422   :  { %v2169_v57 = vadd.f32 %v2168_v19, %v2167_v44  ;;  %v5202_v0 = vpop.eup %3284 }
 0x423   :  { %v2176_v25 = vmul.f32 %v5202_v0, %v4862_v31  ;;  %v2178_v34 = vmul.f32 %v5202_v0, %v4866_v7  ;;  %v2180_v61 = vmul.f32 %v5202_v0, %v4870_v5  ;;  %v2182_v31 = vmul.f32 %v5202_v0, %v4878_v36 }
 0x424   :  { %v2171_v52 = vmul.f32 0.00390625, %v2169_v57  ;;  %v2184_v5 = vmul.f32 %v5202_v0, %v4882_v51  ;;  %v2186_v36 = vmul.f32 %v5202_v0, %v4888_v22  ;;  %v2190_v51 = vmul.f32 %v5202_v0, %v4902_v41 }
 0x425   :  { %v2256_v7 = vpack.c.bf16 %v2178_v34, %v2176_v25 }
 0x426   :  { %v2173_v43 = vadd.f32 1e-05, %v2171_v52  ;;  %v2260_v9 = vpack.c.bf16 %v2186_v36, %v2184_v5 }
 0x428   :  { %3286 = vrsqrt.f32 %v2173_v43  ;;  %v5983_v43 = vld [vmem:[#allocation20_spill] sm:$0xff] }
 0x432   :  { %v5204_v49 = vpop.eup %3286 }
 0x433   :  { %v2177_v42 = vmul.f32 %v5204_v49, %v4950_v23  ;;  %v2179_v56 = vmul.f32 %v5204_v49, %v4954_v37  ;;  %v2181_v52 = vmul.f32 %v5204_v49, %v4970_v2  ;;  %v2183_v19 = vmul.f32 %v5204_v49, %v4984_v20 }
 0x434   :  { %v2185_v37 = vmul.f32 %v5204_v49, %v4994_v46  ;;  %v2187_v2 = vmul.f32 %v5204_v49, %v5006_v29  ;;  %v2258_v20 = vpack.c.bf16 %v2182_v31, %v2180_v61  ;;  %v2189_v35 = vmul.f32 %v5204_v49, %v5018_v3 }
 0x435   :  { %v2257_v32 = vpack.c.bf16 %v2179_v56, %v2177_v42  ;;  %v2259_v23 = vpack.c.bf16 %v2183_v19, %v2181_v52  ;;  %v2191_v46 = vmul.f32 %v5204_v49, %v5030_v38  ;;  %v2188_v29 = vmul.f32 %v5202_v0, %v4892_v63  ;;  %v5985_v56 = vld [vmem:[#allocation9_spill] sm:$0xff] }
 0x436   :  { %v2261_v26 = vpack.c.bf16 %v2187_v2, %v2185_v37  ;;  %v2193_v40 = vmul.f32 %v5204_v49, %v5042_v62  ;;  %v2195_v3 = vmul.f32 %v5204_v49, %v5054_v27  ;;  %v2192_v38 = vmul.f32 %v5202_v0, %v4906_v50 }
 0x437   :  { %2464 = vmatprep.subr.bf16.mxu0 %v2257_v32  ;;  %3147 = vmatprep.subr.bf16.mxu1 %v2257_v32  ;;  %v2263_v22 = vpack.c.bf16 %v2191_v46, %v2189_v35  ;;  %v2194_v63 = vmul.f32 %v5202_v0, %v4941_v39  ;;  %v2262_v58 = vpack.c.bf16 %v2190_v51, %v2188_v29 }
 0x438   :  { %2465 = vmatpush1.bf16.msra.mxu0 %v2256_v7  ;;  %3163 = vmatpush1.bf16.msra.mxu1 %v2256_v7  ;;  %v2265_v41 = vpack.c.bf16 %v2195_v3, %v2193_v40  ;;  %v2197_v6 = vmul.f32 %v5204_v49, %v5066_v8  ;;  %v2199_v62 = vmul.f32 %v5204_v49, %v5074_v33  ;;  %v5987_v7 = vld [vmem:[#allocation22_spill] sm:$0xff] }
 0x439   :  { %2466 = vmatprep.subr.bf16.mxu0 %v2259_v23  ;;  %3148 = vmatprep.subr.bf16.mxu1 %v2259_v23  ;;  %v2196_v27 = vmul.f32 %v5202_v0, %v4958_v54  ;;  %v2198_v50 = vmul.f32 %v5202_v0, %v4964_v47  ;;  %v2264_v14 = vpack.c.bf16 %v2194_v63, %v2192_v38 }
 0x43a   :  { %v2267_v39 = vpack.c.bf16 %v2199_v62, %v2197_v6  ;;  %v2201_v44 = vmul.f32 %v5204_v49, %v5082_v59  ;;  %v2203_v8 = vmul.f32 %v5204_v49, %v5090_v18  ;;  %v2200_v33 = vmul.f32 %v5202_v0, %v4978_v12  ;;  %v5982_v18 = vld [vmem:[#allocation15_spill] sm:$0xff] }
 0x43b   :  { %v2202_v54 = vmul.f32 %v5202_v0, %v4988_v11  ;;  %v2266_v60 = vpack.c.bf16 %v2198_v50, %v2196_v27  ;;  %v2205_v30 = vmul.f32 %v5204_v49, %v5098_v48  ;;  %v2207_v59 = vmul.f32 %v5204_v49, %v5106_v24  ;;  %v5984_v24 = vld [vmem:[#allocation19_spill] sm:$0xff]  ;;  %v5994_v50 = vld [vmem:[#allocation40_spill] sm:$0xff] }
 0x43c   :  { %2467 = vmatpush1.bf16.msra.mxu0 %v2258_v20  ;;  %3164 = vmatpush1.bf16.msra.mxu1 %v2258_v20  ;;  %v2269_v47 = vpack.c.bf16 %v2203_v8, %v2201_v44  ;;  %v2204_v57 = vmul.f32 %v5202_v0, %v5982_v18  ;;  %v2206_v12 = vmul.f32 %v5202_v0, %v5983_v43  ;;  %v5989_v20 = vld [vmem:[#allocation32_spill] sm:$0xff] }
 0x43d   :  { %2468 = vmatprep.subr.bf16.mxu0 %v2261_v26  ;;  %3149 = vmatprep.subr.bf16.mxu1 %v2261_v26  ;;  %v2268_v25 = vpack.c.bf16 %v2202_v54, %v2200_v33  ;;  %v2271_v11 = vpack.c.bf16 %v2207_v59, %v2205_v30  ;;  %v2209_v34 = vmul.f32 %v5204_v49, %v5114_v4  ;;  %v5997_v54 = vld [vmem:[#allocation41_spill] sm:$0xff]  ;;  %v5999_v30 = vld [vmem:[#allocation38_spill] sm:$0xff]  ;;  %v6000_v18 = vld [vmem:[#allocation44_spill] sm:$0xff] }
 0x43e   :  { %v2211_v48 = vmul.f32 %v5204_v49, %v5122_v55  ;;  %v2208_v42 = vmul.f32 %v5202_v0, %v5984_v24  ;;  %v2210_v52 = vmul.f32 %v5202_v0, %v5985_v56  ;;  %v2270_v19 = vpack.c.bf16 %v2206_v12, %v2204_v57  ;;  %v5986_v55 = vld [vmem:[#allocation23_spill] sm:$0xff] }
 0x43f   :  { %v2213_v61 = vmul.f32 %v5204_v49, %v5130_v53  ;;  %v2215_v4 = vmul.f32 %v5204_v49, %v5138_v15  ;;  %v2212_v31 = vmul.f32 %v5202_v0, %v5986_v55  ;;  %v2214_v23 = vmul.f32 %v5202_v0, %v5987_v7  ;;  %v5988_v15 = vld [vmem:[#allocation31_spill] sm:$0xff] }
 0x440   :  { %2469 = vmatpush1.bf16.msra.mxu0 %v2260_v9  ;;  %3165 = vmatpush1.bf16.msra.mxu1 %v2260_v9  ;;  %v2273_v32 = vpack.c.bf16 %v2211_v48, %v2209_v34  ;;  %v2272_v37 = vpack.c.bf16 %v2210_v52, %v2208_v42  ;;  %v2217_v5 = vmul.f32 %v5204_v49, %v5146_v21  ;;  %v5991_v9 = vld [vmem:[#allocation34_spill] sm:$0xff]  ;;  %v6002_v48 = vld [vmem:[#allocation39_spill] sm:$0xff]  ;;  %v6003_v42 = vld [vmem:[#allocation45_spill] sm:$0xff] }
 0x441   :  { %2470 = vmatprep.subr.bf16.mxu0 %v2263_v22  ;;  %3150 = vmatprep.subr.bf16.mxu1 %v2263_v22  ;;  %v2275_v2 = vpack.c.bf16 %v2215_v4, %v2213_v61  ;;  %v2219_v53 = vmul.f32 %v5204_v49, %v5157_v17  ;;  %v2216_v36 = vmul.f32 %v5202_v0, %v5988_v15  ;;  %v5990_v17 = vld [vmem:[#allocation33_spill] sm:$0xff]  ;;  %v3270_v7 = vld [vmem:[%s5720_s5 + $0x64] ss:$8 sps:$4 sm:$0xff]  }
 0x442   :  { %v2218_v26 = vmul.f32 %v5202_v0, %v5989_v20  ;;  %v2274_v35 = vpack.c.bf16 %v2214_v23, %v2212_v31  ;;  %v2221_v29 = vmul.f32 %v5204_v49, %v5168_v10  ;;  %v2223_v21 = vmul.f32 %v5204_v49, %v5174_v13  ;;  %v5992_v13 = vld [vmem:[#allocation35_spill] sm:$0xff]  ;;  %v3264_v61 = vld [vmem:[%s5720_s5 + $0x54] ss:$8 sps:$4 sm:$0xff]   ;;  %v2312_v20 = vpop.permute.xlu1 %2311 }
 0x443   :  { %v2277_v46 = vpack.c.bf16 %v2219_v53, %v2217_v5  ;;  %v2220_v51 = vmul.f32 %v5202_v0, %v5990_v17  ;;  %v2222_v22 = vmul.f32 %v5202_v0, %v5991_v9  ;;  %v2225_v38 = vmul.f32 %v5204_v49, %v4914_v28  ;;  %v3266_v4 = vld [vmem:[%s5720_s5 + $0x10] ss:$8 sps:$4 sm:$0xff]   ;;  %v3268_v31 = vld [vmem:[%s5720_s5 + $0x24] ss:$8 sps:$4 sm:$0xff]   ;;  %v3272_v23 = vld [vmem:[%s5720_s5 + $0x20] ss:$8 sps:$4 sm:$0xff]  }
 0x444   :  { %2471 = vmatpush1.bf16.msra.mxu0 %v2262_v58  ;;  %3166 = vmatpush1.bf16.msra.mxu1 %v2262_v58  ;;  %v2276_v40 = vpack.c.bf16 %v2218_v26, %v2216_v36  ;;  %v2279_v3 = vpack.c.bf16 %v2223_v21, %v2221_v29  ;;  %v2227_v10 = vmul.f32 %v5204_v49, %v4918_v1  ;;  %v5993_v58 = vld [vmem:[#allocation36_spill] sm:$0xff]  ;;  %v5995_v1 = vld [vmem:[#allocation43_spill] sm:$0xff]  ;;  %v2307_v36 = vpop.permute.xlu0 %2306 }
 0x445   :  { %2472 = vmatprep.subr.bf16.mxu0 %v2265_v41  ;;  %3151 = vmatprep.subr.bf16.mxu1 %v2265_v41  ;;  %v2224_v63 = vmul.f32 %v5202_v0, %v5992_v13  ;;  %v2226_v41 = vmul.f32 %v5202_v0, %v5993_v58  ;;  %v2278_v6 = vpack.c.bf16 %v2222_v22, %v2220_v51  ;;  %v3267_v55 = vld [vmem:[%s5720_s5 + $0x50] ss:$8 sps:$4 sm:$0xff]   ;;  %v3276_v5 = vld [vmem:[%s5720_s5 + $0x74] ss:$8 sps:$4 sm:$0xff]  }
 0x446   :  { %v2281_v62 = vpack.c.bf16 %v2227_v10, %v2225_v38  ;;  %v2229_v27 = vmul.f32 %v5204_v49, %v4922_v45  ;;  %v2231_v28 = vmul.f32 %v5204_v49, %v5994_v50  ;;  %v2232_v59 = vmul.f32 %v5202_v0, %v5999_v30  ;;  %v3278_v53 = vld [vmem:[%s5720_s5 + $0x30] ss:$8 sps:$4 sm:$0xff]  }
 0x447   :  { %v2280_v8 = vpack.c.bf16 %v2226_v41, %v2224_v63  ;;  %v2234_v57 = vmul.f32 %v5202_v0, %v6000_v18  ;;  %v2238_v24 = vmul.f32 %v5202_v0, %v6002_v48  ;;  %v2236_v56 = vmul.f32 %v5202_v0, %v6003_v42  ;;  %v3279_v15 = vld [vmem:[%s5720_s5 + $0x70] ss:$8 sps:$4 sm:$0xff]  }
 0x448   :  { %2473 = vmatpush1.bf16.msra.mxu0 %v2264_v14  ;;  %3167 = vmatpush1.bf16.msra.mxu1 %v2264_v14  ;;  %v2228_v14 = vmul.f32 %v5202_v0, %v5995_v1  ;;  %v2283_v33 = vpack.c.bf16 %v2231_v28, %v2229_v27  ;;  %v2317_v26 = vpop.permute.xlu0 %2316 }
 0x449   :  { %2474 = vmatprep.subr.bf16.mxu0 %v2267_v39  ;;  %3152 = vmatprep.subr.bf16.mxu1 %v2267_v39  ;;  %v5996_v39 = vld [vmem:[#allocation37_spill] sm:$0xff]  ;;  %v2284_v52 = vpack.c.bf16 %v2234_v57, %v2232_v59 }
 0x44a   :  { %v2230_v44 = vmul.f32 %v5202_v0, %v5996_v39  ;;  %v3262_v0 = vld [vmem:[%s5720_s5 + $0x14] ss:$8 sps:$4 sm:$0xff]  }
 0x44c   :  { %2475 = vmatpush1.bf16.msra.mxu0 %v2266_v60  ;;  %3168 = vmatpush1.bf16.msra.mxu1 %v2266_v60  ;;  %v2233_v60 = vmul.f32 %v5204_v49, %v5997_v54  ;;  %v2282_v43 = vpack.c.bf16 %v2230_v44, %v2228_v14 }
 0x44d   :  { %2476 = vmatprep.subr.bf16.mxu0 %v2269_v47  ;;  %3153 = vmatprep.subr.bf16.mxu1 %v2269_v47  ;;  %v5998_v47 = vld [vmem:[#allocation42_spill] sm:$0xff] }
 0x44e   :  { %v2235_v45 = vmul.f32 %v5204_v49, %v5998_v47 }
 0x450   :  { %2477 = vmatpush1.bf16.msra.mxu0 %v2268_v25  ;;  %3169 = vmatpush1.bf16.msra.mxu1 %v2268_v25  ;;  %v2285_v12 = vpack.c.bf16 %v2235_v45, %v2233_v60  ;;  %v2237_v25 = vmul.f32 %v5204_v49, %v4937_v16  ;;  %v2286_v16 = vpack.c.bf16 %v2238_v24, %v2236_v56 }
 0x451   :  { %2478 = vmatprep.subr.bf16.mxu0 %v2271_v11  ;;  %3154 = vmatprep.subr.bf16.mxu1 %v2271_v11  ;;  %v6001_v11 = vld [vmem:[#allocation46_spill] sm:$0xff] }
 0x452   :  { %v2239_v34 = vmul.f32 %v5204_v49, %v6001_v11  ;;  %v3256_v49 = vld [vmem:[%s5720_s5] ss:$8 sps:$4 sm:$0xff]  }
 0x454   :  { %2479 = vmatpush1.bf16.msra.mxu0 %v2270_v19  ;;  %3170 = vmatpush1.bf16.msra.mxu1 %v2270_v19  ;;  %v2287_v19 = vpack.c.bf16 %v2239_v34, %v2237_v25 }
 0x455   :  { %2480 = vmatprep.subr.bf16.mxu0 %v2273_v32  ;;  %3155 = vmatprep.subr.bf16.mxu1 %v2273_v32  ;;  %v3259_v32 = vld [vmem:[%s5720_s5 + $0x40] ss:$8 sps:$4 sm:$0xff]  }
 0x458   :  { %2481 = vmatpush1.bf16.msra.mxu0 %v2272_v37  ;;  %3171 = vmatpush1.bf16.msra.mxu1 %v2272_v37  ;;  %v3273_v37 = vld [vmem:[%s5720_s5 + $0x60] ss:$8 sps:$4 sm:$0xff]  }
 0x459   :  { %2482 = vmatprep.subr.bf16.mxu0 %v2275_v2  ;;  %3156 = vmatprep.subr.bf16.mxu1 %v2275_v2  ;;  %v3274_v2 = vld [vmem:[%s5720_s5 + $0x34] ss:$8 sps:$4 sm:$0xff]   ;;  %s3318_s5 = smov [#allocation3]  }
 0x45a   :  { %s3011_s22 = sshll.u32 %s3318_s5, 4  ;;  %s3012_s22 = int_to_ptr.vmem [resolvable:$true] %s3011_s22 }
 0x45b   :  { %s3292_s23 = scalar_lea.vmem %s3012_s22, 32  ;;  %p3297_p1 = scmp.lt.s32.totalorder %s3012_s22, %s3012_s22 }
 0x45c   :  { %2483 = vmatpush1.bf16.msra.mxu0 %v2274_v35  ;;  %3172 = vmatpush1.bf16.msra.mxu1 %v2274_v35  ;;  %v2322_v35 = vpop.permute.xlu1 %2321  ;;  %p3293_p0 = scmp.ne.s32.totalorder %s3012_s22, %s3292_s23  ;;  %p3298_p2 = scmp.lt.s32.totalorder %s3292_s23, %s3292_s23 }
 0x45d   :  { %2484 = vmatprep.subr.bf16.mxu0 %v2277_v46  ;;  %3157 = vmatprep.subr.bf16.mxu1 %v2277_v46  ;;  %v2327_v46 = vpop.permute.xlu0 %2326 }
 0x45e   :  { %p3299_p3 = por %p3298_p2, %p3297_p1 }
 0x460   :  { %2485 = vmatpush1.bf16.msra.mxu0 %v2276_v40  ;;  %3173 = vmatpush1.bf16.msra.mxu1 %v2276_v40  ;;  %v5376_v29 = vpop.permute.xlu1 %2331  ;;  %p3300_p4 = pnand %p3299_p3, %p3293_p0 }
 0x461   :  { %2486 = vmatprep.subr.bf16.mxu0 %v2279_v3  ;;  %3158 = vmatprep.subr.bf16.mxu1 %v2279_v3  ;;  %v5386_v50 = vpop.permute.xlu0 %2336 }
 0x464   :  { %2487 = vmatpush1.bf16.msra.mxu0 %v2278_v6  ;;  %3174 = vmatpush1.bf16.msra.mxu1 %v2278_v6  ;;  %v5388_v28 = vpop.permute.xlu1 %2341 }
 0x465   :  { %2488 = vmatprep.subr.bf16.mxu0 %v2281_v62  ;;  %3159 = vmatprep.subr.bf16.mxu1 %v2281_v62 }
 0x468   :  { %2489 = vmatpush1.bf16.msra.mxu0 %v2280_v8  ;;  %3175 = vmatpush1.bf16.msra.mxu1 %v2280_v8 }
 0x469   :  { %2490 = vmatprep.subr.bf16.mxu0 %v2283_v33  ;;  %3160 = vmatprep.subr.bf16.mxu1 %v2283_v33 }
 0x46c   :  { %2491 = vmatpush1.bf16.msra.mxu0 %v2282_v43  ;;  %3176 = vmatpush1.bf16.msra.mxu1 %v2282_v43 }
 0x46d   :  { %2492 = vmatprep.subr.bf16.mxu0 %v2285_v12  ;;  %3161 = vmatprep.subr.bf16.mxu1 %v2285_v12 }
 0x470   :  { %2493 = vmatpush1.bf16.msra.mxu0 %v2284_v52  ;;  %3177 = vmatpush1.bf16.msra.mxu1 %v2284_v52 }
 0x471   :  { %2494 = vmatprep.subr.bf16.mxu0 %v2287_v19  ;;  %3162 = vmatprep.subr.bf16.mxu1 %v2287_v19  ;;  %v2347_v19 = vpop.permute.xlu0 %2346 }
 0x474   :  { %2495 = vmatpush1.bf16.msra.mxu0 %v2286_v16  ;;  %3178 = vmatpush1.bf16.msra.mxu1 %v2286_v16  ;;  %v2352_v16 = vpop.permute.xlu1 %2351 }
 0x477   :  { %2497 = vmatmul.mubr.bf16.vlgmr.msra.gmra.mrb[64].mxu0 %v3256_v49  ;;  %2537 = vmatmul.mubr.bf16.vlgmr.msra.gmra.mrb[64].mxu1 %v3259_v32 }
 0x478   :  { %2506 = vmatprep.mubr.bf16.mxu0 %v3262_v0  ;;  %2546 = vmatprep.mubr.bf16.mxu1 %v3264_v61 }
 0x47f   :  { %2507 = vmatmul.mubr.bf16.gmra.mrb[68].mxu0 %v3266_v4  ;;  %2547 = vmatmul.mubr.bf16.gmra.mrb[68].mxu1 %v3267_v55 }
 0x480   :  { %2516 = vmatprep.mubr.bf16.mxu0 %v3268_v31  ;;  %2556 = vmatprep.mubr.bf16.mxu1 %v3270_v7 }
 0x487   :  { %2517 = vmatmul.mubr.bf16.gmra.mrb[72].mxu0 %v3272_v23  ;;  %2557 = vmatmul.mubr.bf16.gmra.mrb[72].mxu1 %v3273_v37 }
 0x488   :  { %2526 = vmatprep.mubr.bf16.mxu0 %v3274_v2  ;;  %2566 = vmatprep.mubr.bf16.mxu1 %v3276_v5 }
 0x48f   :  { %2527 = vmatmul.mubr.bf16.gmra.mrb[76].mxu0 %v3278_v53  ;;  %2567 = vmatmul.mubr.bf16.gmra.mrb[76].mxu1 %v3279_v15 }
 0x54a   :  { %v2498_v21 = vpop.f32.mrb[64].mxu0  ;;  %v5378_v17 = vpop.f32.mrb[64].mxu1 }
 0x54b   :  { %v2499_v51 = vadd.f32 %v2498_v21, %v2307_v36  ;;  %v2500_v9 = vpop.f32.mrb[65].mxu0  ;;  %v5380_v22 = vpop.f32.mrb[65].mxu1 }
 0x54c   :  { %v2501_v40 = vadd.f32 %v2500_v9, %v2307_v36  ;;  %v2502_v3 = vpop.f32.mrb[66].mxu0  ;;  %v5382_v38 = vpop.f32.mrb[66].mxu1 }
 0x54d   :  { %v2577_v10 = vmul.f32 0.01, %v2499_v51  ;;  %v2503_v13 = vadd.f32 %v2502_v3, %v2312_v20  ;;  %v2504_v63 = vpop.f32.mrb[67].mxu0  ;;  %v5384_v58 = vpop.f32.mrb[67].mxu1 }
 0x54e   :  { %v2578_v41 = vmul.f32 0.01, %v2501_v40  ;;  %v2505_v6 = vadd.f32 %v2504_v63, %v2312_v20 }
 0x54f   :  { %v2579_v62 = vmul.f32 0.01, %v2503_v13  ;;  %v5390_v1 = vmax.f32 %v2499_v51, %v2577_v10 }
 0x550   :  { %v2580_v27 = vmul.f32 0.01, %v2505_v6  ;;  %v5394_v39 = vmax.f32 %v2501_v40, %v2578_v41 }
 0x551   :  { %v5392_v14 = vmax.f32 %v2503_v13, %v2579_v62  ;;  %v2357_v13 = vpop.permute.xlu0 %2356 }
 0x552   :  { %v5396_v44 = vmax.f32 %v2505_v6, %v2580_v27  ;;  %v2508_v8 = vpop.f32.mrb[68].mxu0  ;;  %v5398_v33 = vpop.f32.mrb[68].mxu1 }
 0x553   :  { %v2641_v54 = vadd.f32 %v5392_v14, %v5390_v1  ;;  %v2509_v60 = vadd.f32 %v2508_v8, %v2317_v26  ;;  %v2510_v47 = vpop.f32.mrb[69].mxu0  ;;  %v5402_v45 = vpop.f32.mrb[69].mxu1 }
 0x554   :  { %v2662_v30 = vadd.f32 %v5396_v44, %v5394_v39  ;;  %v2511_v59 = vadd.f32 %v2510_v47, %v2317_v26  ;;  %v2512_v18 = vpop.f32.mrb[70].mxu0  ;;  %v5406_v57 = vpop.f32.mrb[70].mxu1 }
 0x555   :  { %v2581_v43 = vmul.f32 0.01, %v2509_v60  ;;  %v2513_v12 = vadd.f32 %v2512_v18, %v2322_v35  ;;  %v2514_v25 = vpop.f32.mrb[71].mxu0  ;;  %v5408_v11 = vpop.f32.mrb[71].mxu1 }
 0x556   :  { %v2582_v34 = vmul.f32 0.01, %v2511_v59  ;;  %v2515_v48 = vadd.f32 %v2514_v25, %v2322_v35 }
 0x557   :  { %v5410_v24 = vmax.f32 %v2509_v60, %v2581_v43  ;;  %v2583_v42 = vmul.f32 0.01, %v2513_v12 }
 0x558   :  { %v5412_v56 = vmax.f32 %v2511_v59, %v2582_v34  ;;  %v2584_v52 = vmul.f32 0.01, %v2515_v48  ;;  %v2541_v59 = vadd.f32 %v5380_v22, %v2347_v19  ;;  %v2543_v34 = vadd.f32 %v5382_v38, %v2352_v16 }
 0x559   :  { %v2642_v49 = vadd.f32 %v2641_v54, %v5410_v24  ;;  %v5415_v32 = vmax.f32 %v2513_v12, %v2583_v42  ;;  %v2549_v22 = vadd.f32 %v5398_v33, %v2357_v13  ;;  %v2551_v38 = vadd.f32 %v5402_v45, %v2357_v13 }
 0x55a   :  { %v2663_v0 = vadd.f32 %v2662_v30, %v5412_v56  ;;  %v5418_v61 = vmax.f32 %v2515_v48, %v2584_v52  ;;  %v2518_v4 = vpop.f32.mrb[72].mxu0  ;;  %v5420_v55 = vpop.f32.mrb[72].mxu1 }
 0x55b   :  { %v2643_v31 = vadd.f32 %v2642_v49, %v5415_v32  ;;  %v2519_v7 = vadd.f32 %v2518_v4, %v2327_v46  ;;  %v2520_v23 = vpop.f32.mrb[73].mxu0  ;;  %v5423_v37 = vpop.f32.mrb[73].mxu1  ;;  %v2545_v49 = vadd.f32 %v5384_v58, %v2352_v16  ;;  %v2597_v45 = vmul.f32 0.01, %v2549_v22 }
 0x55c   :  { %v2664_v2 = vadd.f32 %v2663_v0, %v5418_v61  ;;  %v2521_v5 = vadd.f32 %v2520_v23, %v2327_v46  ;;  %v2522_v53 = vpop.f32.mrb[74].mxu0  ;;  %v5426_v15 = vpop.f32.mrb[74].mxu1  ;;  %v2594_v23 = vmul.f32 0.01, %v2541_v59  ;;  %v2598_v13 = vmul.f32 0.01, %v2551_v38 }
 0x55d   :  { %v2585_v36 = vmul.f32 0.01, %v2519_v7  ;;  %v2523_v20 = vadd.f32 %v2522_v53, %v5376_v29  ;;  %v2524_v26 = vpop.f32.mrb[75].mxu0  ;;  %v5429_v35 = vpop.f32.mrb[75].mxu1  ;;  %v2595_v53 = vmul.f32 0.01, %v2543_v34 }
 0x55e   :  { %v2586_v21 = vmul.f32 0.01, %v2521_v5  ;;  %v2525_v51 = vadd.f32 %v2524_v26, %v5376_v29  ;;  %v2362_v46 = vpop.permute.xlu1 %2361  ;;  %v2539_v29 = vadd.f32 %v5378_v17, %v2347_v19 }
 0x55f   :  { %v5432_v9 = vmax.f32 %v2519_v7, %v2585_v36  ;;  %v2587_v40 = vmul.f32 0.01, %v2523_v20  ;;  %v2367_v7 = vpop.permute.xlu0 %2366  ;;  %v2553_v36 = vadd.f32 %v5406_v57, %v2362_v46  ;;  %v2555_v33 = vadd.f32 %v5408_v11, %v2362_v46 }
 0x560   :  { %v5434_v3 = vmax.f32 %v2521_v5, %v2586_v21  ;;  %v2588_v10 = vmul.f32 0.01, %v2525_v51  ;;  %v5470_v57 = vmax.f32 %v2541_v59, %v2594_v23 }
 0x561   :  { %v2644_v63 = vadd.f32 %v2643_v31, %v5432_v9  ;;  %v5437_v41 = vmax.f32 %v2523_v20, %v2587_v40  ;;  %v2593_v31 = vmul.f32 0.01, %v2539_v29  ;;  %v2596_v20 = vmul.f32 0.01, %v2545_v49 }
 0x562   :  { %v2665_v6 = vadd.f32 %v2664_v2, %v5434_v3  ;;  %v5440_v62 = vmax.f32 %v2525_v51, %v2588_v10  ;;  %v2528_v27 = vpop.f32.mrb[76].mxu0  ;;  %v2568_v8 = vpop.f32.mrb[76].mxu1  ;;  %v2559_v40 = vadd.f32 %v5420_v55, %v2367_v7  ;;  %v2599_v11 = vmul.f32 0.01, %v2553_v36 }
 0x563   :  { %v2645_v54 = vadd.f32 %v2644_v63, %v5437_v41  ;;  %v2529_v60 = vadd.f32 %v2528_v27, %v5386_v50  ;;  %v2530_v47 = vpop.f32.mrb[77].mxu0  ;;  %v2570_v30 = vpop.f32.mrb[77].mxu1  ;;  %v5466_v51 = vmax.f32 %v2539_v29, %v2593_v31  ;;  %v2561_v63 = vadd.f32 %v5423_v37, %v2367_v7 }
 0x564   :  { %v2666_v18 = vadd.f32 %v2665_v6, %v5440_v62  ;;  %v2531_v43 = vadd.f32 %v2530_v47, %v5386_v50  ;;  %v2532_v12 = vpop.f32.mrb[78].mxu0  ;;  %v2572_v25 = vpop.f32.mrb[78].mxu1  ;;  %v5474_v27 = vmax.f32 %v2543_v34, %v2595_v53  ;;  %v2600_v55 = vmul.f32 0.01, %v2555_v33 }
 0x565   :  { %v2589_v48 = vmul.f32 0.01, %v2529_v60  ;;  %v2533_v42 = vadd.f32 %v2532_v12, %v5388_v28  ;;  %v2534_v17 = vpop.f32.mrb[79].mxu0  ;;  %v2574_v52 = vpop.f32.mrb[79].mxu1  ;;  %v2601_v37 = vmul.f32 0.01, %v2559_v40 }
 0x566   :  { %v2590_v0 = vmul.f32 0.01, %v2531_v43  ;;  %v2535_v4 = vadd.f32 %v2534_v17, %v5388_v28  ;;  %v2372_v28 = vpop.permute.xlu1 %2371  ;;  %v5489_v31 = vmax.f32 %v2555_v33, %v2600_v55 }
 0x567   :  { %v5453_v19 = vmax.f32 %v2529_v60, %v2589_v48  ;;  %v2591_v50 = vmul.f32 0.01, %v2533_v42  ;;  %v2563_v46 = vadd.f32 %v5426_v15, %v2372_v28  ;;  %v5478_v60 = vmax.f32 %v2545_v49, %v2596_v20 }
 0x568   :  { %v5456_v2 = vmax.f32 %v2531_v43, %v2590_v0  ;;  %v2592_v5 = vmul.f32 0.01, %v2535_v4  ;;  %v2565_v47 = vadd.f32 %v5429_v35, %v2372_v28  ;;  %v5485_v48 = vmax.f32 %v2551_v38, %v2598_v13 }
 0x569   :  { %v2646_v58 = vadd.f32 %v2645_v54, %v5453_v19  ;;  %v5460_v16 = vmax.f32 %v2533_v42, %v2591_v50  ;;  %v2377_v54 = vpop.permute.xlu0 %2376  ;;  %v2602_v15 = vmul.f32 0.01, %v2561_v63  ;;  %v2631_v49 = vmax.f32 %v2553_v36, %v2599_v11 }
 0x56a   :  { %v2667_v26 = vadd.f32 %v2666_v18, %v5456_v2  ;;  %v5464_v21 = vmax.f32 %v2535_v4, %v2592_v5  ;;  %v5482_v18 = vmax.f32 %v2549_v22, %v2597_v45  ;;  %v2569_v43 = vadd.f32 %v2568_v8, %v2377_v54  ;;  %v2382_v34 = vpop.permute.xlu1 %2381 }
 0x56b   :  { %v2647_v10 = vadd.f32 %v2646_v58, %v5460_v16  ;;  %v2571_v42 = vadd.f32 %v2570_v30, %v2377_v54  ;;  %v2603_v0 = vmul.f32 0.01, %v2563_v46  ;;  %v2573_v35 = vadd.f32 %v2572_v25, %v2382_v34 }
 0x56c   :  { %v2668_v6 = vadd.f32 %v2667_v26, %v5464_v21  ;;  %v2604_v22 = vmul.f32 0.01, %v2565_v47  ;;  %v2575_v8 = vadd.f32 %v2574_v52, %v2382_v34  ;;  %v2633_v7 = vmax.f32 %v2559_v40, %v2601_v37 }
 0x56d   :  { %v2648_v29 = vadd.f32 %v2647_v10, %v5466_v51  ;;  %v2605_v23 = vmul.f32 0.01, %v2569_v43  ;;  %v5492_v38 = vmax.f32 %v2561_v63, %v2602_v15  ;;  %v2606_v53 = vmul.f32 0.01, %v2571_v42 }
 0x56e   :  { %v2669_v59 = vadd.f32 %v2668_v6, %v5470_v57  ;;  %v2635_v58 = vmax.f32 %v2563_v46, %v2603_v0  ;;  %v2607_v36 = vmul.f32 0.01, %v2573_v35  ;;  %v5495_v20 = vmax.f32 %v2565_v47, %v2604_v22  ;;  %v5507_v34 = vpop.permute.xlu1 %2817 }
 0x56f   :  { %v2649_v12 = vadd.f32 %v2648_v29, %v5474_v27  ;;  %v2608_v25 = vmul.f32 0.01, %v2575_v8  ;;  %v2637_v26 = vmax.f32 %v2569_v43, %v2605_v23  ;;  %v5498_v10 = vmax.f32 %v2571_v42, %v2606_v53  ;;  %v5505_v43 = vpop.permute.xlu0 %2812 }
 0x570   :  { %v2670_v17 = vadd.f32 %v2669_v59, %v5478_v60  ;;  %v2639_v40 = vmax.f32 %v2573_v35, %v2607_v36 }
 0x571   :  { %v2650_v4 = vadd.f32 %v2649_v12, %v5482_v18  ;;  %v5501_v63 = vmax.f32 %v2575_v8, %v2608_v25 }
 0x572   :  { %v2671_v50 = vadd.f32 %v2670_v17, %v5485_v48  ;;  %v5511_v22 = vpop.permute.xlu1 %2827 }
 0x573   :  { %v2651_v5 = vadd.f32 %v2650_v4, %v2631_v49  ;;  %v5509_v0 = vpop.permute.xlu0 %2822 }
 0x574   :  { %v2672_v30 = vadd.f32 %v2671_v50, %v5489_v31 }
 0x575   :  { %v2652_v28 = vadd.f32 %v2651_v5, %v2633_v7 }
 0x576   :  { %v2673_v33 = vadd.f32 %v2672_v30, %v5492_v38 }
 0x577   :  { %v2653_v45 = vadd.f32 %v2652_v28, %v2635_v58 }
 0x578   :  { %v2674_v52 = vadd.f32 %v2673_v33, %v5495_v20 }
 0x579   :  { %v2654_v13 = vadd.f32 %v2653_v45, %v2637_v26 }
 0x57a   :  { %v2675_v6 = vadd.f32 %v2674_v52, %v5498_v10 }
 0x57b   :  { %v2655_v11 = vadd.f32 %v2654_v13, %v2639_v40 }
 0x57c   :  { %v2676_v46 = vadd.f32 %v2675_v6, %v5501_v63 }
 0x57d   :  { %v2656_v29 = vrot.slane %v2655_v11, 4 }
 0x57e   :  { %v2677_v54 = vrot.slane %v2676_v46, 4 }
 0x57f   :  { %v2657_v55 = vadd.f32 %v2656_v29, %v2655_v11 }
 0x580   :  { %v2678_v47 = vadd.f32 %v2677_v54, %v2676_v46 }
 0x581   :  { %v2658_v59 = vrot.slane %v2657_v55, 2 }
 0x582   :  { %v2679_v37 = vrot.slane %v2678_v47, 2 }
 0x583   :  { %v2659_v12 = vadd.f32 %v2658_v59, %v2657_v55 }
 0x584   :  { %v2680_v42 = vadd.f32 %v2679_v37, %v2678_v47 }
 0x585   :  { %v2660_v15 = vrot.slane %v2659_v12, 1 }
 0x586   :  { %v2681_v35 = vrot.slane %v2680_v42, 1 }
 0x587   :  { %v2661_v17 = vadd.f32 %v2660_v15, %v2659_v12 }
 0x588   :  { %v2682_v45 = vadd.f32 %v2681_v35, %v2680_v42 }
 0x589   :  { %v2684_v4 = vmul.f32 0.0078125, %v2661_v17 }
 0x58a   :  { %v2685_v13 = vmul.f32 0.0078125, %v2682_v45 }
 0x58b   :  { %v2686_v50 = vsub.f32 %v5390_v1, %v2684_v4  ;;  %v2688_v8 = vsub.f32 %v5392_v14, %v2684_v4  ;;  %v2690_v23 = vsub.f32 %v5410_v24, %v2684_v4  ;;  %v2692_v5 = vsub.f32 %v5415_v32, %v2684_v4 }
 0x58c   :  { %v2694_v53 = vsub.f32 %v5432_v9, %v2684_v4  ;;  %v2696_v30 = vsub.f32 %v5437_v41, %v2684_v4  ;;  %v2698_v36 = vsub.f32 %v5453_v19, %v2684_v4  ;;  %v5521_v28 = vsub.f32 %v5460_v16, %v2684_v4  ;;  %v5542_v16 = vpop.permute.xlu0 %2832 }
 0x58d   :  { %v5524_v25 = vsub.f32 %v5466_v51, %v2684_v4  ;;  %v5527_v1 = vsub.f32 %v5474_v27, %v2684_v4  ;;  %v5530_v14 = vsub.f32 %v5482_v18, %v2684_v4  ;;  %v5532_v24 = vsub.f32 %v2631_v49, %v2684_v4  ;;  %v5544_v27 = vpop.permute.xlu1 %2837 }
 0x58e   :  { %v5534_v32 = vsub.f32 %v2633_v7, %v2684_v4  ;;  %v5536_v9 = vsub.f32 %v2635_v58, %v2684_v4  ;;  %v5538_v41 = vsub.f32 %v2637_v26, %v2684_v4  ;;  %v5540_v19 = vsub.f32 %v2639_v40, %v2684_v4 }
 0x58f   :  { %v2718_v51 = vmul.f32 %v2686_v50, %v2686_v50  ;;  %v2720_v33 = vmul.f32 %v2688_v8, %v2688_v8  ;;  %v2722_v52 = vmul.f32 %v2690_v23, %v2690_v23  ;;  %v2890_v49 = vmul.f32 %v5505_v43, %v2686_v50 }
 0x590   :  { %v2892_v7 = vmul.f32 %v5507_v34, %v2688_v8  ;;  %v5548_v58 = vpop.permute.xlu0 %2842  ;;  %v2724_v26 = vmul.f32 %v2692_v5, %v2692_v5  ;;  %v2726_v40 = vmul.f32 %v2694_v53, %v2694_v53  ;;  %v2728_v11 = vmul.f32 %v2696_v30, %v2696_v30 }
 0x591   :  { %v2750_v18 = vadd.f32 %v2720_v33, %v2718_v51  ;;  %v2730_v46 = vmul.f32 %v2698_v36, %v2698_v36  ;;  %v2894_v29 = vmul.f32 %v5509_v0, %v2690_v23  ;;  %v5551_v54 = vpop.permute.xlu1 %2847  ;;  %v2896_v47 = vmul.f32 %v5511_v22, %v2692_v5 }
 0x592   :  { %v2898_v59 = vmul.f32 %v5542_v16, %v2694_v53  ;;  %v2922_v37 = vadd.f32 %v2892_v7, %v2890_v49  ;;  %v2687_v12 = vsub.f32 %v5394_v39, %v2685_v13  ;;  %v2689_v15 = vsub.f32 %v5396_v44, %v2685_v13 }
 0x593   :  { %v2751_v6 = vadd.f32 %v2750_v18, %v2722_v52  ;;  %v5558_v42 = vsub.f32 %v5412_v56, %v2685_v13  ;;  %v5561_v17 = vsub.f32 %v5418_v61, %v2685_v13  ;;  %v5564_v50 = vsub.f32 %v5434_v3, %v2685_v13 }
 0x594   :  { %v2923_v35 = vadd.f32 %v2922_v37, %v2894_v29  ;;  %v5567_v8 = vsub.f32 %v5440_v62, %v2685_v13  ;;  %v5570_v23 = vsub.f32 %v5456_v2, %v2685_v13  ;;  %v5573_v39 = vsub.f32 %v5464_v21, %v2685_v13  ;;  %v5581_v61 = vpop.permute.xlu0 %2852 }
 0x595   :  { %v2752_v55 = vadd.f32 %v2751_v6, %v2724_v26  ;;  %v5576_v44 = vsub.f32 %v5470_v57, %v2685_v13  ;;  %v5579_v56 = vsub.f32 %v5478_v60, %v2685_v13  ;;  %v5584_v53 = vsub.f32 %v5485_v48, %v2685_v13  ;;  %v5601_v51 = vpop.permute.xlu1 %2857 }
 0x596   :  { %v2924_v3 = vadd.f32 %v2923_v35, %v2896_v47  ;;  %v5587_v62 = vsub.f32 %v5489_v31, %v2685_v13  ;;  %v5590_v2 = vsub.f32 %v5492_v38, %v2685_v13  ;;  %v5593_v21 = vsub.f32 %v5495_v20, %v2685_v13 }
 0x597   :  { %v2753_v4 = vadd.f32 %v2752_v55, %v2726_v40  ;;  %v5596_v57 = vsub.f32 %v5498_v10, %v2685_v13  ;;  %v5599_v60 = vsub.f32 %v5501_v63, %v2685_v13  ;;  %v2732_v48 = vmul.f32 %v5521_v28, %v5521_v28 }
 0x598   :  { %v2900_v31 = vmul.f32 %v5544_v27, %v2696_v30  ;;  %v2925_v45 = vadd.f32 %v2924_v3, %v2898_v59  ;;  %v2719_v38 = vmul.f32 %v2687_v12, %v2687_v12  ;;  %v2721_v52 = vmul.f32 %v2689_v15, %v2689_v15  ;;  %v5609_v63 = vpop.permute.xlu0 %2862 }
 0x599   :  { %v2754_v5 = vadd.f32 %v2753_v4, %v2728_v11  ;;  %v2734_v20 = vmul.f32 %v5524_v25, %v5524_v25  ;;  %v2902_v10 = vmul.f32 %v5548_v58, %v2698_v36  ;;  %v2736_v7 = vmul.f32 %v5527_v1, %v5527_v1  ;;  %v5617_v11 = vpop.permute.xlu1 %2867 }
 0x59a   :  { %v2926_v49 = vadd.f32 %v2925_v45, %v2900_v31  ;;  %v2904_v26 = vmul.f32 %v5551_v54, %v5521_v28  ;;  %v2723_v6 = vmul.f32 %v5558_v42, %v5558_v42  ;;  %v2771_v40 = vadd.f32 %v2721_v52, %v2719_v38 }
 0x59b   :  { %v2755_v33 = vadd.f32 %v2754_v5, %v2730_v46  ;;  %v2738_v36 = vmul.f32 %v5530_v14, %v5530_v14  ;;  %v2906_v29 = vmul.f32 %v5581_v61, %v5524_v25  ;;  %v2740_v47 = vmul.f32 %v5532_v24, %v5532_v24 }
 0x59c   :  { %v2927_v30 = vadd.f32 %v2926_v49, %v2902_v10  ;;  %v2908_v28 = vmul.f32 %v5601_v51, %v5527_v1  ;;  %v2725_v59 = vmul.f32 %v5561_v17, %v5561_v17  ;;  %v2772_v37 = vadd.f32 %v2771_v40, %v2723_v6 }
 0x59d   :  { %v2756_v18 = vadd.f32 %v2755_v33, %v2732_v48  ;;  %v2891_v5 = vmul.f32 %v5505_v43, %v2687_v12  ;;  %v2893_v3 = vmul.f32 %v5507_v34, %v2689_v15  ;;  %v2727_v25 = vmul.f32 %v5564_v50, %v5564_v50  ;;  %v5633_v33 = vpop.permute.xlu0 %2872  ;;  %v5645_v15 = vpop.permute.xlu1 %2877 }
 0x59e   :  { %v2928_v55 = vadd.f32 %v2927_v30, %v2904_v26  ;;  %v2773_v48 = vadd.f32 %v2772_v37, %v2725_v59  ;;  %v2742_v31 = vmul.f32 %v5534_v32, %v5534_v32  ;;  %v2910_v45 = vmul.f32 %v5609_v63, %v5530_v14 }
 0x59f   :  { %v2757_v13 = vadd.f32 %v2756_v18, %v2734_v20  ;;  %v2744_v52 = vmul.f32 %v5536_v9, %v5536_v9  ;;  %v2912_v43 = vmul.f32 %v5617_v11, %v5532_v24  ;;  %v2729_v34 = vmul.f32 %v5567_v8, %v5567_v8 }
 0x5a0   :  { %v2929_v35 = vadd.f32 %v2928_v55, %v2906_v29  ;;  %v2774_v12 = vadd.f32 %v2773_v48, %v2727_v25  ;;  %v2895_v10 = vmul.f32 %v5509_v0, %v5558_v42  ;;  %v2943_v49 = vadd.f32 %v2893_v3, %v2891_v5 }
 0x5a1   :  { %v2758_v46 = vadd.f32 %v2757_v13, %v2736_v7  ;;  %v2746_v14 = vmul.f32 %v5538_v41, %v5538_v41  ;;  %v2914_v7 = vmul.f32 %v5633_v33, %v5534_v32  ;;  %v2731_v24 = vmul.f32 %v5570_v23, %v5570_v23  ;;  %v2888_v37 = vpop.permute.xlu1 %2887 }
 0x5a2   :  { %v2930_v38 = vadd.f32 %v2929_v35, %v2908_v28  ;;  %v2775_v13 = vadd.f32 %v2774_v12, %v2729_v34  ;;  %v2897_v6 = vmul.f32 %v5511_v22, %v5561_v17  ;;  %v2944_v40 = vadd.f32 %v2943_v49, %v2895_v10 }
 0x5a3   :  { %v2759_v4 = vadd.f32 %v2758_v46, %v2738_v36  ;;  %v2748_v0 = vmul.f32 %v5540_v19, %v5540_v19  ;;  %v2916_v42 = vmul.f32 %v5645_v15, %v5536_v9  ;;  %v2733_v36 = vmul.f32 %v5573_v39, %v5573_v39  ;;  %v2883_v46 = vpop.permute.xlu0 %2882 }
 0x5a4   :  { %v2931_v18 = vadd.f32 %v2930_v38, %v2910_v45  ;;  %v2776_v32 = vadd.f32 %v2775_v13, %v2731_v24  ;;  %v2945_v28 = vadd.f32 %v2944_v40, %v2897_v6  ;;  %v2918_v22 = vmul.f32 %v2883_v46, %v5538_v41 }
 0x5a5   :  { %v2760_v1 = vadd.f32 %v2759_v4, %v2740_v47  ;;  %v2899_v47 = vmul.f32 %v5542_v16, %v5564_v50  ;;  %v2735_v17 = vmul.f32 %v5576_v44, %v5576_v44  ;;  %v2901_v35 = vmul.f32 %v5544_v27, %v5567_v8 }
 0x5a6   :  { %v2932_v30 = vadd.f32 %v2931_v18, %v2912_v43  ;;  %v2777_v59 = vadd.f32 %v2776_v32, %v2733_v36  ;;  %v2920_v3 = vmul.f32 %v2888_v37, %v5540_v19  ;;  %v2737_v25 = vmul.f32 %v5579_v56, %v5579_v56 }
 0x5a7   :  { %v2761_v20 = vadd.f32 %v2760_v1, %v2742_v31  ;;  %v2946_v5 = vadd.f32 %v2945_v28, %v2899_v47  ;;  %v2903_v41 = vmul.f32 %v5548_v58, %v5570_v23  ;;  %v2739_v1 = vmul.f32 %v5584_v53, %v5584_v53 }
 0x5a8   :  { %v2933_v55 = vadd.f32 %v2932_v30, %v2914_v7  ;;  %v2778_v16 = vadd.f32 %v2777_v59, %v2735_v17  ;;  %v2905_v27 = vmul.f32 %v5551_v54, %v5573_v39  ;;  %v2741_v8 = vmul.f32 %v5587_v62, %v5587_v62 }
 0x5a9   :  { %v2762_v26 = vadd.f32 %v2761_v20, %v2744_v52  ;;  %v2947_v31 = vadd.f32 %v2946_v5, %v2901_v35  ;;  %v2907_v12 = vmul.f32 %v5581_v61, %v5576_v44  ;;  %v2743_v20 = vmul.f32 %v5590_v2, %v5590_v2 }
 0x5aa   :  { %v2934_v9 = vadd.f32 %v2933_v55, %v2916_v42  ;;  %v2779_v45 = vadd.f32 %v2778_v16, %v2737_v25  ;;  %v2909_v49 = vmul.f32 %v5601_v51, %v5579_v56  ;;  %v2745_v39 = vmul.f32 %v5593_v21, %v5593_v21 }
 0x5ab   :  { %v2763_v29 = vadd.f32 %v2762_v26, %v2746_v14  ;;  %v2948_v19 = vadd.f32 %v2947_v31, %v2903_v41  ;;  %v2911_v24 = vmul.f32 %v5609_v63, %v5584_v53  ;;  %v2747_v13 = vmul.f32 %v5596_v57, %v5596_v57 }
 0x5ac   :  { %v2935_v48 = vadd.f32 %v2934_v9, %v2918_v22  ;;  %v2780_v43 = vadd.f32 %v2779_v45, %v2739_v1  ;;  %v2913_v6 = vmul.f32 %v5617_v11, %v5587_v62  ;;  %v2749_v51 = vmul.f32 %v5599_v60, %v5599_v60 }
 0x5ad   :  { %v2764_v4 = vadd.f32 %v2763_v29, %v2748_v0  ;;  %v2949_v58 = vadd.f32 %v2948_v19, %v2905_v27  ;;  %v2915_v42 = vmul.f32 %v5633_v33, %v5590_v2  ;;  %v2917_v29 = vmul.f32 %v5645_v15, %v5593_v21 }
 0x5ae   :  { %v2936_v52 = vadd.f32 %v2935_v48, %v2920_v3  ;;  %v2781_v18 = vadd.f32 %v2780_v43, %v2741_v8  ;;  %v2919_v62 = vmul.f32 %v2883_v46, %v5596_v57  ;;  %v2921_v17 = vmul.f32 %v2888_v37, %v5599_v60 }
 0x5af   :  { %v2765_v50 = vrot.slane %v2764_v4, 4  ;;  %v2950_v54 = vadd.f32 %v2949_v58, %v2907_v12  ;;  %v2976_v48 = vlaneseq  ;;  %v3317_v1 = vmov 1966171168  }
 0x5b0   :  { %v2937_v23 = vrot.slane %v2936_v52, 4  ;;  %v2782_v14 = vadd.f32 %v2781_v18, %v2743_v20  ;;  %v2986_v45 = vunpack.c.l.s4 %v3317_v1 }
 0x5b1   :  { %v2766_v38 = vadd.f32 %v2765_v50, %v2764_v4  ;;  %v2951_v44 = vadd.f32 %v2950_v54, %v2909_v49  ;;  %v2977_v41 = vshrl.u32 %v2976_v48, 7  ;;  %vm3002_vm1 = vcmp.lt.s32.totalorder %v2976_v48, 256 }
 0x5b2   :  { %v2938_v61 = vadd.f32 %v2937_v23, %v2936_v52  ;;  %v2783_v26 = vadd.f32 %v2782_v14, %v2745_v39  ;;  %v2987_v19 = vunpack.c.0.s8 %v2986_v45 }
 0x5b3   :  { %v2767_v34 = vrot.slane %v2766_v38, 2  ;;  %v2952_v56 = vadd.f32 %v2951_v44, %v2911_v24  ;;  %v2978_v60 = vsub.s32 0, %v2977_v41 }
 0x5b4   :  { %v2784_v40 = vadd.f32 %v2783_v26, %v2747_v13  ;;  %v2939_v63 = vrot.slane %v2938_v61, 2  ;;  %v2990_v58 = vsub.s32 %v2987_v19, %v2977_v41 }
 0x5b5   :  { %v2768_v10 = vadd.f32 %v2767_v34, %v2766_v38  ;;  %v2953_v53 = vadd.f32 %v2952_v56, %v2913_v6  ;;  %v2974_v38 = vpop.permute.xlu0 %2973 }
 0x5b6   :  { %v2785_v36 = vadd.f32 %v2784_v40, %v2749_v51  ;;  %v2940_v28 = vadd.f32 %v2939_v63, %v2938_v61  ;;  %v2979_v52 = vrot.slane %v2974_v38, %v2978_v60 }
 0x5b7   :  { %v2769_v7 = vrot.slane %v2768_v10, 1  ;;  %v2954_v55 = vadd.f32 %v2953_v53, %v2915_v42 }
 0x5b8   :  { %v2786_v47 = vrot.slane %v2785_v36, 4  ;;  %v2941_v33 = vrot.slane %v2940_v28, 1 }
 0x5b9   :  { %v2770_v30 = vadd.f32 %v2769_v7, %v2768_v10  ;;  %v2955_v11 = vadd.f32 %v2954_v55, %v2917_v29 }
 0x5ba   :  { %v2787_v22 = vadd.f32 %v2786_v47, %v2785_v36  ;;  %v2942_v21 = vadd.f32 %v2941_v33, %v2940_v28 }
 0x5bb   :  { %v2792_v0 = vmul.f32 0.0078125, %v2770_v30  ;;  %v2956_v59 = vadd.f32 %v2955_v11, %v2919_v62 }
 0x5bc   :  { %v2788_v4 = vrot.slane %v2787_v22, 2 }
 0x5bd   :  { %v2964_v32 = vadd.f32 1e-05, %v2792_v0  ;;  %v2957_v2 = vadd.f32 %v2956_v59, %v2921_v17 }
 0x5be   :  { %v2789_v9 = vadd.f32 %v2788_v4, %v2787_v22 }
 0x5bf   :  { %3288 = vrsqrt.f32 %v2964_v32  ;;  %v2958_v35 = vrot.slane %v2957_v2, 4 }
 0x5c0   :  { %v2790_v5 = vrot.slane %v2789_v9, 1 }
 0x5c1   :  { %v2959_v3 = vadd.f32 %v2958_v35, %v2957_v2 }
 0x5c2   :  { %v2791_v25 = vadd.f32 %v2790_v5, %v2789_v9 }
 0x5c3   :  { %v2960_v57 = vrot.slane %v2959_v3, 2 }
 0x5c4   :  { %v2793_v16 = vmul.f32 0.0078125, %v2791_v25 }
 0x5c5   :  { %v2961_v31 = vadd.f32 %v2960_v57, %v2959_v3 }
 0x5c6   :  { %v2965_v46 = vadd.f32 1e-05, %v2793_v16 }
 0x5c7   :  { %v2962_v37 = vrot.slane %v2961_v31, 1 }
 0x5c8   :  { %3290 = vrsqrt.f32 %v2965_v46 }
 0x5c9   :  { %v3289_v15 = vpop.eup %3288  ;;  %v2963_v27 = vadd.f32 %v2962_v37, %v2961_v31 }
 0x5ca   :  { %v2968_v50 = vmul.f32 %v3289_v15, %v2942_v21 }
 0x5cc   :  { %v2980_v34 = vadd.f32 %v2979_v52, %v2968_v50 }
 0x5d2   :  { %v3291_v8 = vpop.eup %3290 }
 0x5d3   :  { %v2969_v43 = vmul.f32 %v3291_v8, %v2963_v27 }
 0x5d5   :  { %v2981_v12 = vadd.f32 %v2979_v52, %v2969_v43 }
 0x5d7   :  { %v2984_v23 = vcombine.low %v2980_v34, %v2981_v12 }
 0x5d9   :  { %v2991_v20 = vrot.slane %v2984_v23, %v2990_v58 }
 0x5db   :  { %v2998_v18 = vrot.slane %v2991_v20, %v2990_v58 }
 0x5dd   :  { %3004 = vst.msk [vmem:[#allocation3] sm:$0x3] %vm3002_vm1, %v2998_v18 }
 0x5de   :  { %3303 = shalt.err (!%p3300_p4)
}
 0x5df   :  { %s3304_s25 = scalar_lea.hbm %s5724_s9, 32 }
 0x5e0   :  { %p3305_p5 = scmp.ne.s32.totalorder %s5724_s9, %s3304_s25  ;;  %p3308_p6 = scmp.lt.u32.totalorder %s3304_s25, %s5724_s9 }
 0x5e2   :  { %p3310_p7 = pnand %p3308_p6, %p3305_p5 }
 0x5e4   :  { %3313 = shalt.err (!%p3310_p7)
}
 0x5e5   :  { %3014 = dma.vmem_to_hbm [thread:$0]  %s3012_s22, 32, %s5724_s9, [#allocation4]  }
 0x5e6   :  { %3314 = dma.done.wait [#allocation4], 32  }
 0x5e7   :  { %3315 = vsyncadd [#allocation4], 4294967264 }
 0x5e8   :  { %3018 = vsyncpa [#allocation4], 1 }

</bundles_post_ra>
